<compile_context>
chip_gen: v7x
topology: tpu7x:2x2x1
jax: 0.10.0
libtpu: 0.0.40
codegen_flags: <defaults>
</compile_context>

<pallas_src>
import functools

import jax
import jax.numpy as jnp
from jax import lax
from jax.experimental import pallas as pl
from jax.experimental.pallas import tpu as pltpu

GINE_EPS = 0.1   # GINEConv.eps init value torch.Tensor([0.1])
LN_EPS = 1e-5    # pyg_nn.LayerNorm default eps


def _silu(v):
    return v * jax.nn.sigmoid(v)


def residual_block_kernel(
    x_ref, n2g_ref, ea_ref, src_ref, dst_ref,
    we_w_ref, we_b_ref, w1_ref, b1_ref, w2_ref, b2_ref,
    gamma_ref, beta_ref,
    out_ref,
    agg_ref, xb_ref,
    *, num_graphs,
):
    f32 = jnp.float32
    bf16 = jnp.bfloat16
    k = pl.program_id(0)

    V, F = agg_ref.shape
    Et = ea_ref.shape[0]

    @pl.when(k == 0)
    def _():
        # Seed the accumulator with the GINE self term and hoist the bf16 copy of x
        # (removes a per-step V*F f32->bf16 cast and a V*F FMA from the finalize tail).
        agg_ref[...] = (1.0 + GINE_EPS) * x_ref[...]
        xb_ref[...] = x_ref[...].astype(bf16)

    # ---------------- GINEConv message passing: one edge tile per grid step ----------------
    # edge_layer: Linear(Fe -> F) + SiLU.  edge_attr is already bf16; f32 MXU accumulation.
    e = jnp.dot(ea_ref[...], we_w_ref[...], preferred_element_type=f32) + we_b_ref[...]
    e = _silu(e)                                                          # (Et, F) f32

    # gather x_j via an on-the-fly bf16 one-hot (Et, V) built from src indices (no HBM one-hot)
    oh_src = (src_ref[...] == lax.broadcasted_iota(jnp.int32, (Et, V), 1)).astype(bf16)
    xj = jnp.dot(oh_src, xb_ref[...], preferred_element_type=f32)         # (Et, F)

    msg = jnp.maximum(xj + e, 0.0)                                        # (Et, F)

    # scatter-add into the node accumulator via an on-the-fly (V, Et) one-hot from dst indices.
    # Padded edges carry dst == V -> all-zero columns -> contribute nothing.
    oh_dst_t = (dst_ref[...] == lax.broadcasted_iota(jnp.int32, (V, Et), 0)).astype(bf16)
    agg_ref[...] += jnp.dot(oh_dst_t, msg.astype(bf16),
                            preferred_element_type=f32)                   # (V, F)

    # -------- finalize on the last edge tile: node MLP + graph LayerNorm + residual --------
    @pl.when(k == pl.num_programs(0) - 1)
    def _():
        x = x_ref[...]                                                    # (V, F) f32
        h = agg_ref[...]                                                  # already has (1+eps)*x

        # self.nn: Linear + SiLU, Linear + SiLU  (bf16 MXU, f32 accumulation)
        h = jnp.dot(h.astype(bf16), w1_ref[...],
                    preferred_element_type=f32) + b1_ref[...]
        h = _silu(h)
        h = jnp.dot(h.astype(bf16), w2_ref[...],
                    preferred_element_type=f32) + b2_ref[...]
        h = _silu(h)                                                      # (V, F) f32

        # pyg LayerNorm(mode='graph'): normalize over (nodes, features) per graph.
        # Per-graph stats via a small (V, G) membership mask -> VPU/XLU only, no MXU passes.
        G = num_graphs
        mask_vg = (n2g_ref[...] ==
                   lax.broadcasted_iota(jnp.int32, (V, G), 1)).astype(f32)  # (V, G)
        counts = jnp.sum(mask_vg, axis=0, keepdims=True)                  # (1, G)
        w = jnp.maximum(counts, 1.0) * jnp.float32(F)                     # (1, G)

        rowsum = jnp.sum(h, axis=-1, keepdims=True)                       # (V, 1)
        mean_g = jnp.sum(mask_vg * rowsum, axis=0, keepdims=True) / w     # (1, G)
        mean_v = jnp.sum(mask_vg * mean_g, axis=1, keepdims=True)         # (V, 1)

        hc = h - mean_v
        rowsq = jnp.sum(hc * hc, axis=-1, keepdims=True)                  # (V, 1)
        var_g = jnp.sum(mask_vg * rowsq, axis=0, keepdims=True) / w       # (1, G)
        var_v = jnp.sum(mask_vg * var_g, axis=1, keepdims=True)           # (V, 1)
        inv_std = lax.rsqrt(var_v + LN_EPS)

        out = hc * inv_std * gamma_ref[...] + beta_ref[...]

        # residual + relu
        out = (out + x) * 0.5
        out_ref[...] = jnp.maximum(out, 0.0)


def residual_block(x, edge_index, edge_attr, node2graph, params, num_graphs,
                   *, edge_tile=512, vmem_budget_bytes=48 * 1024 * 1024):
    """Wrapper: pick a VMEM-safe edge tile, pad the edge axis, launch the fused kernel."""
    V, F = x.shape
    E, Fe = edge_attr.shape
    f32 = jnp.float32
    bf16 = jnp.bfloat16

    # ---- VMEM sizing: resident node state/weights + per-tile streams/intermediates ----
    # Resident: x (f32, 2 buf) + out (f32, 2 buf) + agg (f32) + xb (bf16) + weights (bf16/f32).
    resident = 5 * V * F * 4 + V * F * 2 + (Fe * F + 2 * F * F) * 2 + 7 * F * 4

    def per_tile(et):
        return (2 * et * Fe * 2        # edge_attr bf16, double-buffered
                + 2 * et * 128 * 4     # src (Et,1) int32 lane-padded, double-buffered
                + 2 * et * 4           # dst (1,Et) int32, double-buffered
                + 2 * et * V * 2       # two on-the-fly one-hots (bf16)
                + 2 * et * F * 4)      # e / msg f32 intermediates

    Et = max(128, (edge_tile // 128) * 128)
    while Et > 128 and resident + per_tile(Et) > vmem_budget_bytes:
        Et -= 128
    vmem_limit = int(min(max(32 * 1024 * 1024, 2 * (resident + per_tile(Et))),
                         vmem_budget_bytes))

    E_pad = ((E + Et - 1) // Et) * Et
    pad = E_pad - E
    # Padded edges: src -> 0 (harmless gather), dst -> V (matches no node -> no scatter).
    src = jnp.pad(edge_index[0].astype(jnp.int32), (0, pad), constant_values=0)
    dst = jnp.pad(edge_index[1].astype(jnp.int32), (0, pad), constant_values=V)
    ea = jnp.pad(edge_attr.astype(bf16), ((0, pad), (0, 0)))   # streamed in bf16

    src_col = src.reshape(E_pad, 1)              # sublane-varying against (Et, V) iota
    dst_row = dst.reshape(1, E_pad)              # lane-varying against (V, Et) iota
    n2g_col = node2graph.astype(jnp.int32).reshape(V, 1)

    num_tiles = E_pad // Et

    def _const(k):
        return (0, 0)

    in_specs = [
        pl.BlockSpec((V, F), _const),              # x           (VMEM-resident, f32)
        pl.BlockSpec((V, 1), _const),              # node2graph  (VMEM-resident)
        pl.BlockSpec((Et, Fe), lambda k: (k, 0)),  # edge_attr tile (streamed, bf16)
        pl.BlockSpec((Et, 1), lambda k: (k, 0)),   # src tile       (streamed)
        pl.BlockSpec((1, Et), lambda k: (0, k)),   # dst tile       (streamed)
        pl.BlockSpec((Fe, F), _const),             # we_w (bf16)
        pl.BlockSpec((1, F), _const),              # we_b
        pl.BlockSpec((F, F), _const),              # w1   (bf16)
        pl.BlockSpec((1, F), _const),              # b1
        pl.BlockSpec((F, F), _const),              # w2   (bf16)
        pl.BlockSpec((1, F), _const),              # b2
        pl.BlockSpec((1, F), _const),              # gamma
        pl.BlockSpec((1, F), _const),              # beta
    ]

    kernel = functools.partial(residual_block_kernel, num_graphs=num_graphs)

    return pl.pallas_call(
        kernel,
        out_shape=jax.ShapeDtypeStruct((V, F), f32),
        grid=(num_tiles,),
        in_specs=in_specs,
        out_specs=pl.BlockSpec((V, F), _const),
        scratch_shapes=[pltpu.VMEM((V, F), f32),    # agg accumulator
                        pltpu.VMEM((V, F), bf16)],  # hoisted bf16 copy of x
        compiler_params=pltpu.CompilerParams(
            dimension_semantics=("arbitrary",),     # edge axis is a reduction into agg_ref
            vmem_limit_bytes=vmem_limit,
        ),
    )(x.astype(f32), n2g_col, ea, src_col, dst_row,
      params["we_w"].astype(bf16), params["we_b"],
      params["w1"].astype(bf16), params["b1"],
      params["w2"].astype(bf16), params["b2"],
      params["gamma"], params["beta"])


def reference(x, edge_index, edge_attr, node2graph, params, num_graphs):
    """Pure-JAX (f32, highest precision) reference of the same forward semantics."""
    hp = jax.lax.Precision.HIGHEST
    src, dst = edge_index[0], edge_index[1]
    V, F = x.shape
    e = jax.nn.silu(jnp.dot(edge_attr, params["we_w"], precision=hp) + params["we_b"])
    msg = jax.nn.relu(x[src] + e)
    agg = jax.ops.segment_sum(msg, dst, num_segments=V)
    h = agg + (1.0 + GINE_EPS) * x
    h = jax.nn.silu(jnp.dot(h, params["w1"], precision=hp) + params["b1"])
    h = jax.nn.silu(jnp.dot(h, params["w2"], precision=hp) + params["b2"])
    counts = jax.ops.segment_sum(jnp.ones((V,), jnp.float32), node2graph,
                                 num_segments=num_graphs)
    w = jnp.maximum(counts, 1.0) * F
    mean = jax.ops.segment_sum(h.sum(-1), node2graph, num_segments=num_graphs) / w
    hc = h - mean[node2graph][:, None]
    var = jax.ops.segment_sum((hc * hc).sum(-1), node2graph, num_segments=num_graphs) / w
    out = hc / jnp.sqrt(var + LN_EPS)[node2graph][:, None]
    out = out * params["gamma"] + params["beta"]
    out = (out + x) / 2.0
    return jax.nn.relu(out)


def init_params(key, node_dim, edge_dim):
    ks = jax.random.split(key, 6)
    s_e = 1.0 / jnp.sqrt(edge_dim)
    s_n = 1.0 / jnp.sqrt(node_dim)
    return {
        # weights stored (in, out) so the kernel computes x @ W  (== PyTorch x @ W.T)
        "we_w": jax.random.uniform(ks[0], (edge_dim, node_dim), jnp.float32, -s_e, s_e),
        "we_b": jax.random.uniform(ks[1], (1, node_dim), jnp.float32, -s_e, s_e),
        "w1":   jax.random.uniform(ks[2], (node_dim, node_dim), jnp.float32, -s_n, s_n),
        "b1":   jax.random.uniform(ks[3], (1, node_dim), jnp.float32, -s_n, s_n),
        "w2":   jax.random.uniform(ks[4], (node_dim, node_dim), jnp.float32, -s_n, s_n),
        "b2":   jax.random.uniform(ks[5], (1, node_dim), jnp.float32, -s_n, s_n),
        # graph_norm2 affine params (pyg LayerNorm default init)
        "gamma": jnp.ones((1, node_dim), jnp.float32),
        "beta":  jnp.zeros((1, node_dim), jnp.float32),
    }


if __name__ == "__main__":
    node_dim, edge_dim = 128, 64
    G = 4
    nodes_per_graph = 16
    edges_per_graph = 160
    V = G * nodes_per_graph          # 64 nodes
    E = G * edges_per_graph          # 640 edges (non-multiple of tile -> padding + 2 grid steps)

    key = jax.random.PRNGKey(0)
    k_x, k_e, k_src, k_dst, k_p = jax.random.split(key, 5)

    x = jax.random.normal(k_x, (V, node_dim), jnp.float32)
    edge_attr = jax.random.normal(k_e, (E, edge_dim), jnp.float32)

    # node -> graph assignment; edges stay within their own graph
    node2graph = jnp.repeat(jnp.arange(G, dtype=jnp.int32), nodes_per_graph)
    src_local = jax.random.randint(k_src, (G, edges_per_graph), 0, nodes_per_graph, jnp.int32)
    dst_local = jax.random.randint(k_dst, (G, edges_per_graph), 0, nodes_per_graph, jnp.int32)
    offsets = (jnp.arange(G, dtype=jnp.int32) * nodes_per_graph)[:, None]
    src = (src_local + offsets).reshape(-1)
    dst = (dst_local + offsets).reshape(-1)
    edge_index = jnp.stack([src, dst])                                   # (2, E)

    params = init_params(k_p, node_dim, edge_dim)

    out = residual_block(x, edge_index, edge_attr, node2graph, params, G)
    out = jax.block_until_ready(out)

    ref = reference(x, edge_index, edge_attr, node2graph, params, G)
    assert out.shape == (V, node_dim)
    max_diff = float(jnp.max(jnp.abs(out - ref)))
    # bf16 MXU operands (incl. bf16 edge_attr stream / bf16 x gather) with f32 accumulation
    # -> allow a few % end-to-end drift vs the f32 reference
    assert jnp.allclose(out, ref, atol=5e-2, rtol=5e-2), \
        f"kernel / reference mismatch, max|diff|={max_diff}"

    print("KERNEL_OK")
</pallas_src>

<mosaic_0001>
module attributes {stable_mosaic.version = 11 : i64} {
  func.func @residual_block_kernel(%arg0: i32, %arg1: memref<64x128xf32, #tpu.memory_space<vmem>>, %arg2: memref<64x1xi32, #tpu.memory_space<vmem>>, %arg3: memref<512x64xbf16, #tpu.memory_space<vmem>>, %arg4: memref<512x1xi32, #tpu.memory_space<vmem>>, %arg5: memref<1x512xi32, #tpu.memory_space<vmem>>, %arg6: memref<64x128xbf16, #tpu.memory_space<vmem>>, %arg7: memref<1x128xf32, #tpu.memory_space<vmem>>, %arg8: memref<128x128xbf16, #tpu.memory_space<vmem>>, %arg9: memref<1x128xf32, #tpu.memory_space<vmem>>, %arg10: memref<128x128xbf16, #tpu.memory_space<vmem>>, %arg11: memref<1x128xf32, #tpu.memory_space<vmem>>, %arg12: memref<1x128xf32, #tpu.memory_space<vmem>>, %arg13: memref<1x128xf32, #tpu.memory_space<vmem>>, %arg14: memref<64x128xf32, #tpu.memory_space<vmem>>, %arg15: memref<64x128xf32, #tpu.memory_space<vmem>>, %arg16: memref<64x128xbf16, #tpu.memory_space<vmem>>) attributes {dimension_semantics = [#tpu.dimension_semantics<arbitrary>], iteration_bounds = array<i64: 2>, scalar_prefetch = 0 : i64, scratch_operands = 2 : i64, tpu.core_type = #tpu.core_type<tc>, window_params = [{pipeline_mode = #tpu.pipeline_mode<synchronous>, transform_indices = @transform_0, window_bounds = array<i64: 64, 128>}, {pipeline_mode = #tpu.pipeline_mode<synchronous>, transform_indices = @transform_1, window_bounds = array<i64: 64, 1>}, {transform_indices = @transform_2, window_bounds = array<i64: 512, 64>}, {transform_indices = @transform_3, window_bounds = array<i64: 512, 1>}, {transform_indices = @transform_4, window_bounds = array<i64: 1, 512>}, {pipeline_mode = #tpu.pipeline_mode<synchronous>, transform_indices = @transform_5, window_bounds = array<i64: 64, 128>}, {pipeline_mode = #tpu.pipeline_mode<synchronous>, transform_indices = @transform_6, window_bounds = array<i64: 1, 128>}, {pipeline_mode = #tpu.pipeline_mode<synchronous>, transform_indices = @transform_7, window_bounds = array<i64: 128, 128>}, {pipeline_mode = #tpu.pipeline_mode<synchronous>, transform_indices = @transform_8, window_bounds = array<i64: 1, 128>}, {pipeline_mode = #tpu.pipeline_mode<synchronous>, transform_indices = @transform_9, window_bounds = array<i64: 128, 128>}, {pipeline_mode = #tpu.pipeline_mode<synchronous>, transform_indices = @transform_10, window_bounds = array<i64: 1, 128>}, {pipeline_mode = #tpu.pipeline_mode<synchronous>, transform_indices = @transform_11, window_bounds = array<i64: 1, 128>}, {pipeline_mode = #tpu.pipeline_mode<synchronous>, transform_indices = @transform_12, window_bounds = array<i64: 1, 128>}, {pipeline_mode = #tpu.pipeline_mode<synchronous>, transform_indices = @transform_13, window_bounds = array<i64: 64, 128>}]} {
    %c0_i32 = arith.constant 0 : i32
    %0 = arith.cmpi eq, %arg0, %c0_i32 : i32
    %1 = arith.extui %0 : i1 to i32
    %c0_i32_0 = arith.constant 0 : i32
    %2 = arith.cmpi ne, %1, %c0_i32_0 : i32
    scf.if %2 {
      %c0_21 = arith.constant 0 : index
      %c0_22 = arith.constant 0 : index
      %42 = vector.load %arg1[%c0_21, %c0_22] : memref<64x128xf32, #tpu.memory_space<vmem>>, vector<64x128xf32>
      %cst_23 = arith.constant 1.100000e+00 : f32
      %43 = vector.broadcast %cst_23 : f32 to vector<64x128xf32>
      %44 = arith.mulf %43, %42 : vector<64x128xf32>
      %c0_24 = arith.constant 0 : index
      %c0_25 = arith.constant 0 : index
      %45 = vector.load %arg15[%c0_24, %c0_25] : memref<64x128xf32, #tpu.memory_space<vmem>>, vector<64x128xf32>
      tpu.vector_store %arg15[%c0_24, %c0_25], %44 {strides = array<i32>} : memref<64x128xf32, #tpu.memory_space<vmem>>, vector<64x128xf32>,
      %c0_26 = arith.constant 0 : index
      %c0_27 = arith.constant 0 : index
      %46 = vector.load %arg1[%c0_26, %c0_27] : memref<64x128xf32, #tpu.memory_space<vmem>>, vector<64x128xf32>
      %47 = arith.truncf %46 : vector<64x128xf32> to vector<64x128xbf16>
      %c0_28 = arith.constant 0 : index
      %c0_29 = arith.constant 0 : index
      %48 = vector.load %arg16[%c0_28, %c0_29] : memref<64x128xbf16, #tpu.memory_space<vmem>>, vector<64x128xbf16>
      tpu.vector_store %arg16[%c0_28, %c0_29], %47 {strides = array<i32>} : memref<64x128xbf16, #tpu.memory_space<vmem>>, vector<64x128xbf16>,
    } else {
    }
    %c0 = arith.constant 0 : index
    %c0_1 = arith.constant 0 : index
    %3 = vector.load %arg3[%c0, %c0_1] : memref<512x64xbf16, #tpu.memory_space<vmem>>, vector<512x64xbf16>
    %c0_2 = arith.constant 0 : index
    %c0_3 = arith.constant 0 : index
    %4 = vector.load %arg6[%c0_2, %c0_3] : memref<64x128xbf16, #tpu.memory_space<vmem>>, vector<64x128xbf16>
    %cst = arith.constant dense<0.000000e+00> : vector<512x128xf32>
    %5 = tpu.matmul %3, %4, %cst {dimension_numbers = #tpu.dot_dimension_numbers<[1], [0], [0], [1], [0, 0, 1, 1], [], []>} : vector<512x64xbf16>, vector<64x128xbf16>, vector<512x128xf32> -> vector<512x128xf32>
    %c0_4 = arith.constant 0 : index
    %c0_5 = arith.constant 0 : index
    %6 = vector.load %arg7[%c0_4, %c0_5] : memref<1x128xf32, #tpu.memory_space<vmem>>, vector<1x128xf32>
    %7 = vector.broadcast %6 : vector<1x128xf32> to vector<512x128xf32>
    %8 = arith.addf %5, %7 : vector<512x128xf32>
    %9 = arith.negf %8 : vector<512x128xf32>
    %10 = math.exp %9 : vector<512x128xf32>
    %cst_6 = arith.constant 1.000000e+00 : f32
    %11 = vector.broadcast %cst_6 : f32 to vector<512x128xf32>
    %12 = arith.addf %11, %10 : vector<512x128xf32>
    %13 = arith.divf %11, %12 : vector<512x128xf32>
    %14 = arith.mulf %8, %13 : vector<512x128xf32>
    %c0_7 = arith.constant 0 : index
    %c0_8 = arith.constant 0 : index
    %15 = vector.load %arg4[%c0_7, %c0_8] : memref<512x1xi32, #tpu.memory_space<vmem>>, vector<512x1xi32>
    %16 = tpu.iota {dimensions = array<i32: 1>} : vector<512x64xi32>
    %17 = vector.broadcast %15 : vector<512x1xi32> to vector<512x64xi32>
    %18 = arith.cmpi eq, %17, %16 : vector<512x64xi32>
    %19 = arith.extui %18 : vector<512x64xi1> to vector<512x64xi32>
    %20 = arith.sitofp %19 : vector<512x64xi32> to vector<512x64xf32>
    %21 = arith.truncf %20 : vector<512x64xf32> to vector<512x64xbf16>
    %c0_9 = arith.constant 0 : index
    %c0_10 = arith.constant 0 : index
    %22 = vector.load %arg16[%c0_9, %c0_10] : memref<64x128xbf16, #tpu.memory_space<vmem>>, vector<64x128xbf16>
    %cst_11 = arith.constant dense<0.000000e+00> : vector<512x128xf32>
    %23 = tpu.matmul %21, %22, %cst_11 {dimension_numbers = #tpu.dot_dimension_numbers<[1], [0], [0], [1], [0, 0, 1, 1], [], []>} : vector<512x64xbf16>, vector<64x128xbf16>, vector<512x128xf32> -> vector<512x128xf32>
    %24 = arith.addf %23, %14 : vector<512x128xf32>
    %cst_12 = arith.constant 0.000000e+00 : f32
    %25 = vector.broadcast %cst_12 : f32 to vector<512x128xf32>
    %26 = arith.maximumf %24, %25 : vector<512x128xf32>
    %c0_13 = arith.constant 0 : index
    %c0_14 = arith.constant 0 : index
    %27 = vector.load %arg5[%c0_13, %c0_14] : memref<1x512xi32, #tpu.memory_space<vmem>>, vector<1x512xi32>
    %28 = tpu.iota {dimensions = array<i32: 0>} : vector<64x512xi32>
    %29 = vector.broadcast %27 : vector<1x512xi32> to vector<64x512xi32>
    %30 = arith.cmpi eq, %29, %28 : vector<64x512xi32>
    %31 = arith.extui %30 : vector<64x512xi1> to vector<64x512xi32>
    %32 = arith.sitofp %31 : vector<64x512xi32> to vector<64x512xf32>
    %33 = arith.truncf %32 : vector<64x512xf32> to vector<64x512xbf16>
    %c0_15 = arith.constant 0 : index
    %c0_16 = arith.constant 0 : index
    %34 = vector.load %arg15[%c0_15, %c0_16] : memref<64x128xf32, #tpu.memory_space<vmem>>, vector<64x128xf32>
    %35 = arith.truncf %26 : vector<512x128xf32> to vector<512x128xbf16>
    %cst_17 = arith.constant dense<0.000000e+00> : vector<64x128xf32>
    %36 = tpu.matmul %33, %35, %cst_17 {dimension_numbers = #tpu.dot_dimension_numbers<[1], [0], [0], [1], [0, 0, 1, 1], [], []>} : vector<64x512xbf16>, vector<512x128xbf16>, vector<64x128xf32> -> vector<64x128xf32>
    %37 = arith.addf %34, %36 : vector<64x128xf32>
    %c0_18 = arith.constant 0 : index
    %c0_19 = arith.constant 0 : index
    %38 = vector.load %arg15[%c0_18, %c0_19] : memref<64x128xf32, #tpu.memory_space<vmem>>, vector<64x128xf32>
    tpu.vector_store %arg15[%c0_18, %c0_19], %37 {strides = array<i32>} : memref<64x128xf32, #tpu.memory_space<vmem>>, vector<64x128xf32>,
    %c1_i32 = arith.constant 1 : i32
    %39 = arith.cmpi eq, %arg0, %c1_i32 : i32
    %40 = arith.extui %39 : i1 to i32
    %c0_i32_20 = arith.constant 0 : i32
    %41 = arith.cmpi ne, %40, %c0_i32_20 : i32
    scf.if %41 {
      %c0_21 = arith.constant 0 : index
      %c0_22 = arith.constant 0 : index
      %42 = vector.load %arg1[%c0_21, %c0_22] : memref<64x128xf32, #tpu.memory_space<vmem>>, vector<64x128xf32>
      %c0_23 = arith.constant 0 : index
      %c0_24 = arith.constant 0 : index
      %43 = vector.load %arg15[%c0_23, %c0_24] : memref<64x128xf32, #tpu.memory_space<vmem>>, vector<64x128xf32>
      %44 = arith.truncf %43 : vector<64x128xf32> to vector<64x128xbf16>
      %c0_25 = arith.constant 0 : index
      %c0_26 = arith.constant 0 : index
      %45 = vector.load %arg8[%c0_25, %c0_26] : memref<128x128xbf16, #tpu.memory_space<vmem>>, vector<128x128xbf16>
      %cst_27 = arith.constant dense<0.000000e+00> : vector<64x128xf32>
      %46 = tpu.matmul %44, %45, %cst_27 {dimension_numbers = #tpu.dot_dimension_numbers<[1], [0], [0], [1], [0, 0, 1, 1], [], []>} : vector<64x128xbf16>, vector<128x128xbf16>, vector<64x128xf32> -> vector<64x128xf32>
      %c0_28 = arith.constant 0 : index
      %c0_29 = arith.constant 0 : index
      %47 = vector.load %arg9[%c0_28, %c0_29] : memref<1x128xf32, #tpu.memory_space<vmem>>, vector<1x128xf32>
      %48 = vector.broadcast %47 : vector<1x128xf32> to vector<64x128xf32>
      %49 = arith.addf %46, %48 : vector<64x128xf32>
      %50 = arith.negf %49 : vector<64x128xf32>
      %51 = math.exp %50 : vector<64x128xf32>
      %cst_30 = arith.constant 1.000000e+00 : f32
      %52 = vector.broadcast %cst_30 : f32 to vector<64x128xf32>
      %53 = arith.addf %52, %51 : vector<64x128xf32>
      %54 = arith.divf %52, %53 : vector<64x128xf32>
      %55 = arith.mulf %49, %54 : vector<64x128xf32>
      %56 = arith.truncf %55 : vector<64x128xf32> to vector<64x128xbf16>
      %c0_31 = arith.constant 0 : index
      %c0_32 = arith.constant 0 : index
      %57 = vector.load %arg10[%c0_31, %c0_32] : memref<128x128xbf16, #tpu.memory_space<vmem>>, vector<128x128xbf16>
      %cst_33 = arith.constant dense<0.000000e+00> : vector<64x128xf32>
      %58 = tpu.matmul %56, %57, %cst_33 {dimension_numbers = #tpu.dot_dimension_numbers<[1], [0], [0], [1], [0, 0, 1, 1], [], []>} : vector<64x128xbf16>, vector<128x128xbf16>, vector<64x128xf32> -> vector<64x128xf32>
      %c0_34 = arith.constant 0 : index
      %c0_35 = arith.constant 0 : index
      %59 = vector.load %arg11[%c0_34, %c0_35] : memref<1x128xf32, #tpu.memory_space<vmem>>, vector<1x128xf32>
      %60 = vector.broadcast %59 : vector<1x128xf32> to vector<64x128xf32>
      %61 = arith.addf %58, %60 : vector<64x128xf32>
      %62 = arith.negf %61 : vector<64x128xf32>
      %63 = math.exp %62 : vector<64x128xf32>
      %cst_36 = arith.constant 1.000000e+00 : f32
      %64 = vector.broadcast %cst_36 : f32 to vector<64x128xf32>
      %65 = arith.addf %64, %63 : vector<64x128xf32>
      %66 = arith.divf %64, %65 : vector<64x128xf32>
      %67 = arith.mulf %61, %66 : vector<64x128xf32>
      %c0_37 = arith.constant 0 : index
      %c0_38 = arith.constant 0 : index
      %68 = vector.load %arg2[%c0_37, %c0_38] : memref<64x1xi32, #tpu.memory_space<vmem>>, vector<64x1xi32>
      %69 = tpu.iota {dimensions = array<i32: 1>} : vector<64x4xi32>
      %70 = vector.broadcast %68 : vector<64x1xi32> to vector<64x4xi32>
      %71 = arith.cmpi eq, %70, %69 : vector<64x4xi32>
      %72 = arith.extui %71 : vector<64x4xi1> to vector<64x4xi32>
      %73 = arith.sitofp %72 : vector<64x4xi32> to vector<64x4xf32>
      %cst_39 = arith.constant dense<0.000000e+00> : vector<4xf32>
      %74 = vector.multi_reduction <add>, %73, %cst_39 [0] : vector<64x4xf32> to vector<4xf32>
      %75 = vector.shape_cast %74 : vector<4xf32> to vector<1x4xf32>
      %cst_40 = arith.constant 1.000000e+00 : f32
      %76 = vector.broadcast %cst_40 : f32 to vector<1x4xf32>
      %77 = arith.maximumf %75, %76 : vector<1x4xf32>
      %cst_41 = arith.constant 1.280000e+02 : f32
      %78 = vector.broadcast %cst_41 : f32 to vector<1x4xf32>
      %79 = arith.mulf %77, %78 : vector<1x4xf32>
      %cst_42 = arith.constant dense<0.000000e+00> : vector<64xf32>
      %80 = vector.multi_reduction <add>, %67, %cst_42 [1] : vector<64x128xf32> to vector<64xf32>
      %81 = vector.shape_cast %80 : vector<64xf32> to vector<64x1xf32>
      %82 = vector.broadcast %81 : vector<64x1xf32> to vector<64x4xf32>
      %83 = arith.mulf %73, %82 : vector<64x4xf32>
      %cst_43 = arith.constant dense<0.000000e+00> : vector<4xf32>
      %84 = vector.multi_reduction <add>, %83, %cst_43 [0] : vector<64x4xf32> to vector<4xf32>
      %85 = vector.shape_cast %84 : vector<4xf32> to vector<1x4xf32>
      %86 = arith.divf %85, %79 : vector<1x4xf32>
      %87 = vector.broadcast %86 : vector<1x4xf32> to vector<64x4xf32>
      %88 = arith.mulf %73, %87 : vector<64x4xf32>
      %cst_44 = arith.constant dense<0.000000e+00> : vector<64xf32>
      %89 = vector.multi_reduction <add>, %88, %cst_44 [1] : vector<64x4xf32> to vector<64xf32>
      %90 = vector.shape_cast %89 : vector<64xf32> to vector<64x1xf32>
      %91 = vector.broadcast %90 : vector<64x1xf32> to vector<64x128xf32>
      %92 = arith.subf %67, %91 : vector<64x128xf32>
      %93 = arith.mulf %92, %92 : vector<64x128xf32>
      %cst_45 = arith.constant dense<0.000000e+00> : vector<64xf32>
      %94 = vector.multi_reduction <add>, %93, %cst_45 [1] : vector<64x128xf32> to vector<64xf32>
      %95 = vector.shape_cast %94 : vector<64xf32> to vector<64x1xf32>
      %96 = vector.broadcast %95 : vector<64x1xf32> to vector<64x4xf32>
      %97 = arith.mulf %73, %96 : vector<64x4xf32>
      %cst_46 = arith.constant dense<0.000000e+00> : vector<4xf32>
      %98 = vector.multi_reduction <add>, %97, %cst_46 [0] : vector<64x4xf32> to vector<4xf32>
      %99 = vector.shape_cast %98 : vector<4xf32> to vector<1x4xf32>
      %100 = arith.divf %99, %79 : vector<1x4xf32>
      %101 = vector.broadcast %100 : vector<1x4xf32> to vector<64x4xf32>
      %102 = arith.mulf %73, %101 : vector<64x4xf32>
      %cst_47 = arith.constant dense<0.000000e+00> : vector<64xf32>
      %103 = vector.multi_reduction <add>, %102, %cst_47 [1] : vector<64x4xf32> to vector<64xf32>
      %104 = vector.shape_cast %103 : vector<64xf32> to vector<64x1xf32>
      %cst_48 = arith.constant 9.99999974E-6 : f32
      %105 = vector.broadcast %cst_48 : f32 to vector<64x1xf32>
      %106 = arith.addf %104, %105 : vector<64x1xf32>
      %107 = math.rsqrt %106 : vector<64x1xf32>
      %108 = vector.broadcast %107 : vector<64x1xf32> to vector<64x128xf32>
      %109 = arith.mulf %92, %108 : vector<64x128xf32>
      %c0_49 = arith.constant 0 : index
      %c0_50 = arith.constant 0 : index
      %110 = vector.load %arg12[%c0_49, %c0_50] : memref<1x128xf32, #tpu.memory_space<vmem>>, vector<1x128xf32>
      %111 = vector.broadcast %110 : vector<1x128xf32> to vector<64x128xf32>
      %112 = arith.mulf %109, %111 : vector<64x128xf32>
      %c0_51 = arith.constant 0 : index
      %c0_52 = arith.constant 0 : index
      %113 = vector.load %arg13[%c0_51, %c0_52] : memref<1x128xf32, #tpu.memory_space<vmem>>, vector<1x128xf32>
      %114 = vector.broadcast %113 : vector<1x128xf32> to vector<64x128xf32>
      %115 = arith.addf %112, %114 : vector<64x128xf32>
      %116 = arith.addf %115, %42 : vector<64x128xf32>
      %cst_53 = arith.constant 5.000000e-01 : f32
      %117 = vector.broadcast %cst_53 : f32 to vector<64x128xf32>
      %118 = arith.mulf %116, %117 : vector<64x128xf32>
      %cst_54 = arith.constant 0.000000e+00 : f32
      %119 = vector.broadcast %cst_54 : f32 to vector<64x128xf32>
      %120 = arith.maximumf %118, %119 : vector<64x128xf32>
      %c0_55 = arith.constant 0 : index
      %c0_56 = arith.constant 0 : index
      %121 = vector.load %arg14[%c0_55, %c0_56] : memref<64x128xf32, #tpu.memory_space<vmem>>, vector<64x128xf32>
      tpu.vector_store %arg14[%c0_55, %c0_56], %120 {strides = array<i32>} : memref<64x128xf32, #tpu.memory_space<vmem>>, vector<64x128xf32>,
    } else {
    }
    return
  }
  func.func @transform_0(%arg0: i32) -> (i32, i32) {
    %c0_i32 = arith.constant 0 : i32
    %c0_i32_0 = arith.constant 0 : i32
    %c0_i32_1 = arith.constant 0 : i32
    return %c0_i32, %c0_i32_0 : i32, i32
  }
  func.func @transform_1(%arg0: i32) -> (i32, i32) {
    %c0_i32 = arith.constant 0 : i32
    %c0_i32_0 = arith.constant 0 : i32
    %c0_i32_1 = arith.constant 0 : i32
    return %c0_i32, %c0_i32_0 : i32, i32
  }
  func.func @transform_2(%arg0: i32) -> (i32, i32) {
    %c0_i32 = arith.constant 0 : i32
    %c0_i32_0 = arith.constant 0 : i32
    return %arg0, %c0_i32 : i32, i32
  }
  func.func @transform_3(%arg0: i32) -> (i32, i32) {
    %c0_i32 = arith.constant 0 : i32
    %c0_i32_0 = arith.constant 0 : i32
    return %arg0, %c0_i32 : i32, i32
  }
  func.func @transform_4(%arg0: i32) -> (i32, i32) {
    %c0_i32 = arith.constant 0 : i32
    %c0_i32_0 = arith.constant 0 : i32
    return %c0_i32, %arg0 : i32, i32
  }
  func.func @transform_5(%arg0: i32) -> (i32, i32) {
    %c0_i32 = arith.constant 0 : i32
    %c0_i32_0 = arith.constant 0 : i32
    %c0_i32_1 = arith.constant 0 : i32
    return %c0_i32, %c0_i32_0 : i32, i32
  }
  func.func @transform_6(%arg0: i32) -> (i32, i32) {
    %c0_i32 = arith.constant 0 : i32
    %c0_i32_0 = arith.constant 0 : i32
    %c0_i32_1 = arith.constant 0 : i32
    return %c0_i32, %c0_i32_0 : i32, i32
  }
  func.func @transform_7(%arg0: i32) -> (i32, i32) {
    %c0_i32 = arith.constant 0 : i32
    %c0_i32_0 = arith.constant 0 : i32
    %c0_i32_1 = arith.constant 0 : i32
    return %c0_i32, %c0_i32_0 : i32, i32
  }
  func.func @transform_8(%arg0: i32) -> (i32, i32) {
    %c0_i32 = arith.constant 0 : i32
    %c0_i32_0 = arith.constant 0 : i32
    %c0_i32_1 = arith.constant 0 : i32
    return %c0_i32, %c0_i32_0 : i32, i32
  }
  func.func @transform_9(%arg0: i32) -> (i32, i32) {
    %c0_i32 = arith.constant 0 : i32
    %c0_i32_0 = arith.constant 0 : i32
    %c0_i32_1 = arith.constant 0 : i32
    return %c0_i32, %c0_i32_0 : i32, i32
  }
  func.func @transform_10(%arg0: i32) -> (i32, i32) {
    %c0_i32 = arith.constant 0 : i32
    %c0_i32_0 = arith.constant 0 : i32
    %c0_i32_1 = arith.constant 0 : i32
    return %c0_i32, %c0_i32_0 : i32, i32
  }
  func.func @transform_11(%arg0: i32) -> (i32, i32) {
    %c0_i32 = arith.constant 0 : i32
    %c0_i32_0 = arith.constant 0 : i32
    %c0_i32_1 = arith.constant 0 : i32
    return %c0_i32, %c0_i32_0 : i32, i32
  }
  func.func @transform_12(%arg0: i32) -> (i32, i32) {
    %c0_i32 = arith.constant 0 : i32
    %c0_i32_0 = arith.constant 0 : i32
    %c0_i32_1 = arith.constant 0 : i32
    return %c0_i32, %c0_i32_0 : i32, i32
  }
  func.func @transform_13(%arg0: i32) -> (i32, i32) {
    %c0_i32 = arith.constant 0 : i32
    %c0_i32_0 = arith.constant 0 : i32
    %c0_i32_1 = arith.constant 0 : i32
    return %c0_i32, %c0_i32_0 : i32, i32
  }
}

</mosaic_0001>

<bundles_post_ra>
// kernel: tpu_custom_call.1
= control target key start
LH: loop header
LB: loop body
LE: loop exit
PB: predicated region body
PF: predicated region fallthrough
CT: control target
= control target key end

     0   :  { %18 = vsyncpa [#allocation5], 0  ;;  %s4944_s25 = smov 0   ;;  %s6595_s0 = inlined_call_operand.vmem [shape: f32[64,128], index: 0, kind: input, shape index: {}]   ;;  %s6596_s1 = inlined_call_operand.vmem [shape: s32[64,1], index: 1, kind: input, shape index: {}]   ;;  %s6597_s2 = inlined_call_operand.vmem [shape: bf16[1024,64], index: 2, kind: input, shape index: {}]   ;;  %s6598_s3 = inlined_call_operand.vmem [shape: s32[1024,1], index: 3, kind: input, shape index: {}]   ;;  %s6599_s4 = inlined_call_operand.vmem [shape: s32[1,1024], index: 4, kind: input, shape index: {}]   ;;  %s6600_s5 = inlined_call_operand.vmem [shape: bf16[64,128], index: 5, kind: input, shape index: {}]   ;;  %s6601_s6 = inlined_call_operand.vmem [shape: f32[1,128], index: 6, kind: input, shape index: {}]   ;;  %s6602_s7 = inlined_call_operand.vmem [shape: bf16[128,128], index: 7, kind: input, shape index: {}]   ;;  %s6603_s8 = inlined_call_operand.vmem [shape: f32[1,128], index: 8, kind: input, shape index: {}]   ;;  %s6604_s9 = inlined_call_operand.vmem [shape: bf16[128,128], index: 9, kind: input, shape index: {}]   ;;  %s6605_s10 = inlined_call_operand.vmem [shape: f32[1,128], index: 10, kind: input, shape index: {}]   ;;  %s6606_s11 = inlined_call_operand.vmem [shape: f32[1,128], index: 11, kind: input, shape index: {}]   ;;  %s6607_s12 = inlined_call_operand.vmem [shape: f32[1,128], index: 12, kind: input, shape index: {}]   ;;  %s6608_s13 = inlined_call_operand.hbm [shape: f32[64,128], index: 13, kind: output, shape index: {}]  }
   0x1 LB: > { %s4950_s26 = sadd.s32 4294967295, %s4864_s25   ;;  %p3694_p0 = scmp.ge.s32.totalorder %s4864_s25, 1  ;;  %s4864_s25 = sphi %s4944_s25, %s24_s25  }
   0x2   : > { %p405_p1 = scmp.lt.s32.totalorder %s4864_s25, 3 }
   0x4   : > { %p406_p2 = pnand %p3694_p0, %p405_p1 }
   0x6   : > { %409 = sbr.rel (%p406_p2) target bundleno = 2018 (0x7e2), region = 72 }
   0xd   : > { %s3695_s27 = sshll.u32 %s4950_s26, 6  ;;  %s3699_s28 = sshll.u32 %s4950_s26, 2 }
   0xe   : > { %p454_p3 = scmp.lt.s32.totalorder %s3695_s27, 127  ;;  %p466_p4 = scmp.lt.s32.totalorder %s3699_s28, 7 }
   0xf   : > { %p3700_p5 = scmp.ne.s32.totalorder %s4950_s26, 0 }
  0x10   : > { %s6756_s27 = smov (!%p454_p3, %s3695_s27), 127  ;;  %s6758_s28 = smov (!%p466_p4, %s3699_s28), 7 }
  0x11   : > { %s3696_s29 = sshll.u32 %s6756_s27, 2  ;;  %s3698_s30 = sshll.u32 %s6756_s27, 3  ;;  %v475_v0 = vld [vmem:[%s6595_s0] sm:$0xff] (!%p3700_p5)  ;;  %v476_v1 = vld [vmem:[%s6595_s0 + $0x8] sm:$0xff] (!%p3700_p5)  ;;  %v477_v2 = vld [vmem:[%s6595_s0 + $0x10] sm:$0xff] (!%p3700_p5) }
  0x12   : > { %s4961_s16 = scalar_lea.vmem %s6597_s2, %s3696_s29  ;;  %s4966_s19 = scalar_lea.vmem %s6598_s3, %s3698_s30  ;;  %v483_v3 = vmul.f32 (!%p3700_p5), 1.1, %v475_v0  ;;  %v484_v4 = vmul.f32 (!%p3700_p5), 1.1, %v476_v1  ;;  %v485_v5 = vmul.f32 (!%p3700_p5), 1.1, %v477_v2  ;;  %v507_v6 = vpack.c.bf16 (!%p3700_p5), %v476_v1, %v475_v0 }
  0x13   : > { %s468_s22 = scalar_lea.vmem %s6599_s4, %s6758_s28  ;;  %474 = sbr.rel (%p3700_p5) target bundleno = 26 (0x1a), region = 76  ;;  %v478_v7 = vld [vmem:[%s6595_s0 + $0x18] sm:$0xff] (!%p3700_p5)  ;;  %v479_v8 = vld [vmem:[%s6595_s0 + $0x20] sm:$0xff] (!%p3700_p5)  ;;  %v480_v9 = vld [vmem:[%s6595_s0 + $0x28] sm:$0xff] (!%p3700_p5) }
  0x14   : > { %491 = vst [vmem:[#allocation2] sm:$0xff] (!%p3700_p5), %v483_v3  ;;  %492 = vst [vmem:[#allocation2 + $0x8] sm:$0xff] (!%p3700_p5), %v484_v4  ;;  %v486_v10 = vmul.f32 (!%p3700_p5), 1.1, %v478_v7  ;;  %v487_v11 = vmul.f32 (!%p3700_p5), 1.1, %v479_v8  ;;  %v508_v13 = vpack.c.bf16 (!%p3700_p5), %v478_v7, %v477_v2  ;;  %v509_v16 = vpack.c.bf16 (!%p3700_p5), %v480_v9, %v479_v8 }
  0x15   : > { %493 = vst [vmem:[#allocation2 + $0x10] sm:$0xff] (!%p3700_p5), %v485_v5  ;;  %v488_v12 = vmul.f32 (!%p3700_p5), 1.1, %v480_v9  ;;  %511 = vst [vmem:[#allocation3] sm:$0xff] (!%p3700_p5), %v507_v6  ;;  %v481_v14 = vld [vmem:[%s6595_s0 + $0x30] sm:$0xff] (!%p3700_p5)  ;;  %v482_v15 = vld [vmem:[%s6595_s0 + $0x38] sm:$0xff] (!%p3700_p5) }
  0x16   : > { %494 = vst [vmem:[#allocation2 + $0x18] sm:$0xff] (!%p3700_p5), %v486_v10  ;;  %495 = vst [vmem:[#allocation2 + $0x20] sm:$0xff] (!%p3700_p5), %v487_v11  ;;  %v489_v17 = vmul.f32 (!%p3700_p5), 1.1, %v481_v14  ;;  %v490_v18 = vmul.f32 (!%p3700_p5), 1.1, %v482_v15  ;;  %v510_v19 = vpack.c.bf16 (!%p3700_p5), %v482_v15, %v481_v14 }
  0x17   : > { %496 = vst [vmem:[#allocation2 + $0x28] sm:$0xff] (!%p3700_p5), %v488_v12  ;;  %512 = vst [vmem:[#allocation3 + $0x8] sm:$0xff] (!%p3700_p5), %v508_v13 }
  0x18   : > { %513 = vst [vmem:[#allocation3 + $0x10] sm:$0xff] (!%p3700_p5), %v509_v16  ;;  %497 = vst [vmem:[#allocation2 + $0x30] sm:$0xff] (!%p3700_p5), %v489_v17 }
  0x19   : > { %498 = vst [vmem:[#allocation2 + $0x38] sm:$0xff] (!%p3700_p5), %v490_v18  ;;  %514 = vst [vmem:[#allocation3 + $0x18] sm:$0xff] (!%p3700_p5), %v510_v19 }
  0x1a PF: > { %v1614_v20 = vld [vmem:[%s4966_s19 + $0x10] sm:$0xff]  ;;  %v1612_v21 = vld [vmem:[%s4966_s19] sm:$0xff]  ;;  %v4866_v22 = vmov 0   ;;  %v1615_v23 = vld [vmem:[%s4966_s19 + $0x18] sm:$0xff]  ;;  %vm778_vm0 = vcmask 523264   ;;  %p3994_p6 = scmp.ne.s32.totalorder %s4950_s26, 1 }
  0x1b   : > { %4434 = vset.pattern.permute.xlu1 %v4866_v22  ;;  %4433 = vset.pattern.permute.xlu0 %v4866_v22  ;;  %v1613_v24 = vld [vmem:[%s4966_s19 + $0x8] sm:$0xff]  ;;  %v1616_v26 = vld [vmem:[%s4966_s19 + $0x20] sm:$0xff]  ;;  %v1619_v27 = vld [vmem:[%s4966_s19 + $0x38] sm:$0xff] }
  0x1c   : > { %1685 = vperm.xlu1 %4434, %v1614_v20   ;;  %1679 = vperm.xlu0 %4433, %v1612_v21   ;;  %v1617_v25 = vld [vmem:[%s4966_s19 + $0x28] sm:$0xff]  ;;  %v1618_v28 = vld [vmem:[%s4966_s19 + $0x30] sm:$0xff]  ;;  %v4435_v29 = vld [vmem:[%s6600_s5] sm:$0xff]  }
  0x1d   : > { %4219 = vmatprep.subr.bf16.mxu0 %v4435_v29  ;;  %v4436_v30 = vld [vmem:[%s6600_s5 + $0x8] sm:$0xff]   ;;  %v1620_v32 = vld [vmem:[%s4966_s19 + $0x40] sm:$0xff]  ;;  %v4437_v33 = vld [vmem:[%s6600_s5 + $0x10] sm:$0xff]  }
  0x1e   : > { %v1621_v31 = vld [vmem:[%s4966_s19 + $0x48] sm:$0xff]  ;;  %4220 = vmatpush3.bf16.msra.mxu0 %v4435_v29  ;;  %v4439_v34 = vld [vmem:[%s4961_s16] sm:$0xff]   ;;  %v1623_v35 = vld [vmem:[%s4966_s19 + $0x58] sm:$0xff] }
  0x1f   : > { %4221 = vmatprep.subr.bf16.mxu0 %v4436_v30  ;;  %v1622_v36 = vld [vmem:[%s4966_s19 + $0x50] sm:$0xff]  ;;  %v4438_v37 = vld [vmem:[%s6600_s5 + $0x18] sm:$0xff]   ;;  %4227 = vmatprep.mubr.msk.bf16.mxu0 %vm778_vm0, %v4439_v34  ;;  %v1625_v38 = vld [vmem:[%s4966_s19 + $0x68] sm:$0xff] }
  0x20   : > { %1688 = vperm.xlu1 %4434, %v1615_v23   ;;  %1682 = vperm.xlu0 %4433, %v1613_v24   ;;  %v1624_v39 = vld [vmem:[%s4966_s19 + $0x60] sm:$0xff]  ;;  %v1627_v40 = vld [vmem:[%s4966_s19 + $0x78] sm:$0xff]  ;;  %v1626_v41 = vld [vmem:[%s4966_s19 + $0x70] sm:$0xff] }
  0x21   : > { %v4440_v42 = vld [vmem:[%s4961_s16 + $0x8] sm:$0xff]   ;;  %v4441_v43 = vld [vmem:[%s4961_s16 + $0x10] sm:$0xff]   ;;  %v1628_v45 = vld [vmem:[%s4966_s19 + $0x80] sm:$0xff] }
  0x22   : > { %4222 = vmatpush3.bf16.msra.mxu0 %v4436_v30  ;;  %v1629_v44 = vld [vmem:[%s4966_s19 + $0x88] sm:$0xff]  ;;  %v1631_v46 = vld [vmem:[%s4966_s19 + $0x98] sm:$0xff]  ;;  %v1630_v47 = vld [vmem:[%s4966_s19 + $0x90] sm:$0xff] }
  0x23   : > { %4223 = vmatprep.subr.bf16.mxu0 %v4437_v33  ;;  %v4442_v48 = vld [vmem:[%s4961_s16 + $0x18] sm:$0xff]   ;;  %v4443_v49 = vld [vmem:[%s4961_s16 + $0x20] sm:$0xff]   ;;  %v1633_v51 = vld [vmem:[%s4966_s19 + $0xa8] sm:$0xff] }
  0x24   : > { %1694 = vperm.xlu1 %4434, %v1617_v25   ;;  %1691 = vperm.xlu0 %4433, %v1616_v26   ;;  %v2094_v50 = vld [vmem:[#allocation3] sm:$0xff]  ;;  %v2095_v52 = vld [vmem:[#allocation3 + $0x8] sm:$0xff]  ;;  %v1635_v54 = vld [vmem:[%s4966_s19 + $0xb8] sm:$0xff] }
  0x25   : > { %4291 = vmatprep.subr.bf16.mxu1 %v2094_v50  ;;  %v1632_v53 = vld [vmem:[%s4966_s19 + $0xa0] sm:$0xff]  ;;  %v2096_v55 = vld [vmem:[#allocation3 + $0x10] sm:$0xff]  ;;  %v4444_v57 = vld [vmem:[%s4961_s16 + $0x28] sm:$0xff]  }
  0x26   : > { %4224 = vmatpush3.bf16.msra.mxu0 %v4437_v33  ;;  %4292 = vmatpush3.bf16.msra.mxu1 %v2094_v50  ;;  %v1634_v56 = vld [vmem:[%s4966_s19 + $0xb0] sm:$0xff]  ;;  %v2097_v59 = vld [vmem:[#allocation3 + $0x18] sm:$0xff]  ;;  %v1637_v60 = vld [vmem:[%s4966_s19 + $0xc8] sm:$0xff] }
  0x27   : > { %4225 = vmatprep.subr.bf16.mxu0 %v4438_v37  ;;  %4293 = vmatprep.subr.bf16.mxu1 %v2095_v52  ;;  %v4445_v58 = vld [vmem:[%s4961_s16 + $0x30] sm:$0xff]   ;;  %v1636_v61 = vld [vmem:[%s4966_s19 + $0xc0] sm:$0xff]  ;;  %v1639_v62 = vld [vmem:[%s4966_s19 + $0xd8] sm:$0xff] }
  0x28   : > { %1700 = vperm.xlu1 %4434, %v1619_v27   ;;  %1697 = vperm.xlu0 %4433, %v1618_v28   ;;  %v1638_v63 = vld [vmem:[%s4966_s19 + $0xd0] sm:$0xff]  ;;  %v4446_v0 = vld [vmem:[%s4961_s16 + $0x38] sm:$0xff]   ;;  %v4447_v1 = vld [vmem:[%s4961_s16 + $0x40] sm:$0xff]  }
  0x29   : > { %v1641_v2 = vld [vmem:[%s4966_s19 + $0xe8] sm:$0xff]  ;;  %v1640_v3 = vld [vmem:[%s4966_s19 + $0xe0] sm:$0xff]  ;;  %v1643_v4 = vld [vmem:[%s4966_s19 + $0xf8] sm:$0xff] }
  0x2a   : > { %4226 = vmatpush3.bf16.msra.mxu0 %v4438_v37  ;;  %4294 = vmatpush3.bf16.msra.mxu1 %v2095_v52  ;;  %v1642_v5 = vld [vmem:[%s4966_s19 + $0xf0] sm:$0xff]  ;;  %v4448_v6 = vld [vmem:[%s4961_s16 + $0x48] sm:$0xff]   ;;  %v1644_v9 = vld [vmem:[%s4966_s19 + $0x100] sm:$0xff] }
  0x2b   : > { %4295 = vmatprep.subr.bf16.mxu1 %v2096_v55  ;;  %v4449_v7 = vld [vmem:[%s4961_s16 + $0x50] sm:$0xff]   ;;  %v1645_v8 = vld [vmem:[%s4966_s19 + $0x108] sm:$0xff]  ;;  %v1647_v10 = vld [vmem:[%s4966_s19 + $0x118] sm:$0xff] }
  0x2c   : > { %1706 = vperm.xlu1 %4434, %v1621_v31   ;;  %1703 = vperm.xlu0 %4433, %v1620_v32   ;;  %v1646_v11 = vld [vmem:[%s4966_s19 + $0x110] sm:$0xff]  ;;  %v4450_v12 = vld [vmem:[%s4961_s16 + $0x58] sm:$0xff]   ;;  %v4451_v13 = vld [vmem:[%s4961_s16 + $0x60] sm:$0xff]  }
  0x2d   : > { %4228 = vmatmul.mubr.msk.bf16.vlgmr.msra.gmra.mrb[0].mxu0 %vm778_vm0, %v4440_v42  ;;  %v1649_v14 = vld [vmem:[%s4966_s19 + $0x128] sm:$0xff]  ;;  %v1648_v15 = vld [vmem:[%s4966_s19 + $0x120] sm:$0xff]  ;;  %v1651_v16 = vld [vmem:[%s4966_s19 + $0x138] sm:$0xff] }
  0x2e   : > { %4231 = vmatprep.mubr.msk.bf16.mxu0 %vm778_vm0, %v4441_v43  ;;  %4296 = vmatpush3.bf16.msra.mxu1 %v2096_v55  ;;  %v1650_v17 = vld [vmem:[%s4966_s19 + $0x130] sm:$0xff]  ;;  %v4452_v18 = vld [vmem:[%s4961_s16 + $0x68] sm:$0xff]   ;;  %v1652_v21 = vld [vmem:[%s4966_s19 + $0x140] sm:$0xff]  ;;  %v6609_v55 = vlaneseq }
  0x2f   : > { %4297 = vmatprep.subr.bf16.mxu1 %v2097_v59  ;;  %v4453_v19 = vld [vmem:[%s4961_s16 + $0x70] sm:$0xff]   ;;  %v1653_v20 = vld [vmem:[%s4966_s19 + $0x148] sm:$0xff]  ;;  %v1655_v22 = vld [vmem:[%s4966_s19 + $0x158] sm:$0xff] }
  0x30   : > { %1712 = vperm.xlu1 %4434, %v1623_v35   ;;  %1709 = vperm.xlu0 %4433, %v1622_v36   ;;  %v1654_v23 = vld [vmem:[%s4966_s19 + $0x150] sm:$0xff]  ;;  %v4454_v24 = vld [vmem:[%s4961_s16 + $0x78] sm:$0xff]   ;;  %v4455_v25 = vld [vmem:[%s4961_s16 + $0x80] sm:$0xff]  }
  0x31   : > { %v1657_v26 = vld [vmem:[%s4966_s19 + $0x168] sm:$0xff]  ;;  %v1656_v27 = vld [vmem:[%s4966_s19 + $0x160] sm:$0xff]  ;;  %v1659_v28 = vld [vmem:[%s4966_s19 + $0x178] sm:$0xff] }
  0x32   : > { %4298 = vmatpush3.bf16.msra.mxu1 %v2097_v59  ;;  %v1658_v29 = vld [vmem:[%s4966_s19 + $0x170] sm:$0xff]  ;;  %v4456_v30 = vld [vmem:[%s4961_s16 + $0x88] sm:$0xff]   ;;  %v1660_v33 = vld [vmem:[%s4966_s19 + $0x180] sm:$0xff] }
  0x33   : > { %v4457_v31 = vld [vmem:[%s4961_s16 + $0x90] sm:$0xff]   ;;  %v1661_v32 = vld [vmem:[%s4966_s19 + $0x188] sm:$0xff]  ;;  %v1663_v34 = vld [vmem:[%s4966_s19 + $0x198] sm:$0xff] }
  0x34   : > { %1718 = vperm.xlu1 %4434, %v1625_v38   ;;  %1715 = vperm.xlu0 %4433, %v1624_v39   ;;  %v1662_v35 = vld [vmem:[%s4966_s19 + $0x190] sm:$0xff]  ;;  %v4458_v36 = vld [vmem:[%s4961_s16 + $0x98] sm:$0xff]   ;;  %v4459_v37 = vld [vmem:[%s4961_s16 + $0xa0] sm:$0xff]  }
  0x35   : > { %4232 = vmatmul.mubr.msk.bf16.gmra.mrb[4].mxu0 %vm778_vm0, %v4442_v48  ;;  %v1665_v38 = vld [vmem:[%s4966_s19 + $0x1a8] sm:$0xff]  ;;  %v1664_v39 = vld [vmem:[%s4966_s19 + $0x1a0] sm:$0xff]  ;;  %v4461_v43 = vld [vmem:[%s4961_s16 + $0xb0] sm:$0xff]  }
  0x36   : > { %4235 = vmatprep.mubr.msk.bf16.mxu0 %vm778_vm0, %v4443_v49  ;;  %v4460_v42 = vld [vmem:[%s4961_s16 + $0xa8] sm:$0xff]   ;;  %v4462_v48 = vld [vmem:[%s4961_s16 + $0xb8] sm:$0xff]   ;;  %v4463_v49 = vld [vmem:[%s4961_s16 + $0xc0] sm:$0xff]  }
  0x37   : > { %v1673_v50 = vld [vmem:[%s4966_s19 + $0x1e8] sm:$0xff]  ;;  %v1675_v52 = vld [vmem:[%s4966_s19 + $0x1f8] sm:$0xff] }
  0x38   : > { %1724 = vperm.xlu1 %4434, %v1627_v40   ;;  %1721 = vperm.xlu0 %4433, %v1626_v41   ;;  %v1667_v40 = vld [vmem:[%s4966_s19 + $0x1b8] sm:$0xff]  ;;  %v1666_v41 = vld [vmem:[%s4966_s19 + $0x1b0] sm:$0xff] }
  0x3c   : > { %1730 = vperm.xlu1 %4434, %v1629_v44   ;;  %1727 = vperm.xlu0 %4433, %v1628_v45   ;;  %v1669_v44 = vld [vmem:[%s4966_s19 + $0x1c8] sm:$0xff]  ;;  %v1668_v45 = vld [vmem:[%s4966_s19 + $0x1c0] sm:$0xff] }
  0x3d   : > { %4236 = vmatmul.mubr.msk.bf16.gmra.mrb[8].mxu0 %vm778_vm0, %v4444_v57  ;;  %v5127_v57 = vand.u32 127, %v6609_v55 }
  0x3e   : > { %4239 = vmatprep.mubr.msk.bf16.mxu0 %vm778_vm0, %v4445_v58 }
  0x3f   : > { %6639 = vst [vmem:[#allocation7_spill] sm:$0xff] %v5127_v57 }
  0x40   : > { %1736 = vperm.xlu1 %4434, %v1631_v46   ;;  %1733 = vperm.xlu0 %4433, %v1630_v47   ;;  %v1671_v46 = vld [vmem:[%s4966_s19 + $0x1d8] sm:$0xff]  ;;  %v1670_v47 = vld [vmem:[%s4966_s19 + $0x1d0] sm:$0xff] }
  0x44   : > { %1742 = vperm.xlu1 %4434, %v1633_v51   ;;  %1739 = vperm.xlu0 %4433, %v1632_v53   ;;  %v1672_v51 = vld [vmem:[%s4966_s19 + $0x1e0] sm:$0xff]  ;;  %v1674_v53 = vld [vmem:[%s4966_s19 + $0x1f0] sm:$0xff] }
  0x45   : > { %4240 = vmatmul.mubr.msk.bf16.gmra.mrb[12].mxu0 %vm778_vm0, %v4446_v0  ;;  %v4867_v0 = vmov 0.0  }
  0x46   : > { %4243 = vmatprep.mubr.msk.bf16.mxu0 %vm778_vm0, %v4447_v1 }
  0x48   : > { %1748 = vperm.xlu1 %4434, %v1635_v54   ;;  %1745 = vperm.xlu0 %4433, %v1634_v56   ;;  %v4464_v54 = vld [vmem:[%s4961_s16 + $0xc8] sm:$0xff]   ;;  %v4465_v56 = vld [vmem:[%s4961_s16 + $0xd0] sm:$0xff]  }
  0x4c   : > { %1754 = vperm.xlu1 %4434, %v1637_v60   ;;  %1751 = vperm.xlu0 %4433, %v1636_v61   ;;  %v4466_v60 = vld [vmem:[%s4961_s16 + $0xd8] sm:$0xff]   ;;  %v4467_v61 = vld [vmem:[%s4961_s16 + $0xe0] sm:$0xff]  }
  0x4d   : > { %4244 = vmatmul.mubr.msk.bf16.gmra.mrb[16].mxu0 %vm778_vm0, %v4448_v6 }
  0x4e   : > { %4247 = vmatprep.mubr.msk.bf16.mxu0 %vm778_vm0, %v4449_v7 }
  0x50   : > { %1760 = vperm.xlu1 %4434, %v1639_v62   ;;  %1757 = vperm.xlu0 %4433, %v1638_v63  }
  0x54   : > { %1766 = vperm.xlu1 %4434, %v1641_v2   ;;  %1763 = vperm.xlu0 %4433, %v1640_v3  }
  0x55   : > { %4248 = vmatmul.mubr.msk.bf16.gmra.mrb[20].mxu0 %vm778_vm0, %v4450_v12 }
  0x56   : > { %4251 = vmatprep.mubr.msk.bf16.mxu0 %vm778_vm0, %v4451_v13  ;;  %v4469_v13 = vld [vmem:[%s4961_s16 + $0xf0] sm:$0xff]  }
  0x58   : > { %1772 = vperm.xlu1 %4434, %v1643_v4   ;;  %1769 = vperm.xlu0 %4433, %v1642_v5  }
  0x5c   : > { %1778 = vperm.xlu1 %4434, %v1645_v8   ;;  %1775 = vperm.xlu0 %4433, %v1644_v9  }
  0x5d   : > { %4252 = vmatmul.mubr.msk.bf16.gmra.mrb[24].mxu0 %vm778_vm0, %v4452_v18 }
  0x5e   : > { %4255 = vmatprep.mubr.msk.bf16.mxu0 %vm778_vm0, %v4453_v19 }
  0x60   : > { %1784 = vperm.xlu1 %4434, %v1647_v10   ;;  %1781 = vperm.xlu0 %4433, %v1646_v11   ;;  %v4468_v11 = vld [vmem:[%s4961_s16 + $0xe8] sm:$0xff]  }
  0x64   : > { %1790 = vperm.xlu1 %4434, %v1649_v14   ;;  %1787 = vperm.xlu0 %4433, %v1648_v15  }
  0x65   : > { %4256 = vmatmul.mubr.msk.bf16.gmra.mrb[28].mxu0 %vm778_vm0, %v4454_v24 }
  0x66   : > { %4259 = vmatprep.mubr.msk.bf16.mxu0 %vm778_vm0, %v4455_v25 }
  0x68   : > { %1796 = vperm.xlu1 %4434, %v1651_v16   ;;  %1793 = vperm.xlu0 %4433, %v1650_v17  }
  0x6c   : > { %1802 = vperm.xlu1 %4434, %v1653_v20   ;;  %1799 = vperm.xlu0 %4433, %v1652_v21  }
  0x6d   : > { %4260 = vmatmul.mubr.msk.bf16.gmra.mrb[32].mxu0 %vm778_vm0, %v4456_v30 }
  0x6e   : > { %4263 = vmatprep.mubr.msk.bf16.mxu0 %vm778_vm0, %v4457_v31 }
  0x70   : > { %1808 = vperm.xlu1 %4434, %v1655_v22   ;;  %1805 = vperm.xlu0 %4433, %v1654_v23   ;;  %v4470_v23 = vld [vmem:[%s4961_s16 + $0xf8] sm:$0xff]  }
  0x74   : > { %1814 = vperm.xlu1 %4434, %v1657_v26   ;;  %1811 = vperm.xlu0 %4433, %v1656_v27  }
  0x75   : > { %4264 = vmatmul.mubr.msk.bf16.gmra.mrb[36].mxu0 %vm778_vm0, %v4458_v36 }
  0x76   : > { %4267 = vmatprep.mubr.msk.bf16.mxu0 %vm778_vm0, %v4459_v37 }
  0x78   : > { %1820 = vperm.xlu1 %4434, %v1659_v28   ;;  %1817 = vperm.xlu0 %4433, %v1658_v29  }
  0x7c   : > { %1826 = vperm.xlu1 %4434, %v1661_v32   ;;  %1823 = vperm.xlu0 %4433, %v1660_v33  }
  0x7d   : > { %4268 = vmatmul.mubr.msk.bf16.gmra.mrb[40].mxu0 %vm778_vm0, %v4460_v42 }
  0x7e   : > { %4271 = vmatprep.mubr.msk.bf16.mxu0 %vm778_vm0, %v4461_v43 }
  0x80   : > { %1832 = vperm.xlu1 %4434, %v1663_v34   ;;  %1829 = vperm.xlu0 %4433, %v1662_v35  }
  0x84   : > { %1838 = vperm.xlu1 %4434, %v1665_v38   ;;  %1835 = vperm.xlu0 %4433, %v1664_v39  }
  0x85   : > { %4272 = vmatmul.mubr.msk.bf16.gmra.mrb[44].mxu0 %vm778_vm0, %v4462_v48 }
  0x86   : > { %4275 = vmatprep.mubr.msk.bf16.mxu0 %vm778_vm0, %v4463_v49 }
  0x88   : > { %1844 = vperm.xlu1 %4434, %v1667_v40   ;;  %1841 = vperm.xlu0 %4433, %v1666_v41  }
  0x8c   : > { %1850 = vperm.xlu1 %4434, %v1669_v44   ;;  %1847 = vperm.xlu0 %4433, %v1668_v45  }
  0x8d   : > { %4276 = vmatmul.mubr.msk.bf16.gmra.mrb[48].mxu0 %vm778_vm0, %v4464_v54 }
  0x8e   : > { %4279 = vmatprep.mubr.msk.bf16.mxu0 %vm778_vm0, %v4465_v56 }
  0x90   : > { %1856 = vperm.xlu1 %4434, %v1671_v46   ;;  %1853 = vperm.xlu0 %4433, %v1670_v47  }
  0x94   : > { %1862 = vperm.xlu1 %4434, %v1673_v50   ;;  %1859 = vperm.xlu0 %4433, %v1672_v51  }
  0x95   : > { %4280 = vmatmul.mubr.msk.bf16.gmra.mrb[52].mxu0 %vm778_vm0, %v4466_v60 }
  0x96   : > { %4283 = vmatprep.mubr.msk.bf16.mxu0 %vm778_vm0, %v4467_v61 }
  0x98   : > { %1868 = vperm.xlu1 %4434, %v1675_v52   ;;  %1865 = vperm.xlu0 %4433, %v1674_v53  }
  0x9b   : > { %v1686_v58 = vpop.permute.xlu1 %1685  ;;  %v1680_v59 = vpop.permute.xlu0 %1679 }
  0x9c   : > { %vm1872_vm1 = vcmp.eq.s32.totalorder %v1686_v58, %v5127_v57  ;;  %vm1870_vm2 = vcmp.eq.s32.totalorder %v1680_v59, %v5127_v57 }
  0x9d   : > { %v3836_v1 = vsel %vm1872_vm1, 1.0, %v4867_v0  ;;  %v3834_v2 = vsel %vm1870_vm2, 1.0, %v4867_v0  ;;  %4284 = vmatmul.mubr.msk.bf16.gmra.mrb[56].mxu0 %vm778_vm0, %v4468_v11 }
  0x9e   : > { %4287 = vmatprep.mubr.msk.bf16.mxu0 %vm778_vm0, %v4469_v13 }
  0x9f   : > { %v1689_v62 = vpop.permute.xlu1 %1688  ;;  %v1683_v63 = vpop.permute.xlu0 %1682 }
  0xa0   : > { %vm1873_vm3 = vcmp.eq.s32.totalorder %v1689_v62, %v5127_v57  ;;  %vm1871_vm4 = vcmp.eq.s32.totalorder %v1683_v63, %v5127_v57 }
  0xa1   : > { %v3837_v3 = vsel %vm1873_vm3, 1.0, %v4867_v0  ;;  %v3835_v4 = vsel %vm1871_vm4, 1.0, %v4867_v0 }
  0xa2   : > { %v2063_v5 = vpack.c.bf16 %v3837_v3, %v3836_v1  ;;  %v2062_v6 = vpack.c.bf16 %v3835_v4, %v3834_v2 }
  0xa3   : > { %v1695_v7 = vpop.permute.xlu1 %1694  ;;  %v1692_v8 = vpop.permute.xlu0 %1691 }
  0xa4   : > { %vm1875_vm5 = vcmp.eq.s32.totalorder %v1695_v7, %v5127_v57  ;;  %vm1874_vm6 = vcmp.eq.s32.totalorder %v1692_v8, %v5127_v57  ;;  %4299 = vmatprep.mubr.msk.bf16.mxu1 %vm778_vm0, %v2062_v6 }
  0xa5   : > { %v3839_v9 = vsel %vm1875_vm5, 1.0, %v4867_v0  ;;  %v3838_v10 = vsel %vm1874_vm6, 1.0, %v4867_v0  ;;  %4300 = vmatmul.mubr.msk.bf16.vlgmr.msra.gmra.mrb[0].mxu1 %vm778_vm0, %v2063_v5  ;;  %4288 = vmatmul.mubr.msk.bf16.gmra.mrb[60].mxu0 %vm778_vm0, %v4470_v23 }
  0xa6   : > { %v2064_v12 = vpack.c.bf16 %v3839_v9, %v3838_v10 }
  0xa7   : > { %v1701_v14 = vpop.permute.xlu1 %1700  ;;  %v1698_v15 = vpop.permute.xlu0 %1697 }
  0xa8   : > { %vm1877_vm7 = vcmp.eq.s32.totalorder %v1701_v14, %v5127_v57  ;;  %vm1876_vm8 = vcmp.eq.s32.totalorder %v1698_v15, %v5127_v57  ;;  %4303 = vmatprep.mubr.msk.bf16.mxu1 %vm778_vm0, %v2064_v12 }
  0xa9   : > { %v3841_v16 = vsel %vm1877_vm7, 1.0, %v4867_v0  ;;  %v3840_v17 = vsel %vm1876_vm8, 1.0, %v4867_v0 }
  0xaa   : > { %v2065_v18 = vpack.c.bf16 %v3841_v16, %v3840_v17 }
  0xab   : > { %v1707_v19 = vpop.permute.xlu1 %1706  ;;  %v1704_v20 = vpop.permute.xlu0 %1703 }
  0xac   : > { %vm1879_vm9 = vcmp.eq.s32.totalorder %v1707_v19, %v5127_v57  ;;  %vm1878_vm10 = vcmp.eq.s32.totalorder %v1704_v20, %v5127_v57 }
  0xad   : > { %v3843_v21 = vsel %vm1879_vm9, 1.0, %v4867_v0  ;;  %v3842_v22 = vsel %vm1878_vm10, 1.0, %v4867_v0  ;;  %4304 = vmatmul.mubr.msk.bf16.gmra.mrb[4].mxu1 %vm778_vm0, %v2065_v18 }
  0xae   : > { %v2066_v24 = vpack.c.bf16 %v3843_v21, %v3842_v22 }
  0xaf   : > { %v1713_v25 = vpop.permute.xlu1 %1712  ;;  %v1710_v26 = vpop.permute.xlu0 %1709 }
  0xb0   : > { %vm1881_vm11 = vcmp.eq.s32.totalorder %v1713_v25, %v5127_v57  ;;  %vm1880_vm12 = vcmp.eq.s32.totalorder %v1710_v26, %v5127_v57  ;;  %4307 = vmatprep.mubr.msk.bf16.mxu1 %vm778_vm0, %v2066_v24 }
  0xb1   : > { %v3845_v27 = vsel %vm1881_vm11, 1.0, %v4867_v0  ;;  %v3844_v28 = vsel %vm1880_vm12, 1.0, %v4867_v0 }
  0xb2   : > { %v2067_v29 = vpack.c.bf16 %v3845_v27, %v3844_v28 }
  0xb3   : > { %v1719_v30 = vpop.permute.xlu1 %1718  ;;  %v1716_v31 = vpop.permute.xlu0 %1715 }
  0xb4   : > { %vm1883_vm13 = vcmp.eq.s32.totalorder %v1719_v30, %v5127_v57  ;;  %vm1882_vm14 = vcmp.eq.s32.totalorder %v1716_v31, %v5127_v57 }
  0xb5   : > { %v3847_v32 = vsel %vm1883_vm13, 1.0, %v4867_v0  ;;  %v3846_v33 = vsel %vm1882_vm14, 1.0, %v4867_v0  ;;  %4308 = vmatmul.mubr.msk.bf16.gmra.mrb[8].mxu1 %vm778_vm0, %v2067_v29 }
  0xb6   : > { %v2068_v34 = vpack.c.bf16 %v3847_v32, %v3846_v33 }
  0xb7   : > { %v1725_v35 = vpop.permute.xlu1 %1724  ;;  %v1722_v36 = vpop.permute.xlu0 %1721 }
  0xb8   : > { %vm1885_vm15 = vcmp.eq.s32.totalorder %v1725_v35, %v5127_v57  ;;  %vm1884_vm1 = vcmp.eq.s32.totalorder %v1722_v36, %v5127_v57  ;;  %4311 = vmatprep.mubr.msk.bf16.mxu1 %vm778_vm0, %v2068_v34 }
  0xb9   : > { %v3849_v37 = vsel %vm1885_vm15, 1.0, %v4867_v0  ;;  %v3848_v38 = vsel %vm1884_vm1, 1.0, %v4867_v0 }
  0xba   : > { %v2069_v39 = vpack.c.bf16 %v3849_v37, %v3848_v38 }
  0xbb   : > { %v1731_v40 = vpop.permute.xlu1 %1730  ;;  %v1728_v41 = vpop.permute.xlu0 %1727 }
  0xbc   : > { %vm1887_vm2 = vcmp.eq.s32.totalorder %v1731_v40, %v5127_v57  ;;  %vm1886_vm3 = vcmp.eq.s32.totalorder %v1728_v41, %v5127_v57 }
  0xbd   : > { %v3851_v42 = vsel %vm1887_vm2, 1.0, %v4867_v0  ;;  %v3850_v43 = vsel %vm1886_vm3, 1.0, %v4867_v0  ;;  %4312 = vmatmul.mubr.msk.bf16.gmra.mrb[12].mxu1 %vm778_vm0, %v2069_v39 }
  0xbe   : > { %v2070_v44 = vpack.c.bf16 %v3851_v42, %v3850_v43 }
  0xbf   : > { %v1737_v45 = vpop.permute.xlu1 %1736  ;;  %v1734_v46 = vpop.permute.xlu0 %1733 }
  0xc0   : > { %vm1889_vm4 = vcmp.eq.s32.totalorder %v1737_v45, %v5127_v57  ;;  %vm1888_vm5 = vcmp.eq.s32.totalorder %v1734_v46, %v5127_v57  ;;  %4315 = vmatprep.mubr.msk.bf16.mxu1 %vm778_vm0, %v2070_v44 }
  0xc1   : > { %v3853_v47 = vsel %vm1889_vm4, 1.0, %v4867_v0  ;;  %v3852_v48 = vsel %vm1888_vm5, 1.0, %v4867_v0 }
  0xc2   : > { %v2071_v49 = vpack.c.bf16 %v3853_v47, %v3852_v48 }
  0xc3   : > { %v1743_v50 = vpop.permute.xlu1 %1742  ;;  %v1740_v51 = vpop.permute.xlu0 %1739 }
  0xc4   : > { %vm1891_vm6 = vcmp.eq.s32.totalorder %v1743_v50, %v5127_v57  ;;  %vm1890_vm7 = vcmp.eq.s32.totalorder %v1740_v51, %v5127_v57 }
  0xc5   : > { %v3855_v52 = vsel %vm1891_vm6, 1.0, %v4867_v0  ;;  %v3854_v53 = vsel %vm1890_vm7, 1.0, %v4867_v0  ;;  %4316 = vmatmul.mubr.msk.bf16.gmra.mrb[16].mxu1 %vm778_vm0, %v2071_v49 }
  0xc6   : > { %v2072_v54 = vpack.c.bf16 %v3855_v52, %v3854_v53 }
  0xc7   : > { %v1749_v56 = vpop.permute.xlu1 %1748  ;;  %v1746_v58 = vpop.permute.xlu0 %1745 }
  0xc8   : > { %vm1893_vm8 = vcmp.eq.s32.totalorder %v1749_v56, %v5127_v57  ;;  %vm1892_vm9 = vcmp.eq.s32.totalorder %v1746_v58, %v5127_v57  ;;  %4319 = vmatprep.mubr.msk.bf16.mxu1 %vm778_vm0, %v2072_v54 }
  0xc9   : > { %v3857_v59 = vsel %vm1893_vm8, 1.0, %v4867_v0  ;;  %v3856_v60 = vsel %vm1892_vm9, 1.0, %v4867_v0 }
  0xca   : > { %v2073_v61 = vpack.c.bf16 %v3857_v59, %v3856_v60 }
  0xcb   : > { %v1755_v62 = vpop.permute.xlu1 %1754  ;;  %v1752_v63 = vpop.permute.xlu0 %1751 }
  0xcc   : > { %vm1895_vm10 = vcmp.eq.s32.totalorder %v1755_v62, %v5127_v57  ;;  %vm1894_vm11 = vcmp.eq.s32.totalorder %v1752_v63, %v5127_v57 }
  0xcd   : > { %v3859_v1 = vsel %vm1895_vm10, 1.0, %v4867_v0  ;;  %v3858_v2 = vsel %vm1894_vm11, 1.0, %v4867_v0  ;;  %4320 = vmatmul.mubr.msk.bf16.gmra.mrb[20].mxu1 %vm778_vm0, %v2073_v61 }
  0xce   : > { %v2074_v3 = vpack.c.bf16 %v3859_v1, %v3858_v2 }
  0xcf   : > { %v1761_v4 = vpop.permute.xlu1 %1760  ;;  %v1758_v5 = vpop.permute.xlu0 %1757 }
  0xd0   : > { %vm1897_vm12 = vcmp.eq.s32.totalorder %v1761_v4, %v5127_v57  ;;  %vm1896_vm13 = vcmp.eq.s32.totalorder %v1758_v5, %v5127_v57  ;;  %4323 = vmatprep.mubr.msk.bf16.mxu1 %vm778_vm0, %v2074_v3 }
  0xd1   : > { %v3861_v6 = vsel %vm1897_vm12, 1.0, %v4867_v0  ;;  %v3860_v7 = vsel %vm1896_vm13, 1.0, %v4867_v0 }
  0xd2   : > { %v2075_v8 = vpack.c.bf16 %v3861_v6, %v3860_v7 }
  0xd3   : > { %v1767_v9 = vpop.permute.xlu1 %1766  ;;  %v1764_v10 = vpop.permute.xlu0 %1763 }
  0xd4   : > { %vm1899_vm14 = vcmp.eq.s32.totalorder %v1767_v9, %v5127_v57  ;;  %vm1898_vm15 = vcmp.eq.s32.totalorder %v1764_v10, %v5127_v57 }
  0xd5   : > { %v3863_v11 = vsel %vm1899_vm14, 1.0, %v4867_v0  ;;  %v3862_v12 = vsel %vm1898_vm15, 1.0, %v4867_v0  ;;  %4324 = vmatmul.mubr.msk.bf16.gmra.mrb[24].mxu1 %vm778_vm0, %v2075_v8 }
  0xd6   : > { %v2076_v13 = vpack.c.bf16 %v3863_v11, %v3862_v12 }
  0xd7   : > { %v1773_v14 = vpop.permute.xlu1 %1772  ;;  %v1770_v15 = vpop.permute.xlu0 %1769 }
  0xd8   : > { %vm1901_vm1 = vcmp.eq.s32.totalorder %v1773_v14, %v5127_v57  ;;  %vm1900_vm2 = vcmp.eq.s32.totalorder %v1770_v15, %v5127_v57  ;;  %4327 = vmatprep.mubr.msk.bf16.mxu1 %vm778_vm0, %v2076_v13 }
  0xd9   : > { %v3865_v16 = vsel %vm1901_vm1, 1.0, %v4867_v0  ;;  %v3864_v17 = vsel %vm1900_vm2, 1.0, %v4867_v0 }
  0xda   : > { %v2077_v18 = vpack.c.bf16 %v3865_v16, %v3864_v17 }
  0xdb   : > { %v1779_v19 = vpop.permute.xlu1 %1778  ;;  %v1776_v20 = vpop.permute.xlu0 %1775 }
  0xdc   : > { %vm1903_vm3 = vcmp.eq.s32.totalorder %v1779_v19, %v5127_v57  ;;  %vm1902_vm4 = vcmp.eq.s32.totalorder %v1776_v20, %v5127_v57 }
  0xdd   : > { %v3867_v21 = vsel %vm1903_vm3, 1.0, %v4867_v0  ;;  %v3866_v22 = vsel %vm1902_vm4, 1.0, %v4867_v0  ;;  %4328 = vmatmul.mubr.msk.bf16.gmra.mrb[28].mxu1 %vm778_vm0, %v2077_v18 }
  0xde   : > { %v2078_v23 = vpack.c.bf16 %v3867_v21, %v3866_v22 }
  0xdf   : > { %v1785_v24 = vpop.permute.xlu1 %1784  ;;  %v1782_v25 = vpop.permute.xlu0 %1781 }
  0xe0   : > { %vm1905_vm5 = vcmp.eq.s32.totalorder %v1785_v24, %v5127_v57  ;;  %vm1904_vm6 = vcmp.eq.s32.totalorder %v1782_v25, %v5127_v57  ;;  %4331 = vmatprep.mubr.msk.bf16.mxu1 %vm778_vm0, %v2078_v23 }
  0xe1   : > { %v3869_v26 = vsel %vm1905_vm5, 1.0, %v4867_v0  ;;  %v3868_v27 = vsel %vm1904_vm6, 1.0, %v4867_v0 }
  0xe2   : > { %v2079_v28 = vpack.c.bf16 %v3869_v26, %v3868_v27 }
  0xe3   : > { %v1791_v29 = vpop.permute.xlu1 %1790  ;;  %v1788_v30 = vpop.permute.xlu0 %1787 }
  0xe4   : > { %vm1907_vm7 = vcmp.eq.s32.totalorder %v1791_v29, %v5127_v57  ;;  %vm1906_vm8 = vcmp.eq.s32.totalorder %v1788_v30, %v5127_v57 }
  0xe5   : > { %v3871_v31 = vsel %vm1907_vm7, 1.0, %v4867_v0  ;;  %v3870_v32 = vsel %vm1906_vm8, 1.0, %v4867_v0  ;;  %4332 = vmatmul.mubr.msk.bf16.gmra.mrb[32].mxu1 %vm778_vm0, %v2079_v28 }
  0xe6   : > { %v2080_v33 = vpack.c.bf16 %v3871_v31, %v3870_v32 }
  0xe7   : > { %v1797_v34 = vpop.permute.xlu1 %1796  ;;  %v1794_v35 = vpop.permute.xlu0 %1793 }
  0xe8   : > { %vm1909_vm9 = vcmp.eq.s32.totalorder %v1797_v34, %v5127_v57  ;;  %vm1908_vm10 = vcmp.eq.s32.totalorder %v1794_v35, %v5127_v57  ;;  %4335 = vmatprep.mubr.msk.bf16.mxu1 %vm778_vm0, %v2080_v33 }
  0xe9   : > { %v3873_v36 = vsel %vm1909_vm9, 1.0, %v4867_v0  ;;  %v3872_v37 = vsel %vm1908_vm10, 1.0, %v4867_v0 }
  0xea   : > { %v2081_v38 = vpack.c.bf16 %v3873_v36, %v3872_v37 }
  0xeb   : > { %v1803_v39 = vpop.permute.xlu1 %1802  ;;  %v1800_v40 = vpop.permute.xlu0 %1799 }
  0xec   : > { %vm1911_vm11 = vcmp.eq.s32.totalorder %v1803_v39, %v5127_v57  ;;  %vm1910_vm12 = vcmp.eq.s32.totalorder %v1800_v40, %v5127_v57 }
  0xed   : > { %v3875_v41 = vsel %vm1911_vm11, 1.0, %v4867_v0  ;;  %v3874_v42 = vsel %vm1910_vm12, 1.0, %v4867_v0  ;;  %4336 = vmatmul.mubr.msk.bf16.gmra.mrb[36].mxu1 %vm778_vm0, %v2081_v38 }
  0xee   : > { %v2082_v43 = vpack.c.bf16 %v3875_v41, %v3874_v42 }
  0xef   : > { %v1809_v44 = vpop.permute.xlu1 %1808  ;;  %v1806_v45 = vpop.permute.xlu0 %1805 }
  0xf0   : > { %vm1913_vm13 = vcmp.eq.s32.totalorder %v1809_v44, %v5127_v57  ;;  %vm1912_vm14 = vcmp.eq.s32.totalorder %v1806_v45, %v5127_v57  ;;  %4339 = vmatprep.mubr.msk.bf16.mxu1 %vm778_vm0, %v2082_v43 }
  0xf1   : > { %v3877_v46 = vsel %vm1913_vm13, 1.0, %v4867_v0  ;;  %v3876_v47 = vsel %vm1912_vm14, 1.0, %v4867_v0 }
  0xf2   : > { %v2083_v48 = vpack.c.bf16 %v3877_v46, %v3876_v47 }
  0xf3   : > { %v1815_v49 = vpop.permute.xlu1 %1814  ;;  %v1812_v50 = vpop.permute.xlu0 %1811 }
  0xf4   : > { %vm1915_vm15 = vcmp.eq.s32.totalorder %v1815_v49, %v5127_v57  ;;  %vm1914_vm1 = vcmp.eq.s32.totalorder %v1812_v50, %v5127_v57 }
  0xf5   : > { %v3879_v51 = vsel %vm1915_vm15, 1.0, %v4867_v0  ;;  %v3878_v52 = vsel %vm1914_vm1, 1.0, %v4867_v0  ;;  %4340 = vmatmul.mubr.msk.bf16.gmra.mrb[40].mxu1 %vm778_vm0, %v2083_v48 }
  0xf6   : > { %v2084_v53 = vpack.c.bf16 %v3879_v51, %v3878_v52 }
  0xf7   : > { %v1821_v54 = vpop.permute.xlu1 %1820  ;;  %v1818_v56 = vpop.permute.xlu0 %1817 }
  0xf8   : > { %vm1917_vm2 = vcmp.eq.s32.totalorder %v1821_v54, %v5127_v57  ;;  %vm1916_vm3 = vcmp.eq.s32.totalorder %v1818_v56, %v5127_v57  ;;  %4343 = vmatprep.mubr.msk.bf16.mxu1 %vm778_vm0, %v2084_v53 }
  0xf9   : > { %v3881_v58 = vsel %vm1917_vm2, 1.0, %v4867_v0  ;;  %v3880_v59 = vsel %vm1916_vm3, 1.0, %v4867_v0 }
  0xfa   : > { %v2085_v60 = vpack.c.bf16 %v3881_v58, %v3880_v59 }
  0xfb   : > { %v1827_v61 = vpop.permute.xlu1 %1826  ;;  %v1824_v62 = vpop.permute.xlu0 %1823 }
  0xfc   : > { %vm1919_vm4 = vcmp.eq.s32.totalorder %v1827_v61, %v5127_v57  ;;  %vm1918_vm5 = vcmp.eq.s32.totalorder %v1824_v62, %v5127_v57 }
  0xfd   : > { %v3883_v63 = vsel %vm1919_vm4, 1.0, %v4867_v0  ;;  %v3882_v1 = vsel %vm1918_vm5, 1.0, %v4867_v0  ;;  %4344 = vmatmul.mubr.msk.bf16.gmra.mrb[44].mxu1 %vm778_vm0, %v2085_v60  ;;  %v5323_v60 = vld [vmem:[%s6601_s6] ss:$0 sm:$0xff] }
  0xfe   : > { %v2086_v2 = vpack.c.bf16 %v3883_v63, %v3882_v1 }
  0xff   : > { %v1833_v3 = vpop.permute.xlu1 %1832  ;;  %v1830_v4 = vpop.permute.xlu0 %1829 }
 0x100   : > { %vm1921_vm6 = vcmp.eq.s32.totalorder %v1833_v3, %v5127_v57  ;;  %vm1920_vm7 = vcmp.eq.s32.totalorder %v1830_v4, %v5127_v57  ;;  %4347 = vmatprep.mubr.msk.bf16.mxu1 %vm778_vm0, %v2086_v2  ;;  %v4229_v20 = vpop.f32.mrb[0].mxu0 }
 0x101   : > { %v3885_v5 = vsel %vm1921_vm6, 1.0, %v4867_v0  ;;  %v3884_v6 = vsel %vm1920_vm7, 1.0, %v4867_v0  ;;  %v909_v23 = vpop.f32.mrb[1].mxu0  ;;  %v5332_v1 = vadd.f32 %v4229_v20, %v5323_v60 }
 0x102   : > { %v2087_v7 = vpack.c.bf16 %v3885_v5, %v3884_v6  ;;  %v4230_v25 = vpop.f32.mrb[2].mxu0  ;;  %v5335_v2 = vadd.f32 %v5323_v60, %v909_v23 }
 0x103   : > { %v1839_v8 = vpop.permute.xlu1 %1838  ;;  %v1836_v9 = vpop.permute.xlu0 %1835  ;;  %v5338_v3 = vadd.f32 %v4230_v25, %v5323_v60  ;;  %v3772_v5 = vmul.f32 -1.442695, %v5332_v1 }
 0x104   : > { %vm1923_vm8 = vcmp.eq.s32.totalorder %v1839_v8, %v5127_v57  ;;  %vm1922_vm9 = vcmp.eq.s32.totalorder %v1836_v9, %v5127_v57  ;;  %v912_v28 = vpop.f32.mrb[3].mxu0  ;;  %v3770_v8 = vmul.f32 -1.442695, %v5335_v2 }
 0x105   : > { %v3887_v10 = vsel %vm1923_vm8, 1.0, %v4867_v0  ;;  %v3886_v11 = vsel %vm1922_vm9, 1.0, %v4867_v0  ;;  %4348 = vmatmul.mubr.msk.bf16.gmra.mrb[48].mxu1 %vm778_vm0, %v2087_v7  ;;  %v5341_v4 = vadd.f32 %v5323_v60, %v912_v28  ;;  %4471 = vpow2.f32 %v3772_v5 }
 0x106   : > { %v2088_v12 = vpack.c.bf16 %v3887_v10, %v3886_v11  ;;  %v3773_v10 = vmul.f32 -1.442695, %v5338_v3  ;;  %4473 = vpow2.f32 %v3770_v8 }
 0x107   : > { %v1845_v13 = vpop.permute.xlu1 %1844  ;;  %v1842_v14 = vpop.permute.xlu0 %1841 }
 0x108   : > { %vm1925_vm10 = vcmp.eq.s32.totalorder %v1845_v13, %v5127_v57  ;;  %vm1924_vm11 = vcmp.eq.s32.totalorder %v1842_v14, %v5127_v57  ;;  %4351 = vmatprep.mubr.msk.bf16.mxu1 %vm778_vm0, %v2088_v12  ;;  %v4233_v34 = vpop.f32.mrb[4].mxu0  ;;  %v3771_v12 = vmul.f32 -1.442695, %v5341_v4  ;;  %4475 = vpow2.f32 %v3773_v10 }
 0x109   : > { %v3889_v15 = vsel %vm1925_vm10, 1.0, %v4867_v0  ;;  %v3888_v16 = vsel %vm1924_vm11, 1.0, %v4867_v0  ;;  %v925_v37 = vpop.f32.mrb[5].mxu0  ;;  %v5345_v6 = vadd.f32 %v4233_v34, %v5323_v60 }
 0x10a   : > { %v2089_v17 = vpack.c.bf16 %v3889_v15, %v3888_v16  ;;  %v4234_v39 = vpop.f32.mrb[6].mxu0  ;;  %v5360_v15 = vadd.f32 %v5323_v60, %v925_v37  ;;  %4477 = vpow2.f32 %v3771_v12 }
 0x10b   : > { %v1851_v18 = vpop.permute.xlu1 %1850  ;;  %v1848_v19 = vpop.permute.xlu0 %1847  ;;  %v3776_v14 = vmul.f32 -1.442695, %v5345_v6  ;;  %v5363_v16 = vadd.f32 %v4234_v39, %v5323_v60 }
 0x10c   : > { %vm1927_vm12 = vcmp.eq.s32.totalorder %v1851_v18, %v5127_v57  ;;  %vm1926_vm13 = vcmp.eq.s32.totalorder %v1848_v19, %v5127_v57  ;;  %v928_v42 = vpop.f32.mrb[7].mxu0 }
 0x10d   : > { %v3891_v21 = vsel %vm1927_vm12, 1.0, %v4867_v0  ;;  %v3890_v22 = vsel %vm1926_vm13, 1.0, %v4867_v0  ;;  %4352 = vmatmul.mubr.msk.bf16.gmra.mrb[52].mxu1 %vm778_vm0, %v2089_v17  ;;  %4479 = vpow2.f32 %v3776_v14  ;;  %v3774_v17 = vmul.f32 -1.442695, %v5360_v15 }
 0x10e   : > { %v2090_v24 = vpack.c.bf16 %v3891_v21, %v3890_v22  ;;  %v5367_v18 = vadd.f32 %v5323_v60, %v928_v42  ;;  %v3777_v20 = vmul.f32 -1.442695, %v5363_v16 }
 0x10f   : > { %v1857_v26 = vpop.permute.xlu1 %1856  ;;  %v1854_v27 = vpop.permute.xlu0 %1853  ;;  %4481 = vpow2.f32 %v3774_v17 }
 0x110   : > { %vm1929_vm14 = vcmp.eq.s32.totalorder %v1857_v26, %v5127_v57  ;;  %vm1928_vm15 = vcmp.eq.s32.totalorder %v1854_v27, %v5127_v57  ;;  %4355 = vmatprep.mubr.msk.bf16.mxu1 %vm778_vm0, %v2090_v24  ;;  %v4237_v46 = vpop.f32.mrb[8].mxu0  ;;  %v3775_v27 = vmul.f32 -1.442695, %v5367_v18  ;;  %4483 = vpow2.f32 %v3777_v20 }
 0x111   : > { %v3893_v29 = vsel %vm1929_vm14, 1.0, %v4867_v0  ;;  %v3892_v30 = vsel %vm1928_vm15, 1.0, %v4867_v0  ;;  %v941_v47 = vpop.f32.mrb[9].mxu0  ;;  %v5373_v21 = vadd.f32 %v4237_v46, %v5323_v60 }
 0x112   : > { %v2091_v31 = vpack.c.bf16 %v3893_v29, %v3892_v30  ;;  %v4238_v48 = vpop.f32.mrb[10].mxu0  ;;  %v5378_v23 = vadd.f32 %v5323_v60, %v941_v47  ;;  %v4472_v29 = vpop.eup %4471  ;;  %4485 = vpow2.f32 %v3775_v27 }
 0x113   : > { %v1863_v32 = vpop.permute.xlu1 %1862  ;;  %v1860_v33 = vpop.permute.xlu0 %1859  ;;  %v5383_v25 = vadd.f32 %v4238_v48, %v5323_v60  ;;  %v3780_v28 = vmul.f32 -1.442695, %v5373_v21 }
 0x114   : > { %vm1931_vm1 = vcmp.eq.s32.totalorder %v1863_v32, %v5127_v57  ;;  %vm1930_vm2 = vcmp.eq.s32.totalorder %v1860_v33, %v5127_v57  ;;  %v5300_v49 = vpop.f32.mrb[11].mxu0  ;;  %v3778_v30 = vmul.f32 -1.442695, %v5378_v23 }
 0x115   : > { %v3895_v35 = vsel %vm1931_vm1, 1.0, %v4867_v0  ;;  %v3894_v36 = vsel %vm1930_vm2, 1.0, %v4867_v0  ;;  %4356 = vmatmul.mubr.msk.bf16.gmra.mrb[56].mxu1 %vm778_vm0, %v2091_v31  ;;  %v4474_v31 = vpop.eup %4473  ;;  %v3781_v32 = vmul.f32 -1.442695, %v5383_v25  ;;  %4487 = vpow2.f32 %v3780_v28 }
 0x116   : > { %v2092_v38 = vpack.c.bf16 %v3895_v35, %v3894_v36  ;;  %v4476_v33 = vpop.eup %4475  ;;  %v1358_v36 = vadd.f32 1.0, %v4472_v29  ;;  %v1356_v39 = vadd.f32 1.0, %v4474_v31  ;;  %4489 = vpow2.f32 %v3778_v30 }
 0x117   : > { %v1869_v40 = vpop.permute.xlu1 %1868  ;;  %v1866_v41 = vpop.permute.xlu0 %1865  ;;  %v1359_v42 = vadd.f32 1.0, %v4476_v33  ;;  %4491 = vpow2.f32 %v3781_v32 }
 0x118   : > { %vm1933_vm3 = vcmp.eq.s32.totalorder %v1869_v40, %v5127_v57  ;;  %vm1932_vm4 = vcmp.eq.s32.totalorder %v1866_v41, %v5127_v57  ;;  %4359 = vmatprep.mubr.msk.bf16.mxu1 %vm778_vm0, %v2092_v38  ;;  %v5302_v50 = vpop.f32.mrb[12].mxu0  ;;  %v4478_v35 = vpop.eup %4477  ;;  %v5397_v40 = vadd.f32 %v5323_v60, %v5300_v49  ;;  %4493 = vrcp.f32 %v1358_v36 }
 0x119   : > { %v3897_v43 = vsel %vm1933_vm3, 1.0, %v4867_v0  ;;  %v3896_v44 = vsel %vm1932_vm4, 1.0, %v4867_v0  ;;  %v5304_v51 = vpop.f32.mrb[13].mxu0  ;;  %v4480_v38 = vpop.eup %4479  ;;  %4495 = vrcp.f32 %v1356_v39 }
 0x11a   : > { %v2093_v45 = vpack.c.bf16 %v3897_v43, %v3896_v44  ;;  %v5306_v52 = vpop.f32.mrb[14].mxu0  ;;  %v5403_v43 = vadd.f32 %v5302_v50, %v5323_v60  ;;  %v5409_v46 = vadd.f32 %v5323_v60, %v5304_v51  ;;  %v1362_v47 = vadd.f32 1.0, %v4480_v38  ;;  %v4482_v48 = vpop.eup %4481 }
 0x11b   : > { %v5308_v53 = vpop.f32.mrb[15].mxu0  ;;  %v3779_v49 = vmul.f32 -1.442695, %v5397_v40  ;;  %v4484_v5 = vpop.eup %4483  ;;  %4497 = vrcp.f32 %v1359_v42  ;;  %v5415_v50 = vadd.f32 %v5306_v52, %v5323_v60  ;;  %v1360_v14 = vadd.f32 1.0, %v4482_v48 }
 0x11c   : > { %v3784_v8 = vmul.f32 -1.442695, %v5403_v43  ;;  %v3782_v10 = vmul.f32 -1.442695, %v5409_v46  ;;  %v5420_v51 = vadd.f32 %v5323_v60, %v5308_v53  ;;  %v4486_v20 = vpop.eup %4485  ;;  %v1363_v27 = vadd.f32 1.0, %v4484_v5 }
 0x11d   : > { %4360 = vmatmul.mubr.msk.bf16.gmra.mrb[60].mxu1 %vm778_vm0, %v2093_v45  ;;  %v1357_v45 = vadd.f32 1.0, %v4478_v35  ;;  %v3785_v29 = vmul.f32 -1.442695, %v5415_v50  ;;  %v1361_v33 = vadd.f32 1.0, %v4486_v20 }
 0x11e   : > { %v3783_v53 = vmul.f32 -1.442695, %v5420_v51 }
 0x11f   : > { %4499 = vrcp.f32 %v1357_v45  ;;  %v4488_v52 = vpop.eup %4487 }
 0x120   : > { %v5310_v54 = vpop.f32.mrb[16].mxu0  ;;  %4501 = vrcp.f32 %v1362_v47  ;;  %v4490_v31 = vpop.eup %4489  ;;  %v1366_v36 = vadd.f32 1.0, %v4488_v52 }
 0x121   : > { %v5312_v56 = vpop.f32.mrb[17].mxu0  ;;  %4503 = vpow2.f32 %v3779_v49  ;;  %v4492_v32 = vpop.eup %4491  ;;  %v5434_v35 = vadd.f32 %v5310_v54, %v5323_v60  ;;  %v1364_v42 = vadd.f32 1.0, %v4490_v31 }
 0x122   : > { %v5314_v0 = vpop.f32.mrb[18].mxu0  ;;  %4505 = vpow2.f32 %v3784_v8  ;;  %v5438_v38 = vadd.f32 %v5323_v60, %v5312_v56  ;;  %v5440_v39 = vpop.eup %4493  ;;  %v1367_v48 = vadd.f32 1.0, %v4492_v32 }
 0x123   : > { %v5316_v58 = vpop.f32.mrb[19].mxu0  ;;  %4507 = vpow2.f32 %v3782_v10  ;;  %v5444_v45 = vadd.f32 %v5314_v0, %v5323_v60  ;;  %v5446_v47 = vpop.eup %4495  ;;  %v3788_v5 = vmul.f32 -1.442695, %v5434_v35 }
 0x124   : > { %4509 = vrcp.f32 %v1360_v14  ;;  %v5450_v54 = vadd.f32 %v5323_v60, %v5316_v58  ;;  %v3786_v14 = vmul.f32 -1.442695, %v5438_v38 }
 0x125   : > { %4511 = vrcp.f32 %v1363_v27  ;;  %v5454_v56 = vpop.eup %4497  ;;  %v3789_v52 = vmul.f32 -1.442695, %v5444_v45 }
 0x126   : > { %4513 = vpow2.f32 %v3785_v29  ;;  %v3787_v31 = vmul.f32 -1.442695, %v5450_v54 }
 0x127   : > { %4515 = vpow2.f32 %v3783_v53 }
 0x128   : > { %v5318_v59 = vpop.f32.mrb[20].mxu0  ;;  %4517 = vrcp.f32 %v1361_v33 }
 0x129   : > { %v5325_v61 = vpop.f32.mrb[21].mxu0  ;;  %v5459_v8 = vadd.f32 %v5318_v59, %v5323_v60  ;;  %v5463_v10 = vpop.eup %4499  ;;  %4519 = vrcp.f32 %v1366_v36 }
 0x12a   : > { %v5327_v62 = vpop.f32.mrb[22].mxu0  ;;  %v5468_v58 = vadd.f32 %v5323_v60, %v5325_v61  ;;  %v5472_v27 = vpop.eup %4501  ;;  %4521 = vrcp.f32 %v1364_v42 }
 0x12b   : > { %v5329_v63 = vpop.f32.mrb[23].mxu0  ;;  %6641 = vst [vmem:[#allocation9_spill] sm:$0xff] %v5459_v8  ;;  %v4504_v29 = vpop.eup %4503  ;;  %4523 = vrcp.f32 %v1367_v48  ;;  %v3792_v32 = vmul.f32 -1.442695, %v5459_v8  ;;  %v5482_v36 = vadd.f32 %v5327_v62, %v5323_v60 }
 0x12c   : > { %6643 = vst [vmem:[#allocation11_spill] sm:$0xff] %v5468_v58  ;;  %v4506_v53 = vpop.eup %4505  ;;  %4525 = vpow2.f32 %v3788_v5  ;;  %v3790_v61 = vmul.f32 -1.442695, %v5468_v58  ;;  %v1365_v55 = vadd.f32 1.0, %v4504_v29  ;;  %v5488_v48 = vadd.f32 %v5323_v60, %v5329_v63 }
 0x12d   : > { %v4508_v33 = vpop.eup %4507  ;;  %4527 = vpow2.f32 %v3786_v14  ;;  %6646 = vst [vmem:[#allocation14_spill] sm:$0xff] %v5482_v36  ;;  %v1370_v5 = vadd.f32 1.0, %v4506_v53  ;;  %v3793_v53 = vmul.f32 -1.442695, %v5482_v36 }
 0x12e   : > { %v5484_v42 = vpop.eup %4509  ;;  %4529 = vpow2.f32 %v3789_v52  ;;  %6647 = vst [vmem:[#allocation15_spill] sm:$0xff] %v5488_v48 }
 0x12f   : > { %v5490_v57 = vpop.eup %4511  ;;  %4531 = vpow2.f32 %v3787_v31 }
 0x130   : > { %v5347_v7 = vpop.f32.mrb[24].mxu0  ;;  %v4514_v62 = vpop.eup %4513  ;;  %4533 = vpow2.f32 %v3792_v32  ;;  %v3791_v32 = vmul.f32 -1.442695, %v5488_v48 }
 0x131   : > { %v5350_v9 = vpop.f32.mrb[25].mxu0  ;;  %v5494_v14 = vadd.f32 %v5347_v7, %v5323_v60  ;;  %v4516_v63 = vpop.eup %4515  ;;  %4535 = vpow2.f32 %v3790_v61  ;;  %v1371_v48 = vadd.f32 1.0, %v4514_v62 }
 0x132   : > { %v5353_v11 = vpop.f32.mrb[26].mxu0  ;;  %v5500_v52 = vadd.f32 %v5323_v60, %v5350_v9  ;;  %4537 = vrcp.f32 %v1365_v55  ;;  %v1369_v36 = vadd.f32 1.0, %v4516_v63 }
 0x133   : > { %v5356_v13 = vpop.f32.mrb[27].mxu0  ;;  %6648 = vst [vmem:[#allocation16_spill] sm:$0xff] %v5494_v14  ;;  %v5507_v31 = vadd.f32 %v5353_v11, %v5323_v60  ;;  %4539 = vrcp.f32 %v1370_v5  ;;  %v3796_v61 = vmul.f32 -1.442695, %v5494_v14 }
 0x134   : > { %6650 = vst [vmem:[#allocation18_spill] sm:$0xff] %v5500_v52  ;;  %v5514_v9 = vadd.f32 %v5323_v60, %v5356_v13  ;;  %v3794_v11 = vmul.f32 -1.442695, %v5500_v52 }
 0x135   : > { %6652 = vst [vmem:[#allocation20_spill] sm:$0xff] %v5507_v31  ;;  %v3797_v55 = vmul.f32 -1.442695, %v5507_v31 }
 0x136   : > { %6654 = vst [vmem:[#allocation22_spill] sm:$0xff] %v5514_v9  ;;  %v3795_v13 = vmul.f32 -1.442695, %v5514_v9 }
 0x138   : > { %v5369_v19 = vpop.f32.mrb[28].mxu0 }
 0x139   : > { %v5375_v22 = vpop.f32.mrb[29].mxu0 }
 0x13a   : > { %v5380_v24 = vpop.f32.mrb[30].mxu0 }
 0x13b   : > { %v5385_v26 = vpop.f32.mrb[31].mxu0 }
 0x140   : > { %v5391_v34 = vpop.f32.mrb[32].mxu0 }
 0x141   : > { %v5393_v37 = vpop.f32.mrb[33].mxu0 }
 0x142   : > { %v5399_v41 = vpop.f32.mrb[34].mxu0 }
 0x143   : > { %v5405_v44 = vpop.f32.mrb[35].mxu0 }
 0x148   : > { %v5422_v12 = vpop.f32.mrb[36].mxu0 }
 0x149   : > { %v5424_v17 = vpop.f32.mrb[37].mxu0 }
 0x14a   : > { %v5426_v28 = vpop.f32.mrb[38].mxu0 }
 0x14b   : > { %v5429_v30 = vpop.f32.mrb[39].mxu0 }
 0x150   : > { %v5452_v49 = vpop.f32.mrb[40].mxu0 }
 0x151   : > { %6640 = vst [vmem:[#allocation8_spill] sm:$0xff] %v5452_v49  ;;  %v5461_v0 = vpop.f32.mrb[41].mxu0 }
 0x152   : > { %6642 = vst [vmem:[#allocation10_spill] sm:$0xff] %v5461_v0  ;;  %v5470_v20 = vpop.f32.mrb[42].mxu0 }
 0x153   : > { %6644 = vst [vmem:[#allocation12_spill] sm:$0xff] %v5470_v20  ;;  %v5475_v59 = vpop.f32.mrb[43].mxu0  ;;  %v1368_v20 = vadd.f32 1.0, %v4508_v33 }
 0x154   : > { %6645 = vst [vmem:[#allocation13_spill] sm:$0xff] %v5475_v59 }
 0x155   : > { %4541 = vrcp.f32 %v1368_v20 }
 0x156   : > { %4543 = vpow2.f32 %v3793_v53 }
 0x157   : > { %4545 = vpow2.f32 %v3791_v32 }
 0x158   : > { %v5496_v59 = vpop.f32.mrb[44].mxu0  ;;  %4547 = vpow2.f32 %v3796_v61  ;;  %v5538_v61 = vadd.f32 %v5369_v19, %v5323_v60  ;;  %v1548_v19 = vmul.f32 %v5446_v47, %v5335_v2  ;;  %v5565_v2 = vmul.f32 %v5484_v42, %v5360_v15 }
 0x159   : > { %6649 = vst [vmem:[#allocation17_spill] sm:$0xff] %v5496_v59  ;;  %v5502_v29 = vpop.f32.mrb[45].mxu0  ;;  %v4518_v59 = vpop.eup %4517  ;;  %4549 = vpow2.f32 %v3794_v11 }
 0x15a   : > { %6651 = vst [vmem:[#allocation19_spill] sm:$0xff] %v5502_v29  ;;  %v5509_v7 = vpop.f32.mrb[46].mxu0  ;;  %v5518_v29 = vpop.eup %4519  ;;  %4551 = vpow2.f32 %v3797_v55 }
 0x15b   : > { %6653 = vst [vmem:[#allocation21_spill] sm:$0xff] %v5509_v7  ;;  %v5516_v33 = vpop.f32.mrb[47].mxu0  ;;  %v5521_v0 = vpop.eup %4521  ;;  %4553 = vpow2.f32 %v3795_v13  ;;  %v5586_v42 = vmul.f32 %v5518_v29, %v5373_v21 }
 0x15c   : > { %6655 = vst [vmem:[#allocation23_spill] sm:$0xff] %v5516_v33  ;;  %v5524_v7 = vpop.eup %4523  ;;  %4555 = vrcp.f32 %v1371_v48  ;;  %v5548_v48 = vadd.f32 %v5380_v24, %v5323_v60  ;;  %v5561_v24 = vmul.f32 %v5472_v27, %v5345_v6  ;;  %v5582_v27 = vadd.f32 %v5323_v60, %v5385_v26 }
 0x15d   : > { %v4526_v49 = vpop.eup %4525  ;;  %4557 = vrcp.f32 %v1369_v36 }
 0x15e   : > { %v4528_v33 = vpop.eup %4527  ;;  %v1374_v58 = vadd.f32 1.0, %v4526_v49  ;;  %v5542_v49 = vadd.f32 %v5323_v60, %v5375_v22  ;;  %v1551_v22 = vmul.f32 %v5454_v56, %v5338_v3  ;;  %v5575_v56 = vmul.f32 %v4518_v59, %v5367_v18 }
 0x15f   : > { %v4530_v14 = vpop.eup %4529  ;;  %v1372_v8 = vadd.f32 1.0, %v4528_v33  ;;  %v1550_v33 = vmul.f32 %v5440_v39, %v5332_v1  ;;  %v1549_v1 = vmul.f32 %v5463_v10, %v5341_v4  ;;  %v5572_v4 = vmul.f32 %v5490_v57, %v5363_v16 }
 0x160   : > { %v5528_v5 = vpop.f32.mrb[48].mxu0  ;;  %v4532_v52 = vpop.eup %4531  ;;  %v1375_v62 = vadd.f32 1.0, %v4530_v14  ;;  %4559 = vrcp.f32 %v1374_v58  ;;  %v3800_v58 = vmul.f32 -1.442695, %v5538_v61  ;;  %v3798_v3 = vmul.f32 -1.442695, %v5542_v49 }
 0x161   : > { %v5530_v20 = vpop.f32.mrb[49].mxu0  ;;  %v4534_v31 = vpop.eup %4533  ;;  %v1373_v11 = vadd.f32 1.0, %v4532_v52  ;;  %4561 = vrcp.f32 %v1372_v8  ;;  %v3801_v15 = vmul.f32 -1.442695, %v5548_v48  ;;  %v5592_v18 = vmul.f32 %v5521_v0, %v5378_v23 }
 0x162   : > { %v5532_v53 = vpop.f32.mrb[50].mxu0  ;;  %v4536_v9 = vpop.eup %4535  ;;  %v1378_v13 = vadd.f32 1.0, %v4534_v31  ;;  %4563 = vrcp.f32 %v1375_v62  ;;  %v5596_v59 = vmul.f32 %v5524_v7, %v5383_v25  ;;  %v5608_v25 = vadd.f32 %v5391_v34, %v5323_v60 }
 0x163   : > { %v5534_v32 = vpop.f32.mrb[51].mxu0  ;;  %v4538_v63 = vpop.eup %4537  ;;  %v1376_v36 = vadd.f32 1.0, %v4536_v9  ;;  %4565 = vrcp.f32 %v1373_v11 }
 0x164   : > { %v4540_v55 = vpop.eup %4539  ;;  %4567 = vrcp.f32 %v1378_v13  ;;  %v5601_v29 = vmul.f32 %v4538_v63, %v5397_v40 }
 0x165   : > { %v5552_v14 = vpop.eup %4541  ;;  %4569 = vrcp.f32 %v1376_v36  ;;  %v5604_v62 = vmul.f32 %v4540_v55, %v5403_v43 }
 0x166   : > { %v4544_v39 = vpop.eup %4543  ;;  %4571 = vpow2.f32 %v3800_v58 }
 0x167   : > { %v4546_v8 = vpop.eup %4545  ;;  %v1379_v16 = vadd.f32 1.0, %v4544_v39  ;;  %4573 = vpow2.f32 %v3798_v3  ;;  %v3799_v39 = vmul.f32 -1.442695, %v5582_v27 }
 0x168   : > { %v5567_v47 = vpop.f32.mrb[52].mxu0  ;;  %v4548_v6 = vpop.eup %4547  ;;  %v1377_v9 = vadd.f32 1.0, %v4546_v8  ;;  %4575 = vpow2.f32 %v3801_v15  ;;  %v5617_v15 = vadd.f32 %v5399_v41, %v5323_v60 }
 0x169   : > { %v5577_v10 = vpop.f32.mrb[53].mxu0  ;;  %v4550_v57 = vpop.eup %4549  ;;  %v1382_v13 = vadd.f32 1.0, %v4548_v6  ;;  %4577 = vrcp.f32 %v1379_v16 }
 0x16a   : > { %v5588_v52 = vpop.f32.mrb[54].mxu0  ;;  %v4552_v26 = vpop.eup %4551  ;;  %v1380_v36 = vadd.f32 1.0, %v4550_v57  ;;  %4579 = vrcp.f32 %v1377_v9 }
 0x16b   : > { %v5598_v31 = vpop.f32.mrb[55].mxu0  ;;  %v4554_v11 = vpop.eup %4553  ;;  %v1383_v43 = vadd.f32 1.0, %v4552_v26  ;;  %4581 = vrcp.f32 %v1382_v13 }
 0x16c   : > { %6656 = vst [vmem:[#allocation24_spill] sm:$0xff] %v5598_v31  ;;  %v4556_v7 = vpop.eup %4555  ;;  %v1381_v34 = vadd.f32 1.0, %v4554_v11  ;;  %4583 = vrcp.f32 %v1380_v36 }
 0x16d   : > { %v4558_v63 = vpop.eup %4557  ;;  %4585 = vrcp.f32 %v1383_v43  ;;  %v5644_v43 = vmul.f32 %v5552_v14, %v5409_v46 }
 0x16e   : > { %v4560_v3 = vpop.eup %4559  ;;  %4587 = vrcp.f32 %v1381_v34 }
 0x16f   : > { %4589 = vpow2.f32 %v3799_v39  ;;  %v5656_v46 = vmul.f32 %v4560_v3, %v5434_v35 }
 0x170   : > { %v5619_v57 = vpop.f32.mrb[56].mxu0 }
 0x171   : > { %6657 = vst [vmem:[#allocation25_spill] sm:$0xff] %v5619_v57 }
 0x178   : > { %v4301_v21 = vpop.f32.mrb[0].mxu1 }
 0x179   : > { %v2237_v23 = vadd.f32 %v4301_v21, %v1550_v33  ;;  %v2228_v0 = vpop.f32.mrb[1].mxu1  ;;  %v5613_v33 = vadd.f32 %v5323_v60, %v5393_v37  ;;  %v5622_v21 = vpop.f32.mrb[57].mxu0 }
 0x17a   : > { %v2229_v58 = vadd.f32 %v2228_v0, %v1548_v19  ;;  %v4302_v40 = vpop.f32.mrb[2].mxu1  ;;  %v4562_v19 = vpop.eup %4561  ;;  %6658 = vst [vmem:[#allocation26_spill] sm:$0xff] %v5622_v21 }
 0x17b   : > { %v2240_v55 = vadd.f32 %v4302_v40, %v1551_v22  ;;  %v2231_v8 = vpop.f32.mrb[3].mxu1  ;;  %v2485_v16 = vmax.f32 %v2237_v23, 0.0  ;;  %v3804_v22 = vmul.f32 -1.442695, %v5608_v25  ;;  %v4564_v37 = vpop.eup %4563  ;;  %v3802_v13 = vmul.f32 -1.442695, %v5613_v33 }
 0x17c   : > { %v2232_v6 = vadd.f32 %v2231_v8, %v1549_v1  ;;  %v2483_v0 = vmax.f32 %v2229_v58, 0.0  ;;  %v5626_v1 = vadd.f32 %v5323_v60, %v5405_v44  ;;  %v5628_v41 = vpop.f32.mrb[58].mxu0  ;;  %v4566_v11 = vpop.eup %4565  ;;  %v5635_v23 = vadd.f32 %v5422_v12, %v5323_v60 }
 0x17d   : > { %v2486_v26 = vmax.f32 %v2240_v55, 0.0  ;;  %6659 = vst [vmem:[#allocation27_spill] sm:$0xff] %v5628_v41  ;;  %v5637_v55 = vpop.f32.mrb[59].mxu0  ;;  %v4568_v36 = vpop.eup %4567  ;;  %v3805_v44 = vmul.f32 -1.442695, %v5617_v15  ;;  %v5648_v12 = vmul.f32 %v4556_v7, %v5415_v50  ;;  %4591 = vpow2.f32 %v3804_v22 }
 0x17e   : > { %v2484_v9 = vmax.f32 %v2232_v6, 0.0  ;;  %6660 = vst [vmem:[#allocation28_spill] sm:$0xff] %v5635_v23  ;;  %6661 = vst [vmem:[#allocation29_spill] sm:$0xff] %v5637_v55  ;;  %v4570_v6 = vpop.eup %4569  ;;  %v5651_v55 = vmul.f32 %v4558_v63, %v5420_v51  ;;  %4593 = vpow2.f32 %v3802_v13  ;;  %v3808_v50 = vmul.f32 -1.442695, %v5635_v23  ;;  %v5671_v3 = vpop.f32.mrb[60].mxu0 }
 0x17f   : > { %v5630_v40 = vpack.c.bf16 %v2486_v26, %v2485_v16  ;;  %v4572_v34 = vpop.eup %4571  ;;  %v5661_v51 = vmul.f32 %v4562_v19, %v5438_v38  ;;  %4595 = vpow2.f32 %v3805_v44  ;;  %v5669_v35 = vmul.f32 %v4564_v37, %v5444_v45  ;;  %6663 = vst [vmem:[#allocation31_spill] sm:$0xff] %v5671_v3  ;;  %v5677_v19 = vpop.f32.mrb[61].mxu0 }
 0x180   : > { %v5639_v58 = vpack.c.bf16 %v2484_v9, %v2483_v0  ;;  %v4305_v8 = vpop.f32.mrb[4].mxu1  ;;  %v3803_v0 = vmul.f32 -1.442695, %v5626_v1  ;;  %v4574_v14 = vpop.eup %4573  ;;  %v1386_v22 = vadd.f32 1.0, %v4572_v34  ;;  %v5675_v38 = vadd.f32 %v5426_v28, %v5323_v60  ;;  %6665 = vst [vmem:[#allocation33_spill] sm:$0xff] %v5677_v19 }
 0x181   : > { %v2253_v16 = vadd.f32 %v4305_v8, %v5561_v24  ;;  %v2244_v26 = vpop.f32.mrb[5].mxu1  ;;  %v4576_v7 = vpop.eup %4575  ;;  %v1384_v44 = vadd.f32 1.0, %v4574_v14  ;;  %v5693_v14 = vmul.f32 %v4566_v11, %v5450_v54 }
 0x182   : > { %v2245_v9 = vadd.f32 %v2244_v26, %v5565_v2  ;;  %v4306_v41 = vpop.f32.mrb[6].mxu1  ;;  %v5666_v2 = vadd.f32 %v5323_v60, %v5424_v17  ;;  %6664 = vst [vmem:[#allocation32_spill] sm:$0xff] %v5675_v38  ;;  %4597 = vpow2.f32 %v3803_v0  ;;  %v5679_v26 = vpop.f32.mrb[62].mxu0  ;;  %v1387_v37 = vadd.f32 1.0, %v4576_v7 }
 0x183   : > { %v2256_v24 = vadd.f32 %v4306_v41, %v5572_v4  ;;  %v2247_v39 = vpop.f32.mrb[7].mxu1  ;;  %v4578_v4 = vpop.eup %4577  ;;  %v2489_v41 = vmax.f32 %v2253_v16, 0.0  ;;  %6666 = vst [vmem:[#allocation34_spill] sm:$0xff] %v5679_v26  ;;  %4599 = vpow2.f32 %v3808_v50  ;;  %v5685_v16 = vadd.f32 %v5323_v60, %v5429_v30 }
 0x184   : > { %v2248_v63 = vadd.f32 %v2247_v39, %v5575_v56  ;;  %6662 = vst [vmem:[#allocation30_spill] sm:$0xff] %v5666_v2  ;;  %v4580_v56 = vpop.eup %4579  ;;  %v2487_v17 = vmax.f32 %v2245_v9, 0.0  ;;  %v5687_v28 = vpop.f32.mrb[63].mxu0  ;;  %v3806_v0 = vmul.f32 -1.442695, %v5666_v2  ;;  %4601 = vrcp.f32 %v1386_v22 }
 0x185   : > { %v2490_v13 = vmax.f32 %v2256_v24, 0.0  ;;  %v4582_v45 = vpop.eup %4581  ;;  %6667 = vst [vmem:[#allocation35_spill] sm:$0xff] %v5685_v16  ;;  %6668 = vst [vmem:[#allocation36_spill] sm:$0xff] %v5687_v28  ;;  %v6671_v28 = vld [vmem:[#allocation14_spill] sm:$0xff]  ;;  %4603 = vrcp.f32 %v1384_v44  ;;  %v3809_v19 = vmul.f32 -1.442695, %v5675_v38 }
 0x186   : > { %v2488_v8 = vmax.f32 %v2248_v63, 0.0  ;;  %v4584_v34 = vpop.eup %4583  ;;  %v6669_v63 = vld [vmem:[#allocation9_spill] sm:$0xff]  ;;  %4605 = vrcp.f32 %v1387_v37  ;;  %v6677_v38 = vld [vmem:[#allocation10_spill] sm:$0xff] }
 0x187   : > { %v5681_v39 = vpack.c.bf16 %v2490_v13, %v2489_v41  ;;  %v5696_v7 = vmul.f32 %v4568_v36, %v6669_v63  ;;  %v4586_v41 = vpop.eup %4585  ;;  %v6670_v13 = vld [vmem:[#allocation11_spill] sm:$0xff]  ;;  %4607 = vpow2.f32 %v3806_v0 }
 0x188   : > { %v5689_v24 = vpack.c.bf16 %v2488_v8, %v2487_v17  ;;  %v4309_v9 = vpop.f32.mrb[8].mxu1  ;;  %v5700_v26 = vmul.f32 %v4570_v6, %v6670_v13  ;;  %v5703_v17 = vmul.f32 %v4578_v4, %v6671_v28  ;;  %v4588_v8 = vpop.eup %4587  ;;  %v6672_v36 = vld [vmem:[#allocation15_spill] sm:$0xff]  ;;  %v6673_v13 = vld [vmem:[#allocation16_spill] sm:$0xff]  ;;  %4609 = vpow2.f32 %v3809_v19 }
 0x189   : > { %v2269_v50 = vadd.f32 %v4309_v9, %v5586_v42  ;;  %v2260_v30 = vpop.f32.mrb[9].mxu1  ;;  %v5708_v63 = vmul.f32 %v4580_v56, %v6672_v36  ;;  %v4590_v22 = vpop.eup %4589  ;;  %v3807_v42 = vmul.f32 -1.442695, %v5685_v16  ;;  %v5713_v4 = vmul.f32 %v4582_v45, %v6673_v13  ;;  %v6676_v56 = vld [vmem:[#allocation18_spill] sm:$0xff] }
 0x18a   : > { %v2261_v54 = vadd.f32 %v2260_v30, %v5592_v18  ;;  %v4310_v11 = vpop.f32.mrb[10].mxu1  ;;  %v4592_v28 = vpop.eup %4591  ;;  %v6674_v18 = vld [vmem:[#allocation8_spill] sm:$0xff]  ;;  %v5721_v36 = vmul.f32 %v4584_v34, %v6676_v56  ;;  %v6679_v45 = vlaneseq }
 0x18b   : > { %v2272_v6 = vadd.f32 %v4310_v11, %v5596_v59  ;;  %v2263_v9 = vpop.f32.mrb[11].mxu1  ;;  %v5718_v30 = vadd.f32 %v6674_v18, %v5323_v60  ;;  %v4594_v37 = vpop.eup %4593  ;;  %v2493_v3 = vmax.f32 %v2269_v50, 0.0  ;;  %v5725_v59 = vadd.f32 %v5323_v60, %v6677_v38  ;;  %v6680_v18 = vld [vmem:[#allocation20_spill] sm:$0xff]  ;;  %v6681_v50 = vld [vmem:[#allocation22_spill] sm:$0xff] }
 0x18c   : > { %v2264_v44 = vadd.f32 %v2263_v9, %v5601_v29  ;;  %v5728_v11 = vshrl.u32 %v6679_v45, 7  ;;  %v4596_v0 = vpop.eup %4595  ;;  %v1385_v29 = vadd.f32 1.0, %v4590_v22  ;;  %v2491_v9 = vmax.f32 %v2261_v54, 0.0 }
 0x18d   : > { %6675 = vst [vmem:[#allocation9_spill] sm:$0xff] %v5718_v30  ;;  %v2494_v16 = vmax.f32 %v2272_v6, 0.0  ;;  %6678 = vst [vmem:[#allocation11_spill] sm:$0xff] %v5725_v59  ;;  %v5731_v2 = vmul.f32 %v4586_v41, %v6680_v18  ;;  %v1390_v34 = vadd.f32 1.0, %v4592_v28  ;;  %v5736_v6 = vmul.f32 %v4588_v8, %v6681_v50  ;;  %v4598_v38 = vpop.eup %4597  ;;  %v5746_v41 = vld [vmem:[%s468_s22] sm:$0xf] }
 0x18e   : > { %v2492_v13 = vmax.f32 %v2264_v44, 0.0  ;;  %v1388_v21 = vadd.f32 1.0, %v4594_v37  ;;  %4611 = vpow2.f32 %v3807_v42  ;;  %v3812_v57 = vmul.f32 -1.442695, %v5718_v30  ;;  %v4600_v19 = vpop.eup %4599  ;;  %v6684_v44 = vld [vmem:[#allocation13_spill] sm:$0xff] }
 0x18f   : > { %v5733_v56 = vpack.c.bf16 %v2494_v16, %v2493_v3  ;;  %v3810_v3 = vmul.f32 -1.442695, %v5725_v59  ;;  %v6682_v16 = vld [vmem:[#allocation12_spill] sm:$0xff]  ;;  %v2563_v28 = vsub.s32 1, %v5728_v11  ;;  %4613 = vrcp.f32 %v1385_v29  ;;  %v5763_v50 = vpop.eup %4601 }
 0x190   : > { %v5738_v45 = vpack.c.bf16 %v2492_v13, %v2491_v9  ;;  %v4313_v22 = vpop.f32.mrb[12].mxu1  ;;  %v5751_v8 = vadd.f32 %v6682_v16, %v5323_v60  ;;  %v5757_v37 = vadd.f32 %v5323_v60, %v6684_v44  ;;  %v5761_v18 = vadd.s32 8, %v5728_v11  ;;  %v5769_v29 = vpop.eup %4603 }
 0x191   : > { %v2285_v54 = vadd.f32 %v4313_v22, %v5604_v62  ;;  %v2276_v42 = vpop.f32.mrb[13].mxu1  ;;  %4615 = vrcp.f32 %v1390_v34  ;;  %v1391_v16 = vadd.f32 1.0, %v4596_v0  ;;  %v5767_v59 = vrot.slane %v5746_v41, %v2563_v28  ;;  %v6687_v28 = vld [vmem:[#allocation17_spill] sm:$0xff] }
 0x192   : > { %6683 = vst [vmem:[#allocation14_spill] sm:$0xff] %v5751_v8  ;;  %6685 = vst [vmem:[#allocation15_spill] sm:$0xff] %v5757_v37  ;;  %v2277_v9 = vadd.f32 %v2276_v42, %v5644_v43  ;;  %v4314_v13 = vpop.f32.mrb[14].mxu1  ;;  %4617 = vrcp.f32 %v1388_v21  ;;  %v1389_v44 = vadd.f32 1.0, %v4598_v38  ;;  %v1394_v30 = vadd.f32 1.0, %v4600_v19  ;;  %v5772_v42 = vpop.eup %4605 }
 0x193   : > { %v2288_v62 = vadd.f32 %v4314_v13, %v5648_v12  ;;  %v2279_v22 = vpop.f32.mrb[15].mxu1  ;;  %6686 = vst [vmem:[#allocation16_spill] sm:$0xff] %v5767_v59  ;;  %v2497_v23 = vmax.f32 %v2285_v54, 0.0  ;;  %vm2574_vm0 = vcmp.eq.s32.totalorder %v5767_v59, %v5728_v11  ;;  %v4608_v0 = vpop.eup %4607  ;;  %v5778_v13 = vadd.f32 %v6687_v28, %v5323_v60 }
 0x194   : > { %v2280_v43 = vadd.f32 %v2279_v22, %v5651_v55  ;;  %v2495_v12 = vmax.f32 %v2277_v9, 0.0  ;;  %vm2578_vm5 = vcmp.eq.s32.totalorder %v5767_v59, %v5761_v18  ;;  %4619 = vrcp.f32 %v1391_v16  ;;  %v6690_v16 = vld [vmem:[#allocation19_spill] sm:$0xff] }
 0x195   : > { %v2498_v31 = vmax.f32 %v2288_v62, 0.0  ;;  %6688 = vst [vmem:[#allocation8_spill] sm:$0xff] %v5778_v13  ;;  %v3813_v21 = vmul.f32 -1.442695, %v5751_v8  ;;  %vm3962_vm6 = vmpackc.low %vm2578_vm5, %vm2574_vm0  ;;  %v2571_v38 = vsub.s32 3, %v5728_v11  ;;  %4621 = vrcp.f32 %v1389_v44 }
 0x196   : > { %v2496_v34 = vmax.f32 %v2280_v43, 0.0  ;;  %v3811_v19 = vmul.f32 -1.442695, %v5757_v37  ;;  %v6626_v62 = vmov 1.0|1.0   ;;  %v2567_v22 = vsub.s32 2, %v5728_v11  ;;  %v4610_v43 = vpop.eup %4609 }
 0x197   : > { %v5783_v55 = vpack.c.bf16 %v2498_v31, %v2497_v23  ;;  %3963 = vmatprep.mubr.msk.bf16.mxu0 %vm3962_vm6, %v6626_v62  ;;  %4623 = vrcp.f32 %v1394_v30  ;;  %v5793_v31 = vadd.f32 %v5323_v60, %v6690_v16  ;;  %v5797_v44 = vrot.slane %v5746_v41, %v2571_v38  ;;  %v6691_v16 = vld [vmem:[#allocation21_spill] sm:$0xff] }
 0x198   : > { %v5787_v54 = vpack.c.bf16 %v2496_v34, %v2495_v12  ;;  %v4317_v9 = vpop.f32.mrb[16].mxu1  ;;  %v4612_v12 = vpop.eup %4611  ;;  %4625 = vpow2.f32 %v3812_v57  ;;  %v3816_v34 = vmul.f32 -1.442695, %v5778_v13  ;;  %v5802_v8 = vrot.slane %v5746_v41, %v2567_v22 }
 0x199   : > { %6689 = vst [vmem:[#allocation18_spill] sm:$0xff] %v5783_v55  ;;  %v2301_v23 = vadd.f32 %v4317_v9, %v5656_v46  ;;  %v2292_v28 = vpop.f32.mrb[17].mxu1  ;;  %v1392_v30 = vadd.f32 1.0, %v4608_v0  ;;  %v5806_v55 = vadd.f32 %v6691_v16, %v5323_v60  ;;  %vm2576_vm7 = vcmp.eq.s32.totalorder %v5797_v44, %v5728_v11  ;;  %v5811_v57 = vpop.eup %4613 }
 0x19a   : > { %v2293_v62 = vadd.f32 %v2292_v28, %v5661_v51  ;;  %v4318_v37 = vpop.f32.mrb[18].mxu1  ;;  %v1395_v38 = vadd.f32 1.0, %v4610_v43  ;;  %4627 = vpow2.f32 %v3810_v3  ;;  %vm2580_vm8 = vcmp.eq.s32.totalorder %v5797_v44, %v5761_v18 }
 0x19b   : > { %v2304_v46 = vadd.f32 %v4318_v37, %v5669_v35  ;;  %v2295_v9 = vpop.f32.mrb[19].mxu1  ;;  %v5816_v0 = vpop.eup %4615  ;;  %v1393_v22 = vadd.f32 1.0, %v4612_v12  ;;  %4629 = vpow2.f32 %v3813_v21  ;;  %v2501_v28 = vmax.f32 %v2301_v23, 0.0  ;;  %vm3978_vm9 = vmpackc.low %vm2580_vm8, %vm2576_vm7 }
 0x19c   : > { %v2296_v51 = vadd.f32 %v2295_v9, %v5693_v14  ;;  %v5818_v35 = vpop.eup %4617  ;;  %v2499_v37 = vmax.f32 %v2293_v62, 0.0  ;;  %v6692_v59 = vmov 1.0|1.0   ;;  %vm2575_vm10 = vcmp.eq.s32.totalorder %v5802_v8, %v5728_v11  ;;  %v6693_v14 = vld [vmem:[#allocation23_spill] sm:$0xff] }
 0x19d   : > { %v2502_v16 = vmax.f32 %v2304_v46, 0.0  ;;  %3979 = vmatprep.mubr.msk.bf16.mxu1 %vm3978_vm9, %v6692_v59  ;;  %vm2579_vm11 = vcmp.eq.s32.totalorder %v5802_v8, %v5761_v18  ;;  %4631 = vrcp.f32 %v1392_v30  ;;  %v5827_v3 = vadd.f32 %v5323_v60, %v6693_v14 }
 0x19e   : > { %v2500_v13 = vmax.f32 %v2296_v51, 0.0  ;;  %vm5829_vm12 = vmpackc.low %vm2579_vm11, %vm2575_vm10  ;;  %v6694_v43 = vmov 0  ;;  %v5834_v62 = vadd.s32 16, %v5728_v11  ;;  %4633 = vrcp.f32 %v1395_v38  ;;  %v5840_v30 = vpop.eup %4619 }
 0x19f   : > { %v2702_v21 = vpack.c.bf16 %v2502_v16, %v2501_v28  ;;  %v6695_v43 = vsel %vm5829_vm12, 4294967295, %v6694_v43  ;;  %v3814_v23 = vmul.f32 -1.442695, %v5793_v31  ;;  %v5838_v9 = vadd.s32 24, %v5728_v11  ;;  %v5846_v14 = vpop.eup %4621 }
 0x1a0   : > { %6696 = vst [vmem:[#allocation10_spill] sm:$0xff] %v6695_v43  ;;  %v2701_v12 = vpack.c.bf16 %v2500_v13, %v2499_v37  ;;  %v4321_v46 = vpop.f32.mrb[20].mxu1  ;;  %4635 = vrcp.f32 %v1393_v22  ;;  %v3817_v51 = vmul.f32 -1.442695, %v5806_v55  ;;  %vm2584_vm13 = vcmp.eq.s32.totalorder %v5797_v44, %v5834_v62 }
 0x1a1   : > { %v2317_v28 = vadd.f32 %v4321_v46, %v5696_v7  ;;  %v2308_v16 = vpop.f32.mrb[21].mxu1  ;;  %4637 = vpow2.f32 %v3811_v19  ;;  %v5850_v13 = vadd.f32 %v5528_v5, %v5323_v60  ;;  %vm2588_vm14 = vcmp.eq.s32.totalorder %v5797_v44, %v5838_v9  ;;  %v5855_v22 = vpop.eup %4623 }
 0x1a2   : > { %v2309_v38 = vadd.f32 %v2308_v16, %v5700_v26  ;;  %v4322_v37 = vpop.f32.mrb[22].mxu1  ;;  %4115 = vmatprep.subr.bf16.mxu0 %v2701_v12  ;;  %4639 = vpow2.f32 %v3816_v34  ;;  %v3815_v7 = vmul.f32 -1.442695, %v5827_v3  ;;  %v5860_v46 = vadd.f32 %v5323_v60, %v5530_v20  ;;  %v4626_v26 = vpop.eup %4625  ;;  %vm5868_vm15 = vmpackc.low %vm2588_vm14, %vm2584_vm13 }
 0x1a3   : > { %v2320_v19 = vadd.f32 %v4322_v37, %v5703_v17  ;;  %v2311_v5 = vpop.f32.mrb[23].mxu1  ;;  %4116 = vmatpush3.bf16.msra.mxu0 %v5639_v58  ;;  %4641 = vpow2.f32 %v3814_v23  ;;  %v2505_v12 = vmax.f32 %v2317_v28, 0.0  ;;  %v6698_v34 = vmov 0 }
 0x1a4   : > { %6697 = vst [vmem:[#allocation20_spill] sm:$0xff] %v5860_v46  ;;  %v2312_v16 = vadd.f32 %v2311_v5, %v5708_v63  ;;  %4117 = vmatprep.subr.bf16.mxu0 %v2702_v21  ;;  %v6699_v34 = vsel %vm5868_vm15, 4294967295, %v6698_v34  ;;  %v5873_v20 = vadd.s32 32, %v5728_v11  ;;  %vm2583_vm1 = vcmp.eq.s32.totalorder %v5802_v8, %v5834_v62  ;;  %v4628_v63 = vpop.eup %4627 }
 0x1a5   : > { %6700 = vst [vmem:[#allocation22_spill] sm:$0xff] %v6699_v34  ;;  %v2506_v17 = vmax.f32 %v2320_v19, 0.0  ;;  %vm2587_vm2 = vcmp.eq.s32.totalorder %v5802_v8, %v5838_v9  ;;  %v5880_v58 = vadd.s32 40, %v5728_v11  ;;  %v3820_v21 = vmul.f32 -1.442695, %v5850_v13  ;;  %v4630_v19 = vpop.eup %4629 }
 0x1a6   : > { %v2503_v23 = vmax.f32 %v2309_v38, 0.0  ;;  %v2504_v28 = vmax.f32 %v2312_v16, 0.0  ;;  %vm5883_vm3 = vmpackc.low %vm2587_vm2, %vm2583_vm1  ;;  %v6701_v37 = vmov 0  ;;  %vm2592_vm4 = vcmp.eq.s32.totalorder %v5797_v44, %v5873_v20 }
 0x1a7   : > { %v6702_v37 = vsel %vm5883_vm3, 4294967295, %v6701_v37  ;;  %v3818_v5 = vmul.f32 -1.442695, %v5860_v46  ;;  %v5892_v34 = vadd.f32 %v5532_v53, %v5323_v60  ;;  %v2704_v43 = vpack.c.bf16 %v2506_v17, %v2505_v12  ;;  %4118 = vmatpush3.bf16.msra.mxu0 %v5630_v40  ;;  %v5904_v46 = vpop.eup %4631 }
 0x1a8   : > { %6703 = vst [vmem:[#allocation12_spill] sm:$0xff] %v6702_v37  ;;  %vm2596_vm0 = vcmp.eq.s32.totalorder %v5797_v44, %v5880_v58  ;;  %v2703_v38 = vpack.c.bf16 %v2504_v28, %v2503_v23  ;;  %v4325_v16 = vpop.f32.mrb[24].mxu1  ;;  %vm2591_vm5 = vcmp.eq.s32.totalorder %v5802_v8, %v5873_v20  ;;  %vm2595_vm6 = vcmp.eq.s32.totalorder %v5802_v8, %v5880_v58  ;;  %v5919_v23 = vpop.eup %4633 }
 0x1a9   : > { %v5902_v37 = vadd.s32 48, %v5728_v11  ;;  %4643 = vpow2.f32 %v3817_v51  ;;  %v2333_v60 = vadd.f32 %v4325_v16, %v5713_v4  ;;  %v2324_v53 = vpop.f32.mrb[25].mxu1  ;;  %v1578_v40 = vmul.f32 %v5763_v50, %v5538_v61  ;;  %vm5912_vm7 = vmpackc.low %vm2596_vm0, %vm2592_vm4  ;;  %v5924_v4 = vld [vmem:[%s6601_s6] ss:$0 sm:$0xff] }
 0x1aa   : > { %v6704_v12 = vmov 0  ;;  %v5917_v17 = vadd.s32 56, %v5728_v11  ;;  %4645 = vpow2.f32 %v3815_v7  ;;  %v5928_v61 = vadd.f32 %v5924_v4, %v5534_v32  ;;  %v4326_v51 = vpop.f32.mrb[26].mxu1  ;;  %4119 = vmatprep.subr.bf16.mxu0 %v2703_v38  ;;  %v5933_v28 = vpop.eup %4635  ;;  %vm5943_vm9 = vmpackc.low %vm2595_vm6, %vm2591_vm5 }
 0x1ab   : > { %v6705_v12 = vsel %vm5912_vm7, 4294967295, %v6704_v12  ;;  %v2325_v50 = vadd.f32 %v2324_v53, %v5721_v36  ;;  %vm2600_vm8 = vcmp.eq.s32.totalorder %v5797_v44, %v5902_v37  ;;  %v1398_v16 = vadd.f32 1.0, %v4626_v26  ;;  %4120 = vmatpush3.bf16.msra.mxu0 %v5689_v24  ;;  %v4638_v36 = vpop.eup %4637 }
 0x1ac   : > { %6706 = vst [vmem:[#allocation13_spill] sm:$0xff] %v6705_v12  ;;  %4647 = vpow2.f32 %v3820_v21  ;;  %v2336_v7 = vadd.f32 %v4326_v51, %v5731_v2  ;;  %v2327_v12 = vpop.f32.mrb[27].mxu1  ;;  %vm2604_vm10 = vcmp.eq.s32.totalorder %v5797_v44, %v5917_v17  ;;  %v1396_v26 = vadd.f32 1.0, %v4628_v63  ;;  %4121 = vmatprep.subr.bf16.mxu0 %v2704_v43  ;;  %v4640_v21 = vpop.eup %4639 }
 0x1ad   : > { %4649 = vpow2.f32 %v3818_v5  ;;  %v3821_v2 = vmul.f32 -1.442695, %v5892_v34  ;;  %v2328_v24 = vadd.f32 %v2327_v12, %v5736_v6  ;;  %v2509_v38 = vmax.f32 %v2333_v60, 0.0  ;;  %vm5954_vm11 = vmpackc.low %vm2604_vm10, %vm2600_vm8  ;;  %v4642_v63 = vpop.eup %4641 }
 0x1ae   : > { %v2510_v53 = vmax.f32 %v2336_v7, 0.0  ;;  %v6709_v51 = vmov 0  ;;  %vm2599_vm13 = vcmp.eq.s32.totalorder %v5802_v8, %v5902_v37  ;;  %vm2603_vm14 = vcmp.eq.s32.totalorder %v5802_v8, %v5917_v17 }
 0x1af   : > { %v6710_v51 = vsel %vm5954_vm11, 4294967295, %v6709_v51  ;;  %v3819_v6 = vmul.f32 -1.442695, %v5928_v61  ;;  %v2507_v43 = vmax.f32 %v2325_v50, 0.0  ;;  %v2508_v5 = vmax.f32 %v2328_v24, 0.0  ;;  %4122 = vmatpush3.bf16.msra.mxu0 %v5681_v39  ;;  %vm5970_vm1 = vmpackc.low %vm2603_vm14, %vm2599_vm13 }
 0x1b0   : > { %6711 = vst [vmem:[#allocation17_spill] sm:$0xff] %v6710_v51  ;;  %v5965_v60 = vadd.f32 %v5924_v4, %v5567_v47  ;;  %4651 = vrcp.f32 %v1398_v16  ;;  %v1399_v44 = vadd.f32 1.0, %v4630_v19  ;;  %v2706_v12 = vpack.c.bf16 %v2510_v53, %v2509_v38  ;;  %v4329_v50 = vpop.f32.mrb[28].mxu1 }
 0x1b1   : > { %v1576_v7 = vmul.f32 %v5769_v29, %v5542_v49  ;;  %4653 = vrcp.f32 %v1396_v26  ;;  %v2705_v8 = vpack.c.bf16 %v2508_v5, %v2507_v43  ;;  %v1579_v24 = vmul.f32 %v5772_v42, %v5548_v48  ;;  %v2340_v16 = vpop.f32.mrb[29].mxu1 }
 0x1b2   : > { %v1577_v47 = vmul.f32 %v5811_v57, %v5582_v27  ;;  %4655 = vpow2.f32 %v3821_v2  ;;  %v2349_v19 = vadd.f32 %v4329_v50, %v1578_v40  ;;  %v1582_v39 = vmul.f32 %v5816_v0, %v5608_v25  ;;  %v4330_v26 = vpop.f32.mrb[30].mxu1 }
 0x1b3   : > { %v1580_v49 = vmul.f32 %v5818_v35, %v5613_v33  ;;  %4657 = vpow2.f32 %v3819_v6  ;;  %v2341_v29 = vadd.f32 %v2340_v16, %v1576_v7  ;;  %4123 = vmatprep.subr.bf16.mxu0 %v2705_v8  ;;  %v1583_v38 = vmul.f32 %v5840_v30, %v5617_v15  ;;  %v4644_v42 = vpop.eup %4643  ;;  %v2343_v40 = vpop.f32.mrb[31].mxu1  ;;  %v6715_v16 = vld [vmem:[#allocation28_spill] sm:$0xff] }
 0x1b4   : > { %v3824_v48 = vmul.f32 -1.442695, %v5965_v60  ;;  %4659 = vrcp.f32 %v1399_v44  ;;  %v1397_v27 = vadd.f32 1.0, %v4638_v36  ;;  %v2352_v57 = vadd.f32 %v4330_v26, %v1579_v24  ;;  %4124 = vmatpush3.bf16.msra.mxu0 %v5738_v45  ;;  %v4646_v33 = vpop.eup %4645 }
 0x1b5   : > { %v1581_v25 = vmul.f32 %v5846_v14, %v5626_v1  ;;  %v1402_v0 = vadd.f32 1.0, %v4640_v21  ;;  %v2344_v35 = vadd.f32 %v2343_v40, %v1577_v47  ;;  %4125 = vmatprep.subr.bf16.mxu0 %v2706_v12  ;;  %v5990_v2 = vadd.f32 %v5924_v4, %v5577_v10  ;;  %v6714_v10 = vld [vmem:[#allocation24_spill] sm:$0xff] }
 0x1b6   : > { %v2559_v15 = vsub.s32 0, %v5728_v11  ;;  %v4648_v30 = vpop.eup %4647  ;;  %v1400_v53 = vadd.f32 1.0, %v4642_v63  ;;  %v2513_v36 = vmax.f32 %v2349_v19, 0.0  ;;  %v2514_v6 = vmax.f32 %v2352_v57, 0.0 }
 0x1b7   : > { %v5995_v45 = vadd.f32 %v5924_v4, %v5588_v52  ;;  %v4650_v43 = vpop.eup %4649  ;;  %v1403_v1 = vadd.f32 1.0, %v4644_v42  ;;  %v2511_v14 = vmax.f32 %v2341_v29, 0.0  ;;  %v2512_v21 = vmax.f32 %v2344_v35, 0.0 }
 0x1b8   : > { %4661 = vpow2.f32 %v3824_v48  ;;  %v1401_v5 = vadd.f32 1.0, %v4646_v33  ;;  %v2708_v44 = vpack.c.bf16 %v2514_v6, %v2513_v36  ;;  %4126 = vmatpush3.bf16.msra.mxu0 %v5733_v56  ;;  %v6000_v12 = vadd.f32 %v5924_v4, %v6714_v10  ;;  %v4333_v8 = vpop.f32.mrb[32].mxu1  ;;  %v6716_v33 = vld [vmem:[#allocation25_spill] sm:$0xff] }
 0x1b9   : > { %4663 = vrcp.f32 %v1397_v27  ;;  %v1406_v63 = vadd.f32 1.0, %v4648_v30  ;;  %v2707_v7 = vpack.c.bf16 %v2512_v21, %v2511_v14  ;;  %v6003_v52 = vrot.slane %v5746_v41, %v2559_v15  ;;  %v2356_v47 = vpop.f32.mrb[33].mxu1  ;;  %v6717_v15 = vld [vmem:[#allocation16_spill] sm:$0xff]  ;;  %v6729_v21 = vld [vmem:[#allocation31_spill] sm:$0xff] }
 0x1ba   : > { %4665 = vrcp.f32 %v1402_v0  ;;  %v6005_v50 = vpop.eup %4651  ;;  %v2365_v24 = vadd.f32 %v4333_v8, %v1582_v39  ;;  %v3822_v19 = vmul.f32 -1.442695, %v5990_v2  ;;  %v1586_v56 = vmul.f32 %v5855_v22, %v6715_v16  ;;  %v4334_v42 = vpop.f32.mrb[34].mxu1  ;;  %v6723_v8 = vld [vmem:[#allocation27_spill] sm:$0xff]  ;;  %v6726_v16 = vld [vmem:[#allocation32_spill] sm:$0xff] }
 0x1bb   : > { %4667 = vrcp.f32 %v1400_v53  ;;  %v6010_v29 = vpop.eup %4653  ;;  %v1404_v26 = vadd.f32 1.0, %v4650_v43  ;;  %v2357_v48 = vadd.f32 %v2356_v47, %v1580_v49  ;;  %4127 = vmatprep.subr.bf16.mxu0 %v2707_v7  ;;  %v3825_v41 = vmul.f32 -1.442695, %v5995_v45  ;;  %v2359_v40 = vpop.f32.mrb[35].mxu1  ;;  %v6718_v43 = vld [vmem:[#allocation18_spill] sm:$0xff] }
 0x1bc   : > { %4669 = vrcp.f32 %v1403_v1  ;;  %v4656_v27 = vpop.eup %4655  ;;  %v2368_v57 = vadd.f32 %v4334_v42, %v1583_v38  ;;  %4128 = vmatpush3.bf16.msra.mxu0 %v5787_v54  ;;  %v3823_v39 = vmul.f32 -1.442695, %v6000_v12  ;;  %v6017_v22 = vadd.f32 %v5924_v4, %v6716_v33  ;;  %v6719_v1 = vld [vmem:[#allocation26_spill] sm:$0xff] }
 0x1bd   : > { %4671 = vrcp.f32 %v1401_v5  ;;  %v4658_v0 = vpop.eup %4657  ;;  %v2360_v35 = vadd.f32 %v2359_v40, %v1581_v25  ;;  %4129 = vmatprep.subr.bf16.mxu0 %v2708_v44  ;;  %vm2573_vm2 = vcmp.eq.s32.totalorder %v6003_v52, %v5728_v11  ;;  %vm2577_vm4 = vcmp.eq.s32.totalorder %v6003_v52, %v5761_v18  ;;  %v6731_v11 = vld [vmem:[#allocation33_spill] sm:$0xff] }
 0x1be   : > { %4673 = vrcp.f32 %v1406_v63  ;;  %v6023_v49 = vpop.eup %4659  ;;  %v2517_v38 = vmax.f32 %v2365_v24, 0.0  ;;  %v2518_v54 = vmax.f32 %v2368_v57, 0.0  ;;  %vm2582_vm0 = vcmp.eq.s32.totalorder %v6717_v15, %v5834_v62  ;;  %vm6042_vm6 = vmpackc.low %vm2577_vm4, %vm2573_vm2  ;;  %v6722_v63 = vld [vmem:[#allocation30_spill] sm:$0xff]  ;;  %v6728_v57 = vld [vmem:[#allocation29_spill] sm:$0xff] }
 0x1bf   : > { %vm2586_vm5 = vcmp.eq.s32.totalorder %v6717_v15, %v5838_v9  ;;  %4675 = vrcp.f32 %v1404_v26  ;;  %v1407_v30 = vadd.f32 1.0, %v4656_v27  ;;  %v2515_v25 = vmax.f32 %v2357_v48, 0.0 }
 0x1c0   : > { %v2516_v53 = vmax.f32 %v2360_v35, 0.0  ;;  %v1405_v36 = vadd.f32 1.0, %v4658_v0  ;;  %v6029_v6 = vpack.c.bf16 %v2518_v54, %v2517_v38  ;;  %4677 = vpow2.f32 %v3822_v19  ;;  %4130 = vmatpush3.bf16.msra.mxu0 %v6718_v43  ;;  %v4337_v10 = vpop.f32.mrb[36].mxu1  ;;  %vm6060_vm8 = vmpackc.low %vm2586_vm5, %vm2582_vm0 }
 0x1c1   : > { %v6034_v14 = vadd.f32 %v5924_v4, %v6719_v1  ;;  %4679 = vpow2.f32 %v3825_v41  ;;  %v1584_v7 = vmul.f32 %v5904_v46, %v6722_v63  ;;  %v6052_v24 = vadd.f32 %v5924_v4, %v6723_v8  ;;  %v2372_v19 = vpop.f32.mrb[37].mxu1  ;;  %v6727_v41 = vld [vmem:[#allocation35_spill] sm:$0xff] }
 0x1c2   : > { %v4662_v5 = vpop.eup %4661  ;;  %v6046_v44 = vpack.c.bf16 %v2516_v53, %v2515_v25  ;;  %4681 = vpow2.f32 %v3823_v39  ;;  %v2381_v47 = vadd.f32 %v4337_v10, %v1586_v56  ;;  %v1587_v46 = vmul.f32 %v5919_v23, %v6726_v16  ;;  %v4338_v42 = vpop.f32.mrb[38].mxu1 }
 0x1c3   : > { %v4664_v18 = vpop.eup %4663  ;;  %4683 = vrcp.f32 %v1407_v30  ;;  %v2373_v48 = vadd.f32 %v2372_v19, %v1584_v7  ;;  %v1585_v27 = vmul.f32 %v5933_v28, %v6727_v41  ;;  %v6072_v40 = vadd.f32 %v5924_v4, %v6728_v57  ;;  %3965 = vmatmul.mubr.msk.bf16.vlgmr.msra.gmra.mrb[64].mxu0 %vm6042_vm6, %v6692_v59  ;;  %v2375_v39 = vpop.f32.mrb[39].mxu1  ;;  %v6730_v7 = vld [vmem:[#allocation9_spill] sm:$0xff] }
 0x1c4   : > { %v6066_v26 = vpop.eup %4665  ;;  %4685 = vrcp.f32 %v1405_v36  ;;  %v2384_v23 = vadd.f32 %v4338_v42, %v1587_v46  ;;  %v3828_v33 = vmul.f32 -1.442695, %v6017_v22  ;;  %v3826_v0 = vmul.f32 -1.442695, %v6034_v14  ;;  %3967 = vmatprep.mubr.msk.bf16.mxu0 %vm6060_vm8, %v6692_v59 }
 0x1c5   : > { %v6077_v56 = vpop.eup %4667  ;;  %v2376_v35 = vadd.f32 %v2375_v39, %v1585_v27  ;;  %v3829_v38 = vmul.f32 -1.442695, %v6052_v24  ;;  %vm2581_vm10 = vcmp.eq.s32.totalorder %v6003_v52, %v5834_v62  ;;  %vm2585_vm13 = vcmp.eq.s32.totalorder %v6003_v52, %v5838_v9 }
 0x1c6   : > { %v6084_v28 = vpop.eup %4669  ;;  %v2521_v30 = vmax.f32 %v2381_v47, 0.0  ;;  %v2522_v25 = vmax.f32 %v2384_v23, 0.0  ;;  %vm2590_vm14 = vcmp.eq.s32.totalorder %v6717_v15, %v5873_v20  ;;  %vm2594_vm2 = vcmp.eq.s32.totalorder %v6717_v15, %v5880_v58  ;;  %vm6118_vm4 = vmpackc.low %vm2585_vm13, %vm2581_vm10  ;;  %v6737_v23 = vld [vmem:[#allocation14_spill] sm:$0xff] }
 0x1c7   : > { %v6091_v54 = vpop.eup %4671  ;;  %v2519_v36 = vmax.f32 %v2373_v48, 0.0  ;;  %v2520_v43 = vmax.f32 %v2376_v35, 0.0  ;;  %v3827_v1 = vmul.f32 -1.442695, %v6072_v40  ;;  %v6102_v10 = vadd.f32 %v5924_v4, %v6729_v21  ;;  %v6734_v48 = vld [vmem:[#allocation11_spill] sm:$0xff]  ;;  %vm6134_vm0 = vmpackc.low %vm2594_vm2, %vm2590_vm14 }
 0x1c8   : > { %v6097_v53 = vpop.eup %4673  ;;  %v6104_v63 = vpack.c.bf16 %v2522_v25, %v2521_v30  ;;  %v1590_v8 = vmul.f32 %v6005_v50, %v6730_v7  ;;  %4687 = vpow2.f32 %v3828_v33  ;;  %v6110_v47 = vadd.f32 %v5924_v4, %v6731_v11  ;;  %v4341_v50 = vpop.f32.mrb[40].mxu1  ;;  %v6738_v35 = vld [vmem:[#allocation15_spill] sm:$0xff]  ;;  %v6739_v7 = vld [vmem:[#allocation34_spill] sm:$0xff] }
 0x1c9   : > { %v6122_v16 = vpop.eup %4675  ;;  %v6124_v46 = vpack.c.bf16 %v2520_v43, %v2519_v36  ;;  %v1588_v42 = vmul.f32 %v6010_v29, %v6734_v48  ;;  %4689 = vpow2.f32 %v3826_v0  ;;  %v1410_v41 = vadd.f32 1.0, %v4662_v5  ;;  %v2388_v57 = vpop.f32.mrb[41].mxu1 }
 0x1ca   : > { %v4678_v9 = vpop.eup %4677  ;;  %v2397_v27 = vadd.f32 %v4341_v50, %v1590_v8  ;;  %v1591_v39 = vmul.f32 %v6023_v49, %v6737_v23  ;;  %4691 = vpow2.f32 %v3829_v38  ;;  %v4342_v0 = vpop.f32.mrb[42].mxu1  ;;  %v1589_v30 = vmul.f32 %v4664_v18, %v6738_v35  ;;  %v6740_v38 = vld [vmem:[#allocation36_spill] sm:$0xff] }
 0x1cb   : > { %v4680_v29 = vpop.eup %4679  ;;  %v2389_v33 = vadd.f32 %v2388_v57, %v1588_v42  ;;  %4693 = vpow2.f32 %v3827_v1  ;;  %v3832_v25 = vmul.f32 -1.442695, %v6102_v10  ;;  %3969 = vmatmul.mubr.msk.bf16.gmra.mrb[68].mxu0 %vm6118_vm4, %v6692_v59  ;;  %v2391_v43 = vpop.f32.mrb[43].mxu1  ;;  %v3830_v21 = vmul.f32 -1.442695, %v6110_v47  ;;  %v6741_v57 = vld [vmem:[#allocation8_spill] sm:$0xff] }
 0x1cc   : > { %v4682_v36 = vpop.eup %4681  ;;  %v2400_v5 = vadd.f32 %v4342_v0, %v1591_v39  ;;  %v6148_v49 = vadd.f32 %v5924_v4, %v6739_v7  ;;  %v6152_v8 = vadd.f32 %v5924_v4, %v6740_v38  ;;  %3971 = vmatprep.mubr.msk.bf16.mxu0 %vm6134_vm0, %v6692_v59  ;;  %v1408_v1 = vadd.f32 1.0, %v4678_v9 }
 0x1cd   : > { %v6157_v18 = vpop.eup %4683  ;;  %v2392_v11 = vadd.f32 %v2391_v43, %v1589_v30  ;;  %vm2589_vm5 = vcmp.eq.s32.totalorder %v6003_v52, %v5873_v20  ;;  %vm2593_vm6 = vcmp.eq.s32.totalorder %v6003_v52, %v5880_v58  ;;  %v2525_v50 = vmax.f32 %v2397_v27, 0.0 }
 0x1ce   : > { %v6163_v19 = vpop.eup %4685  ;;  %v2526_v48 = vmax.f32 %v2400_v5, 0.0  ;;  %vm2598_vm8 = vcmp.eq.s32.totalorder %v6717_v15, %v5902_v37  ;;  %vm2602_vm10 = vcmp.eq.s32.totalorder %v6717_v15, %v5917_v17  ;;  %4695 = vrcp.f32 %v1410_v41  ;;  %vm6177_vm13 = vmpackc.low %vm2593_vm6, %vm2589_vm5 }
 0x1cf   : > { %v1411_v4 = vadd.f32 1.0, %v4680_v29  ;;  %v2523_v42 = vmax.f32 %v2389_v33, 0.0  ;;  %v2524_v62 = vmax.f32 %v2392_v11, 0.0  ;;  %v1594_v23 = vmul.f32 %v6066_v26, %v6741_v57  ;;  %vm6192_vm14 = vmpackc.low %vm2602_vm10, %vm2598_vm8 }
 0x1d0   : > { %v6169_v9 = vpack.c.bf16 %v2526_v48, %v2525_v50  ;;  %4697 = vpow2.f32 %v3832_v25  ;;  %v3833_v58 = vmul.f32 -1.442695, %v6148_v49  ;;  %v4345_v41 = vpop.f32.mrb[44].mxu1  ;;  %v1592_v29 = vmul.f32 %v6077_v56, %v5793_v31 }
 0x1d1   : > { %v6181_v39 = vpack.c.bf16 %v2524_v62, %v2523_v42  ;;  %4699 = vpow2.f32 %v3830_v21  ;;  %v3831_v33 = vmul.f32 -1.442695, %v6152_v8  ;;  %v1409_v0 = vadd.f32 1.0, %v4682_v36  ;;  %v2404_v30 = vpop.f32.mrb[45].mxu1 }
 0x1d2   : > { %v4688_v26 = vpop.eup %4687  ;;  %4701 = vrcp.f32 %v1408_v1  ;;  %v2413_v35 = vadd.f32 %v4345_v41, %v1594_v23  ;;  %v1595_v31 = vmul.f32 %v6084_v28, %v5806_v55  ;;  %v2405_v25 = vadd.f32 %v2404_v30, %v1592_v29  ;;  %v4346_v5 = vpop.f32.mrb[46].mxu1 }
 0x1d3   : > { %v4690_v56 = vpop.eup %4689  ;;  %4703 = vrcp.f32 %v1411_v4  ;;  %v1593_v43 = vmul.f32 %v6091_v54, %v5827_v3  ;;  %3973 = vmatmul.mubr.msk.bf16.gmra.mrb[72].mxu0 %vm6177_vm13, %v6692_v59  ;;  %v2407_v7 = vpop.f32.mrb[47].mxu1  ;;  %vm2597_vm2 = vcmp.eq.s32.totalorder %v6003_v52, %v5902_v37  ;;  %vm2601_vm4 = vcmp.eq.s32.totalorder %v6003_v52, %v5917_v17  ;;  %v6748_v52 = vld [vmem:[#allocation20_spill] sm:$0xff] }
 0x1d4   : > { %v4692_v15 = vpop.eup %4691  ;;  %v2416_v21 = vadd.f32 %v4346_v5, %v1595_v31  ;;  %4705 = vpow2.f32 %v3833_v58  ;;  %3975 = vmatprep.mubr.msk.bf16.mxu0 %vm6192_vm14, %v6692_v59  ;;  %v2529_v3 = vmax.f32 %v2413_v35, 0.0  ;;  %v1414_v36 = vadd.f32 1.0, %v4688_v26  ;;  %vm6214_vm0 = vmpackc.low %vm2601_vm4, %vm2597_vm2 }
 0x1d5   : > { %v4694_v55 = vpop.eup %4693  ;;  %v2408_v28 = vadd.f32 %v2407_v7, %v1593_v43  ;;  %4707 = vpow2.f32 %v3831_v33  ;;  %v2527_v38 = vmax.f32 %v2405_v25, 0.0  ;;  %v1412_v11 = vadd.f32 1.0, %v4690_v56 }
 0x1d6   : > { %4709 = vrcp.f32 %v1409_v0  ;;  %v2530_v54 = vmax.f32 %v2416_v21, 0.0  ;;  %v1598_v48 = vmul.f32 %v6097_v53, %v5850_v13  ;;  %v1415_v42 = vadd.f32 1.0, %v4692_v15 }
 0x1d7   : > { %v2528_v1 = vmax.f32 %v2408_v28, 0.0  ;;  %v1596_v57 = vmul.f32 %v6122_v16, %v6748_v52  ;;  %v1413_v58 = vadd.f32 1.0, %v4694_v55  ;;  %v1599_v29 = vmul.f32 %v6157_v18, %v5892_v34 }
 0x1d8   : > { %v6210_v50 = vpack.c.bf16 %v2530_v54, %v2529_v3  ;;  %v4696_v37 = vpop.eup %4695  ;;  %v4349_v17 = vpop.f32.mrb[48].mxu1  ;;  %4711 = vrcp.f32 %v1414_v36  ;;  %v1597_v20 = vmul.f32 %v6163_v19, %v5928_v61 }
 0x1d9   : > { %v6218_v62 = vpack.c.bf16 %v2528_v1, %v2527_v38  ;;  %v2429_v27 = vadd.f32 %v4349_v17, %v1598_v48  ;;  %v2420_v41 = vpop.f32.mrb[49].mxu1  ;;  %4713 = vrcp.f32 %v1412_v11  ;;  %v1602_v21 = vmul.f32 %v4696_v37, %v5965_v60 }
 0x1da   : > { %v4698_v23 = vpop.eup %4697  ;;  %v2421_v53 = vadd.f32 %v2420_v41, %v1596_v57  ;;  %v4350_v33 = vpop.f32.mrb[50].mxu1  ;;  %4715 = vrcp.f32 %v1415_v42 }
 0x1db   : > { %v4700_v13 = vpop.eup %4699  ;;  %3977 = vmatmul.mubr.msk.bf16.gmra.mrb[76].mxu0 %vm6214_vm0, %v6692_v59  ;;  %v2432_v16 = vadd.f32 %v4350_v33, %v1599_v29  ;;  %v2423_v0 = vpop.f32.mrb[51].mxu1  ;;  %4717 = vrcp.f32 %v1413_v58  ;;  %v2533_v34 = vmax.f32 %v2429_v27, 0.0  ;;  %v1418_v25 = vadd.f32 1.0, %v4698_v23 }
 0x1dc   : > { %v4702_v26 = vpop.eup %4701  ;;  %v2424_v30 = vadd.f32 %v2423_v0, %v1597_v20  ;;  %v2531_v5 = vmax.f32 %v2421_v53, 0.0  ;;  %v1416_v19 = vadd.f32 1.0, %v4700_v13 }
 0x1dd   : > { %v4704_v35 = vpop.eup %4703  ;;  %v2534_v18 = vmax.f32 %v2432_v16, 0.0  ;;  %v1600_v3 = vmul.f32 %v4702_v26, %v5990_v2  ;;  %4719 = vrcp.f32 %v1418_v25 }
 0x1de   : > { %v4706_v31 = vpop.eup %4705  ;;  %v2532_v43 = vmax.f32 %v2424_v30, 0.0  ;;  %v1603_v1 = vmul.f32 %v4704_v35, %v5995_v45  ;;  %4721 = vrcp.f32 %v1416_v19 }
 0x1df   : > { %v4708_v56 = vpop.eup %4707  ;;  %v2718_v15 = vpack.c.bf16 %v2534_v18, %v2533_v34  ;;  %v1419_v7 = vadd.f32 1.0, %v4706_v31 }
 0x1e0   : > { %v4710_v61 = vpop.eup %4709  ;;  %v2717_v55 = vpack.c.bf16 %v2532_v43, %v2531_v5  ;;  %v4353_v28 = vpop.f32.mrb[52].mxu1  ;;  %v1417_v54 = vadd.f32 1.0, %v4708_v56 }
 0x1e1   : > { %v2445_v36 = vadd.f32 %v4353_v28, %v1602_v21  ;;  %v2436_v38 = vpop.f32.mrb[53].mxu1  ;;  %v1601_v4 = vmul.f32 %v4710_v61, %v6000_v12  ;;  %4723 = vrcp.f32 %v1419_v7 }
 0x1e2   : > { %v2437_v11 = vadd.f32 %v2436_v38, %v1600_v3  ;;  %v4354_v48 = vpop.f32.mrb[54].mxu1  ;;  %4155 = vmatprep.subr.bf16.mxu1 %v2717_v55  ;;  %v4712_v60 = vpop.eup %4711  ;;  %4725 = vrcp.f32 %v1417_v54 }
 0x1e3   : > { %v2448_v42 = vadd.f32 %v4354_v48, %v1603_v1  ;;  %v2439_v17 = vpop.f32.mrb[55].mxu1  ;;  %4156 = vmatpush3.bf16.msra.mxu1 %v6046_v44  ;;  %v4714_v2 = vpop.eup %4713  ;;  %v2537_v52 = vmax.f32 %v2445_v36, 0.0  ;;  %v1606_v12 = vmul.f32 %v4712_v60, %v6017_v22 }
 0x1e4   : > { %v2440_v37 = vadd.f32 %v2439_v17, %v1601_v4  ;;  %4157 = vmatprep.subr.bf16.mxu1 %v2718_v15  ;;  %v4716_v45 = vpop.eup %4715  ;;  %v2535_v23 = vmax.f32 %v2437_v11, 0.0  ;;  %v1604_v44 = vmul.f32 %v4714_v2, %v6034_v14 }
 0x1e5   : > { %v2538_v57 = vmax.f32 %v2448_v42, 0.0  ;;  %v4718_v27 = vpop.eup %4717  ;;  %v1607_v20 = vmul.f32 %v4716_v45, %v6052_v24 }
 0x1e6   : > { %v2536_v58 = vmax.f32 %v2440_v37, 0.0  ;;  %v1605_v0 = vmul.f32 %v4718_v27, %v6072_v40 }
 0x1e7   : > { %v2720_v41 = vpack.c.bf16 %v2538_v57, %v2537_v52  ;;  %4158 = vmatpush3.bf16.msra.mxu1 %v6029_v6  ;;  %v4720_v6 = vpop.eup %4719 }
 0x1e8   : > { %v2719_v29 = vpack.c.bf16 %v2536_v58, %v2535_v23  ;;  %v4357_v13 = vpop.f32.mrb[56].mxu1  ;;  %v4722_v22 = vpop.eup %4721  ;;  %v1610_v43 = vmul.f32 %v4720_v6, %v6102_v10 }
 0x1e9   : > { %v2461_v53 = vadd.f32 %v4357_v13, %v1606_v12  ;;  %v2452_v33 = vpop.f32.mrb[57].mxu1  ;;  %v1608_v19 = vmul.f32 %v4722_v22, %v6110_v47  ;;  %v2686_v22 = vld [vmem:[#allocation2 + $0x8] sm:$0xff] }
 0x1ea   : > { %v2453_v26 = vadd.f32 %v2452_v33, %v1604_v44  ;;  %v4358_v16 = vpop.f32.mrb[58].mxu1  ;;  %4159 = vmatprep.subr.bf16.mxu1 %v2719_v29 }
 0x1eb   : > { %v2464_v35 = vadd.f32 %v4358_v16, %v1607_v20  ;;  %v2455_v30 = vpop.f32.mrb[59].mxu1  ;;  %4160 = vmatpush3.bf16.msra.mxu1 %v6124_v46  ;;  %v2541_v34 = vmax.f32 %v2461_v53, 0.0  ;;  %v4724_v14 = vpop.eup %4723 }
 0x1ec   : > { %v2456_v31 = vadd.f32 %v2455_v30, %v1605_v0  ;;  %4161 = vmatprep.subr.bf16.mxu1 %v2720_v41  ;;  %v2539_v56 = vmax.f32 %v2453_v26, 0.0  ;;  %v4726_v5 = vpop.eup %4725  ;;  %v1611_v21 = vmul.f32 %v4724_v14, %v6148_v49 }
 0x1ed   : > { %v2542_v18 = vmax.f32 %v2464_v35, 0.0  ;;  %v1609_v28 = vmul.f32 %v4726_v5, %v6152_v8  ;;  %v2685_v35 = vld [vmem:[#allocation2] sm:$0xff] }
 0x1ee   : > { %v2540_v25 = vmax.f32 %v2456_v31, 0.0 }
 0x1ef   : > { %v2722_v24 = vpack.c.bf16 %v2542_v18, %v2541_v34  ;;  %4162 = vmatpush3.bf16.msra.mxu1 %v6104_v63 }
 0x1f0   : > { %v2721_v40 = vpack.c.bf16 %v2540_v25, %v2539_v56  ;;  %v4361_v61 = vpop.f32.mrb[60].mxu1 }
 0x1f1   : > { %v2477_v46 = vadd.f32 %v4361_v61, %v1610_v43  ;;  %v2468_v15 = vpop.f32.mrb[61].mxu1  ;;  %v2687_v43 = vld [vmem:[#allocation2 + $0x10] sm:$0xff] }
 0x1f2   : > { %v2469_v7 = vadd.f32 %v2468_v15, %v1608_v19  ;;  %v4362_v55 = vpop.f32.mrb[62].mxu1  ;;  %4163 = vmatprep.subr.bf16.mxu1 %v2721_v40 }
 0x1f3   : > { %v2480_v3 = vadd.f32 %v4362_v55, %v1611_v21  ;;  %v2471_v54 = vpop.f32.mrb[63].mxu1  ;;  %4164 = vmatpush3.bf16.msra.mxu1 %v6181_v39  ;;  %v2545_v10 = vmax.f32 %v2477_v46, 0.0  ;;  %v2688_v46 = vld [vmem:[#allocation2 + $0x18] sm:$0xff] }
 0x1f4   : > { %v2472_v63 = vadd.f32 %v2471_v54, %v1609_v28  ;;  %4165 = vmatprep.subr.bf16.mxu1 %v2722_v24  ;;  %v2543_v38 = vmax.f32 %v2469_v7, 0.0 }
 0x1f5   : > { %v2546_v36 = vmax.f32 %v2480_v3, 0.0 }
 0x1f6   : > { %v2544_v1 = vmax.f32 %v2472_v63, 0.0  ;;  %v2689_v63 = vld [vmem:[#allocation2 + $0x20] sm:$0xff] }
 0x1f7   : > { %v2724_v47 = vpack.c.bf16 %v2546_v36, %v2545_v10  ;;  %4166 = vmatpush3.bf16.msra.mxu1 %v6169_v9 }
 0x1f8   : > { %v2723_v11 = vpack.c.bf16 %v2544_v1, %v2543_v38  ;;  %v2690_v1 = vld [vmem:[#allocation2 + $0x28] sm:$0xff] }
 0x1fa   : > { %4167 = vmatprep.subr.bf16.mxu1 %v2723_v11 }
 0x1fb   : > { %4168 = vmatpush3.bf16.msra.mxu1 %v6218_v62 }
 0x1fc   : > { %4169 = vmatprep.subr.bf16.mxu1 %v2724_v47 }
 0x1ff   : > { %4170 = vmatpush3.bf16.msra.mxu1 %v6210_v50 }
 0x202   : > { %3981 = vmatmul.mubr.msk.bf16.vlgmr.msra.gmra.mrb[64].mxu1 %vm5829_vm12, %v6692_v59 }
 0x203   : > { %3983 = vmatprep.mubr.msk.bf16.mxu1 %vm5868_vm15, %v6692_v59 }
 0x20a   : > { %3985 = vmatmul.mubr.msk.bf16.gmra.mrb[68].mxu1 %vm5883_vm3, %v6692_v59  ;;  %vm3339_vm3 = vcmask (!%p3994_p6), 31744  }
 0x20b   : > { %3987 = vmatprep.mubr.msk.bf16.mxu1 %vm5912_vm7, %v6692_v59 }
 0x212   : > { %3989 = vmatmul.mubr.msk.bf16.gmra.mrb[72].mxu1 %vm5943_vm9, %v6692_v59 }
 0x213   : > { %3991 = vmatprep.mubr.msk.bf16.mxu1 %vm5954_vm11, %v6692_v59 }
 0x21a   : > { %3993 = vmatmul.mubr.msk.bf16.gmra.mrb[76].mxu1 %vm5970_vm1, %v6692_v59 }
 0x296   : > { %v4131_v62 = vpop.f32.mrb[64].mxu0 }
 0x297   : > { %v4132_v48 = vpop.f32.mrb[65].mxu0 }
 0x298   : > { %v4133_v4 = vadd.f32 %v4132_v48, %v4131_v62  ;;  %v4134_v42 = vpop.f32.mrb[66].mxu0  ;;  %v2691_v62 = vld [vmem:[#allocation2 + $0x30] sm:$0xff] }
 0x299   : > { %v4135_v17 = vpop.f32.mrb[67].mxu0 }
 0x29a   : > { %v4136_v60 = vadd.f32 %v4135_v17, %v4134_v42  ;;  %v2692_v17 = vld [vmem:[#allocation2 + $0x38] sm:$0xff] }
 0x29e   : > { %v4137_v37 = vpop.f32.mrb[68].mxu0 }
 0x29f   : > { %v4138_v2 = vpop.f32.mrb[69].mxu0 }
 0x2a0   : > { %v4139_v52 = vadd.f32 %v4138_v2, %v4137_v37  ;;  %v4140_v57 = vpop.f32.mrb[70].mxu0 }
 0x2a1   : > { %v4141_v32 = vpop.f32.mrb[71].mxu0 }
 0x2a2   : > { %v4142_v45 = vadd.f32 %v4141_v32, %v4140_v57  ;;  %v4731_v57 = vld [vmem:[%s6602_s7 + $0x8] sm:$0xff] (!%p3994_p6)   ;;  %v4732_v32 = vld [vmem:[%s6602_s7 + $0x10] sm:$0xff] (!%p3994_p6)  }
 0x2a6   : > { %v4143_v23 = vpop.f32.mrb[72].mxu0 }
 0x2a7   : > { %v4144_v58 = vpop.f32.mrb[73].mxu0 }
 0x2a8   : > { %v4145_v27 = vadd.f32 %v4144_v58, %v4143_v23  ;;  %v4146_v41 = vpop.f32.mrb[74].mxu0 }
 0x2a9   : > { %v4147_v12 = vpop.f32.mrb[75].mxu0 }
 0x2aa   : > { %v4148_v29 = vadd.f32 %v4147_v12, %v4146_v41  ;;  %v4734_v41 = vld [vmem:[%s6602_s7 + $0x20] sm:$0xff] (!%p3994_p6)   ;;  %v4735_v12 = vld [vmem:[%s6602_s7 + $0x28] sm:$0xff] (!%p3994_p6)  }
 0x2ae   : > { %v4149_v51 = vpop.f32.mrb[76].mxu0 }
 0x2af   : > { %v4150_v59 = vpop.f32.mrb[77].mxu0 }
 0x2b0   : > { %v4151_v13 = vadd.f32 %v4150_v59, %v4149_v51  ;;  %v4152_v44 = vpop.f32.mrb[78].mxu0  ;;  %v4737_v51 = vld [vmem:[%s6602_s7 + $0x38] sm:$0xff] (!%p3994_p6)  }
 0x2b1   : > { %v4153_v53 = vpop.f32.mrb[79].mxu0 }
 0x2b2   : > { %v4154_v33 = vadd.f32 %v4153_v53, %v4152_v44 }
 0x2d5   : > { %v4171_v20 = vpop.f32.mrb[64].mxu1 }
 0x2d6   : > { %v4172_v26 = vpop.f32.mrb[65].mxu1 }
 0x2d7   : > { %v4173_v16 = vadd.f32 %v4172_v26, %v4171_v20  ;;  %v4174_v0 = vpop.f32.mrb[66].mxu1 }
 0x2d8   : > { %v4175_v30 = vpop.f32.mrb[67].mxu1 }
 0x2d9   : > { %v2825_v6 = vadd.f32 %v4173_v16, %v4133_v4  ;;  %v4176_v31 = vadd.f32 %v4175_v30, %v4174_v0  ;;  %v4739_v30 = vld [vmem:[%s6604_s9 + $0x8] sm:$0xff] (!%p3994_p6)  }
 0x2db   : > { %v2855_v34 = vadd.f32 %v2825_v6, %v2685_v35  ;;  %v2828_v18 = vadd.f32 %v4176_v31, %v4136_v60  ;;  %v4738_v35 = vld [vmem:[%s6604_s9] sm:$0xff] (!%p3994_p6)   ;;  %v4740_v6 = vld [vmem:[%s6604_s9 + $0x10] sm:$0xff] (!%p3994_p6)   ;;  %v4741_v31 = vld [vmem:[%s6604_s9 + $0x18] sm:$0xff] (!%p3994_p6)  }
 0x2dc   : > { %4387 = vmatprep.subr.bf16.mxu1 (!%p3994_p6), %v4738_v35 }
 0x2dd   : > { %2863 = vst [vmem:[#allocation2] sm:$0xff] %v2855_v34  ;;  %v2856_v14 = vadd.f32 %v2828_v18, %v2686_v22  ;;  %v4177_v56 = vpop.f32.mrb[68].mxu1  ;;  %4388 = vmatpush3.bf16.msra.mxu1 (!%p3994_p6), %v4738_v35  ;;  %v4742_v22 = vld [vmem:[%s6604_s9 + $0x20] sm:$0xff] (!%p3994_p6)   ;;  %v4743_v34 = vld [vmem:[%s6604_s9 + $0x28] sm:$0xff] (!%p3994_p6)   ;;  %v4744_v18 = vld [vmem:[%s6604_s9 + $0x30] sm:$0xff] (!%p3994_p6)  }
 0x2de   : > { %v4178_v25 = vpop.f32.mrb[69].mxu1  ;;  %4389 = vmatprep.subr.bf16.mxu1 (!%p3994_p6), %v4739_v30 }
 0x2df   : > { %2864 = vst [vmem:[#allocation2 + $0x8] sm:$0xff] %v2856_v14  ;;  %v4179_v5 = vadd.f32 %v4178_v25, %v4177_v56  ;;  %v4180_v24 = vpop.f32.mrb[70].mxu1  ;;  %v4745_v14 = vld [vmem:[%s6604_s9 + $0x38] sm:$0xff] (!%p3994_p6)   ;;  %v3283_v56 = vld [vmem:[%s6596_s1] sm:$0xff] (!%p3994_p6)  ;;  %v3285_v25 = vld [vmem:[%s6596_s1 + $0x10] sm:$0xff] (!%p3994_p6) }
 0x2e0   : > { %v4181_v40 = vpop.f32.mrb[71].mxu1 }
 0x2e1   : > { %v2833_v61 = vadd.f32 %v4179_v5, %v4139_v52  ;;  %v4182_v19 = vadd.f32 %v4181_v40, %v4180_v24  ;;  %v4730_v52 = vld [vmem:[%s6602_s7] sm:$0xff] (!%p3994_p6)   ;;  %4390 = vmatpush3.bf16.msra.mxu1 (!%p3994_p6), %v4739_v30  ;;  %v4869_v5 = vmov (!%p3994_p6), 0   ;;  %v3284_v24 = vld [vmem:[%s6596_s1 + $0x8] sm:$0xff] (!%p3994_p6) }
 0x2e2   : > { %4363 = vmatprep.subr.bf16.mxu0 (!%p3994_p6), %v4730_v52  ;;  %4391 = vmatprep.subr.bf16.mxu1 (!%p3994_p6), %v4740_v6  ;;  %v3287_v40 = vld [vmem:[%s6596_s1 + $0x20] sm:$0xff] (!%p3994_p6) }
 0x2e3   : > { %v2857_v15 = vadd.f32 %v2833_v61, %v2687_v43  ;;  %v2836_v21 = vadd.f32 %v4182_v19, %v4142_v45  ;;  %4364 = vmatpush3.bf16.msra.mxu0 (!%p3994_p6), %v4730_v52  ;;  %v4733_v45 = vld [vmem:[%s6602_s7 + $0x18] sm:$0xff] (!%p3994_p6)   ;;  %4728 = vset.pattern.permute.xlu0 (!%p3994_p6), %v4869_v5  ;;  %v3288_v61 = vld [vmem:[%s6596_s1 + $0x28] sm:$0xff] (!%p3994_p6)  ;;  %v3289_v19 = vld [vmem:[%s6596_s1 + $0x30] sm:$0xff] (!%p3994_p6) }
 0x2e4   : > { %4365 = vmatprep.subr.bf16.mxu0 (!%p3994_p6), %v4731_v57  ;;  %v2883_v23 = vld [vmem:[#allocation2] sm:$0xff] (!%p3994_p6)  ;;  %4729 = vset.pattern.permute.xlu1 (!%p3994_p6), %v4869_v5  ;;  %v3286_v43 = vld [vmem:[%s6596_s1 + $0x18] sm:$0xff] (!%p3994_p6) }
 0x2e5   : > { %2865 = vst [vmem:[#allocation2 + $0x10] sm:$0xff] %v2857_v15  ;;  %v2858_v7 = vadd.f32 %v2836_v21, %v2688_v46  ;;  %v4183_v55 = vpop.f32.mrb[72].mxu1  ;;  %4392 = vmatpush3.bf16.msra.mxu1 (!%p3994_p6), %v4740_v6  ;;  %3292 = vperm.xlu0 (!%p3994_p6), %4728, %v3283_v56   ;;  %v3995_v46 = vld [vmem:[%s6603_s8] ss:$0 sm:$0xff] (!%p3994_p6) }
 0x2e6   : > { %v4184_v28 = vpop.f32.mrb[73].mxu1  ;;  %v2884_v58 = vld [vmem:[#allocation2 + $0x8] sm:$0xff] (!%p3994_p6)  ;;  %4393 = vmatprep.subr.bf16.mxu1 (!%p3994_p6), %v4741_v31  ;;  %3298 = vperm.xlu1 (!%p3994_p6), %4729, %v3285_v25  }
 0x2e7   : > { %2866 = vst [vmem:[#allocation2 + $0x18] sm:$0xff] %v2858_v7  ;;  %v4185_v3 = vadd.f32 %v4184_v28, %v4183_v55  ;;  %v4186_v54 = vpop.f32.mrb[74].mxu1  ;;  %4366 = vmatpush3.bf16.msra.mxu0 (!%p3994_p6), %v4731_v57 }
 0x2e8   : > { %v4187_v10 = vpop.f32.mrb[75].mxu1  ;;  %4367 = vmatprep.subr.bf16.mxu0 (!%p3994_p6), %v4732_v32 }
 0x2e9   : > { %v2841_v36 = vadd.f32 %v4185_v3, %v4145_v27  ;;  %v4188_v38 = vadd.f32 %v4187_v10, %v4186_v54  ;;  %v2891_v27 = vpack.c.bf16 (!%p3994_p6), %v2884_v58, %v2883_v23  ;;  %4394 = vmatpush3.bf16.msra.mxu1 (!%p3994_p6), %v4741_v31  ;;  %3295 = vperm.xlu0 (!%p3994_p6), %4728, %v3284_v24  }
 0x2ea   : > { %4395 = vmatprep.subr.bf16.mxu1 (!%p3994_p6), %v4742_v22  ;;  %3301 = vperm.xlu1 (!%p3994_p6), %4729, %v3286_v43  }
 0x2eb   : > { %v2859_v47 = vadd.f32 %v2841_v36, %v2689_v63  ;;  %v2844_v11 = vadd.f32 %v4188_v38, %v4148_v29  ;;  %4368 = vmatpush3.bf16.msra.mxu0 (!%p3994_p6), %v4732_v32  ;;  %4379 = vmatprep.mubr.bf16.mxu0 (!%p3994_p6), %v2891_v27  ;;  %v4736_v29 = vld [vmem:[%s6602_s7 + $0x30] sm:$0xff] (!%p3994_p6)  }
 0x2ec   : > { %4369 = vmatprep.subr.bf16.mxu0 (!%p3994_p6), %v4733_v45  ;;  %v2885_v59 = vld [vmem:[#allocation2 + $0x10] sm:$0xff] (!%p3994_p6) }
 0x2ed   : > { %2867 = vst [vmem:[#allocation2 + $0x20] sm:$0xff] %v2859_v47  ;;  %v2860_v49 = vadd.f32 %v2844_v11, %v2690_v1  ;;  %v4189_v8 = vpop.f32.mrb[76].mxu1  ;;  %4396 = vmatpush3.bf16.msra.mxu1 (!%p3994_p6), %v4742_v22  ;;  %3304 = vperm.xlu0 (!%p3994_p6), %4728, %v3287_v40   ;;  %v6346_v40 = vld [vmem:[%s6605_s10] ss:$0 sm:$0xff] (!%p3994_p6) }
 0x2ee   : > { %v4190_v39 = vpop.f32.mrb[77].mxu1  ;;  %4397 = vmatprep.subr.bf16.mxu1 (!%p3994_p6), %v4743_v34  ;;  %3307 = vperm.xlu1 (!%p3994_p6), %4729, %v3288_v61  }
 0x2ef   : > { %2868 = vst [vmem:[#allocation2 + $0x28] sm:$0xff] %v2860_v49  ;;  %v4191_v9 = vadd.f32 %v4190_v39, %v4189_v8  ;;  %v4192_v50 = vpop.f32.mrb[78].mxu1  ;;  %4370 = vmatpush3.bf16.msra.mxu0 (!%p3994_p6), %v4733_v45 }
 0x2f0   : > { %v4193_v48 = vpop.f32.mrb[79].mxu1  ;;  %4371 = vmatprep.subr.bf16.mxu0 (!%p3994_p6), %v4734_v41 }
 0x2f1   : > { %v2849_v4 = vadd.f32 %v4191_v9, %v4151_v13  ;;  %v4194_v42 = vadd.f32 %v4193_v48, %v4192_v50  ;;  %2874 = sbr.rel (%p3994_p6) target bundleno = 1992 (0x7c8), region = 80  ;;  %v2886_v13 = vld [vmem:[#allocation2 + $0x18] sm:$0xff] (!%p3994_p6)  ;;  %4398 = vmatpush3.bf16.msra.mxu1 (!%p3994_p6), %v4743_v34  ;;  %3310 = vperm.xlu0 (!%p3994_p6), %4728, %v3289_v19  }
 0x2f2   : > { %4399 = vmatprep.subr.bf16.mxu1 (!%p3994_p6), %v4744_v18 }
 0x2f3   : > { %v2861_v60 = vadd.f32 %v2849_v4, %v2691_v62  ;;  %v2852_v37 = vadd.f32 %v4194_v42, %v4154_v33  ;;  %4372 = vmatpush3.bf16.msra.mxu0 (!%p3994_p6), %v4734_v41  ;;  %v2892_v33 = vpack.c.bf16 (!%p3994_p6), %v2886_v13, %v2885_v59 }
 0x2f4   : > { %4373 = vmatprep.subr.bf16.mxu0 (!%p3994_p6), %v4735_v12  ;;  %v2887_v44 = vld [vmem:[#allocation2 + $0x20] sm:$0xff] (!%p3994_p6) }
 0x2f5   : > { %2869 = vst [vmem:[#allocation2 + $0x30] sm:$0xff] %v2861_v60  ;;  %v2862_v2 = vadd.f32 %v2852_v37, %v2692_v17  ;;  %4400 = vmatpush3.bf16.msra.mxu1 (!%p3994_p6), %v4744_v18 }
 0x2f6   : > { %v2888_v53 = vld [vmem:[#allocation2 + $0x28] sm:$0xff] (!%p3994_p6)  ;;  %4401 = vmatprep.subr.bf16.mxu1 (!%p3994_p6), %v4745_v14 }
 0x2f7   : > { %2870 = vst [vmem:[#allocation2 + $0x38] sm:$0xff] %v2862_v2  ;;  %4374 = vmatpush3.bf16.msra.mxu0 (!%p3994_p6), %v4735_v12  ;;  %v2893_v20 = vpack.c.bf16 (!%p3994_p6), %v2888_v53, %v2887_v44 }
 0x2f8   : > { %4375 = vmatprep.subr.bf16.mxu0 %v4736_v29 }
 0x2f9   : > { %4402 = vmatpush3.bf16.msra.mxu1 %v4745_v14 }
 0x2fb   : > { %4376 = vmatpush3.bf16.msra.mxu0 %v4736_v29 }
 0x2fc   : > { %4377 = vmatprep.subr.bf16.mxu0 %v4737_v51  ;;  %v2889_v26 = vld [vmem:[#allocation2 + $0x30] sm:$0xff] }
 0x2fe   : > { %v2890_v16 = vld [vmem:[#allocation2 + $0x38] sm:$0xff] }
 0x2ff   : > { %4378 = vmatpush3.bf16.msra.mxu0 %v4737_v51  ;;  %v2894_v0 = vpack.c.bf16 %v2890_v16, %v2889_v26 }
 0x302   : > { %4380 = vmatmul.mubr.bf16.vlgmr.msra.gmra.mrb[0].mxu0 %v2892_v33 }
 0x303   : > { %4383 = vmatprep.mubr.bf16.mxu0 %v2893_v20 }
 0x30a   : > { %4384 = vmatmul.mubr.bf16.gmra.mrb[4].mxu0 %v2894_v0 }
 0x3d5   : > { %v4381_v15 = vpop.f32.mrb[0].mxu0 }
 0x3d6   : > { %v3009_v21 = vadd.f32 %v4381_v15, %v3995_v46  ;;  %v3000_v7 = vpop.f32.mrb[1].mxu0 }
 0x3d7   : > { %v3001_v55 = vadd.f32 %v3995_v46, %v3000_v7  ;;  %v4382_v28 = vpop.f32.mrb[2].mxu0 }
 0x3d8   : > { %v4006_v3 = vmul.f32 -1.442695, %v3009_v21  ;;  %v3012_v54 = vadd.f32 %v4382_v28, %v3995_v46  ;;  %v3003_v63 = vpop.f32.mrb[3].mxu0 }
 0x3d9   : > { %v4004_v10 = vmul.f32 -1.442695, %v3001_v55  ;;  %v3004_v36 = vadd.f32 %v3995_v46, %v3003_v63 }
 0x3da   : > { %4746 = vpow2.f32 %v4006_v3  ;;  %v4007_v38 = vmul.f32 -1.442695, %v3012_v54 }
 0x3db   : > { %4748 = vpow2.f32 %v4004_v10  ;;  %v4005_v1 = vmul.f32 -1.442695, %v3004_v36 }
 0x3dc   : > { %4750 = vpow2.f32 %v4007_v38 }
 0x3dd   : > { %4752 = vpow2.f32 %v4005_v1  ;;  %v4385_v47 = vpop.f32.mrb[4].mxu0 }
 0x3de   : > { %v3025_v11 = vadd.f32 %v4385_v47, %v3995_v46  ;;  %v3016_v49 = vpop.f32.mrb[5].mxu0 }
 0x3df   : > { %v3017_v8 = vadd.f32 %v3995_v46, %v3016_v49  ;;  %v4386_v39 = vpop.f32.mrb[6].mxu0 }
 0x3e0   : > { %v4010_v9 = vmul.f32 -1.442695, %v3025_v11  ;;  %v3028_v50 = vadd.f32 %v4386_v39, %v3995_v46  ;;  %v3019_v62 = vpop.f32.mrb[7].mxu0 }
 0x3e1   : > { %v4008_v48 = vmul.f32 -1.442695, %v3017_v8  ;;  %v3020_v4 = vadd.f32 %v3995_v46, %v3019_v62 }
 0x3e2   : > { %4754 = vpow2.f32 %v4010_v9  ;;  %v4011_v42 = vmul.f32 -1.442695, %v3028_v50 }
 0x3e3   : > { %4756 = vpow2.f32 %v4008_v48  ;;  %v4009_v17 = vmul.f32 -1.442695, %v3020_v4 }
 0x3e4   : > { %v4747_v60 = vpop.eup %4746  ;;  %4758 = vpow2.f32 %v4011_v42 }
 0x3e5   : > { %v4749_v37 = vpop.eup %4748  ;;  %v3057_v2 = vadd.f32 1.0, %v4747_v60  ;;  %4760 = vpow2.f32 %v4009_v17 }
 0x3e6   : > { %v4751_v52 = vpop.eup %4750  ;;  %v3055_v57 = vadd.f32 1.0, %v4749_v37 }
 0x3e7   : > { %v4753_v32 = vpop.eup %4752  ;;  %4762 = vrcp.f32 %v3057_v2  ;;  %v3058_v45 = vadd.f32 1.0, %v4751_v52 }
 0x3e8   : > { %4764 = vrcp.f32 %v3055_v57  ;;  %v3056_v23 = vadd.f32 1.0, %v4753_v32 }
 0x3e9   : > { %4766 = vrcp.f32 %v3058_v45 }
 0x3ea   : > { %4768 = vrcp.f32 %v3056_v23 }
 0x3ec   : > { %v4755_v58 = vpop.eup %4754 }
 0x3ed   : > { %v4757_v27 = vpop.eup %4756  ;;  %v3061_v41 = vadd.f32 1.0, %v4755_v58 }
 0x3ee   : > { %v4759_v12 = vpop.eup %4758  ;;  %v3059_v29 = vadd.f32 1.0, %v4757_v27 }
 0x3ef   : > { %v4761_v51 = vpop.eup %4760  ;;  %4770 = vrcp.f32 %v3061_v41  ;;  %v3062_v59 = vadd.f32 1.0, %v4759_v12 }
 0x3f0   : > { %4772 = vrcp.f32 %v3059_v29  ;;  %v3060_v13 = vadd.f32 1.0, %v4761_v51 }
 0x3f1   : > { %v4763_v44 = vpop.eup %4762  ;;  %4774 = vrcp.f32 %v3062_v59 }
 0x3f2   : > { %v4765_v53 = vpop.eup %4764  ;;  %4776 = vrcp.f32 %v3060_v13  ;;  %v3081_v26 = vmul.f32 %v4763_v44, %v3009_v21 }
 0x3f3   : > { %v4767_v33 = vpop.eup %4766  ;;  %v3079_v0 = vmul.f32 %v4765_v53, %v3001_v55 }
 0x3f4   : > { %v4769_v20 = vpop.eup %4768  ;;  %v3082_v16 = vmul.f32 %v4767_v33, %v3012_v54 }
 0x3f5   : > { %v3080_v35 = vmul.f32 %v4769_v20, %v3004_v36 }
 0x3f6   : > { %v3088_v30 = vpack.c.bf16 %v3082_v16, %v3081_v26 }
 0x3f7   : > { %v3087_v6 = vpack.c.bf16 %v3080_v35, %v3079_v0 }
 0x3f9   : > { %v4771_v31 = vpop.eup %4770  ;;  %4403 = vmatprep.mubr.bf16.mxu1 %v3087_v6 }
 0x3fa   : > { %v4773_v22 = vpop.eup %4772  ;;  %v3085_v34 = vmul.f32 %v4771_v31, %v3025_v11  ;;  %4404 = vmatmul.mubr.bf16.vlgmr.msra.gmra.mrb[0].mxu1 %v3088_v30  ;;  %v3290_v30 = vld [vmem:[%s6596_s1 + $0x38] sm:$0xff] }
 0x3fb   : > { %v4775_v18 = vpop.eup %4774  ;;  %v3083_v14 = vmul.f32 %v4773_v22, %v3017_v8 }
 0x3fc   : > { %v4777_v56 = vpop.eup %4776  ;;  %v3086_v25 = vmul.f32 %v4775_v18, %v3028_v50 }
 0x3fd   : > { %v3084_v5 = vmul.f32 %v4777_v56, %v3020_v4  ;;  %v3299_v56 = vpop.permute.xlu1 %3298 }
 0x3fe   : > { %v3090_v24 = vpack.c.bf16 %v3086_v25, %v3085_v34 }
 0x3ff   : > { %v3089_v43 = vpack.c.bf16 %v3084_v5, %v3083_v14  ;;  %v3293_v14 = vpop.permute.xlu0 %3292 }
 0x401   : > { %4407 = vmatprep.mubr.bf16.mxu1 %v3089_v43  ;;  %v3302_v5 = vpop.permute.xlu1 %3301  ;;  %v4870_v43 = vmov 0.0  }
 0x402   : > { %4408 = vmatmul.mubr.bf16.gmra.mrb[4].mxu1 %v3090_v24  ;;  %v6754_v24 = vld [vmem:[#allocation7_spill] sm:$0xff] }
 0x403   : > { %v3296_v25 = vpop.permute.xlu0 %3295  ;;  %vm3315_vm12 = vcmp.eq.s32.totalorder %v3293_v14, %v6754_v24  ;;  %vm3317_vm7 = vcmp.eq.s32.totalorder %v3299_v56, %v6754_v24  ;;  %vm3318_vm9 = vcmp.eq.s32.totalorder %v3302_v5, %v6754_v24 }
 0x404   : > { %vm3316_vm15 = vcmp.eq.s32.totalorder %v3296_v25, %v6754_v24 }
 0x4cd   : > { %v4405_v61 = vpop.f32.mrb[0].mxu1 }
 0x4ce   : > { %v3205_v19 = vadd.f32 %v4405_v61, %v6346_v40  ;;  %v3196_v46 = vpop.f32.mrb[1].mxu1  ;;  %v6387_v61 = vsel %vm3316_vm15, 1.0, %v4870_v43 }
 0x4cf   : > { %v3197_v15 = vadd.f32 %v6346_v40, %v3196_v46  ;;  %v4406_v21 = vpop.f32.mrb[2].mxu1 }
 0x4d0   : > { %v4023_v7 = vmul.f32 -1.442695, %v3205_v19  ;;  %v3208_v55 = vadd.f32 %v4406_v21, %v6346_v40  ;;  %v3199_v28 = vpop.f32.mrb[3].mxu1  ;;  %v6394_v21 = vsel %vm3317_vm7, 1.0, %v4870_v43 }
 0x4d1   : > { %v4021_v3 = vmul.f32 -1.442695, %v3197_v15  ;;  %v3200_v54 = vadd.f32 %v6346_v40, %v3199_v28  ;;  %v3305_v28 = vpop.permute.xlu0 %3304 }
 0x4d2   : > { %4778 = vpow2.f32 %v4023_v7  ;;  %v4024_v63 = vmul.f32 -1.442695, %v3208_v55  ;;  %vm3319_vm11 = vcmp.eq.s32.totalorder %v3305_v28, %v6754_v24 }
 0x4d3   : > { %4780 = vpow2.f32 %v4021_v3  ;;  %v4022_v10 = vmul.f32 -1.442695, %v3200_v54  ;;  %v3343_v3 = vsel %vm3339_vm3, %v6394_v21, 0.0 }
 0x4d4   : > { %4782 = vpow2.f32 %v4024_v63 }
 0x4d5   : > { %4784 = vpow2.f32 %v4022_v10  ;;  %v4409_v36 = vpop.f32.mrb[4].mxu1 }
 0x4d6   : > { %v3221_v38 = vadd.f32 %v4409_v36, %v6346_v40  ;;  %v3212_v1 = vpop.f32.mrb[5].mxu1 }
 0x4d7   : > { %v4410_v47 = vpop.f32.mrb[6].mxu1  ;;  %v3213_v35 = vadd.f32 %v6346_v40, %v3212_v1 }
 0x4d8   : > { %v4027_v11 = vmul.f32 -1.442695, %v3221_v38  ;;  %v3224_v49 = vadd.f32 %v4410_v47, %v6346_v40  ;;  %v3215_v8 = vpop.f32.mrb[7].mxu1  ;;  %v3311_v47 = vpop.permute.xlu0 %3310 }
 0x4d9   : > { %v3216_v39 = vadd.f32 %v6346_v40, %v3215_v8  ;;  %v4025_v6 = vmul.f32 -1.442695, %v3213_v35  ;;  %v6385_v40 = vsel %vm3315_vm12, 1.0, %v4870_v43  ;;  %vm3321_vm5 = vcmp.eq.s32.totalorder %v3311_v47, %v6754_v24 }
 0x4da   : > { %4786 = vpow2.f32 %v4027_v11  ;;  %v4028_v9 = vmul.f32 -1.442695, %v3224_v49  ;;  %v3340_v46 = vsel %vm3339_vm3, %v6385_v40, 0.0 }
 0x4db   : > { %v4026_v50 = vmul.f32 -1.442695, %v3216_v39 }
 0x4dc   : > { %v4779_v62 = vpop.eup %4778  ;;  %4788 = vpow2.f32 %v4028_v9 }
 0x4dd   : > { %v4781_v48 = vpop.eup %4780  ;;  %v3253_v4 = vadd.f32 1.0, %v4779_v62  ;;  %4790 = vpow2.f32 %v4026_v50  ;;  %v6415_v50 = vsel %vm3321_vm5, 1.0, %v4870_v43 }
 0x4de   : > { %v4783_v42 = vpop.eup %4782  ;;  %v3251_v17 = vadd.f32 1.0, %v4781_v48 }
 0x4df   : > { %v4785_v60 = vpop.eup %4784  ;;  %4792 = vrcp.f32 %v3253_v4  ;;  %v3254_v37 = vadd.f32 1.0, %v4783_v42  ;;  %v3351_v4 = vsel %vm3339_vm3, %v6415_v50, 0.0 }
 0x4e0   : > { %4794 = vrcp.f32 %v3251_v17  ;;  %v3252_v2 = vadd.f32 1.0, %v4785_v60 }
 0x4e1   : > { %4796 = vrcp.f32 %v3254_v37 }
 0x4e2   : > { %4798 = vrcp.f32 %v3252_v2 }
 0x4e4   : > { %v4787_v52 = vpop.eup %4786 }
 0x4e5   : > { %v3257_v57 = vadd.f32 1.0, %v4787_v52 }
 0x4e6   : > { %v4789_v32 = vpop.eup %4788 }
 0x4e7   : > { %v4791_v45 = vpop.eup %4790  ;;  %4800 = vrcp.f32 %v3257_v57  ;;  %v3258_v41 = vadd.f32 1.0, %v4789_v32 }
 0x4e8   : > { %v3256_v23 = vadd.f32 1.0, %v4791_v45 }
 0x4e9   : > { %v4793_v58 = vpop.eup %4792 }
 0x4ea   : > { %v4795_v27 = vpop.eup %4794  ;;  %4802 = vrcp.f32 %v3256_v23  ;;  %v6355_v12 = vmul.f32 %v4793_v58, %v3205_v19  ;;  %v3308_v19 = vpop.permute.xlu1 %3307 }
 0x4eb   : > { %v4797_v29 = vpop.eup %4796  ;;  %v6357_v51 = vmul.f32 %v4795_v27, %v3197_v15  ;;  %4804 = vrcp.f32 %v3258_v41  ;;  %v3341_v15 = vsel %vm3339_vm3, %v6387_v61, 0.0  ;;  %vm3320_vm1 = vcmp.eq.s32.totalorder %v3308_v19, %v6754_v24 }
 0x4ec   : > { %v4799_v59 = vpop.eup %4798  ;;  %3367 = vadd.xlane.f32.xlu1 %v6355_v12  ;;  %v6363_v44 = vmul.f32 %v4797_v29, %v3208_v55  ;;  %4806 = vpow2.f32 %v4025_v6  ;;  %v3342_v55 = vadd.f32 %v3341_v15, %v3340_v46 }
 0x4ed   : > { %3363 = vadd.xlane.f32.xlu0 %v6357_v51  ;;  %v6361_v13 = vmul.f32 %v4799_v59, %v3200_v54  ;;  %v6399_v54 = vsel %vm3318_vm9, 1.0, %v4870_v43 }
 0x4ee   : > { %v3344_v63 = vadd.f32 %v3343_v3, %v3342_v55  ;;  %v3345_v36 = vsel %vm3339_vm3, %v6399_v54, 0.0 }
 0x4f0   : > { %3365 = vadd.xlane.f32.xlu1 %v6361_v13  ;;  %v3346_v1 = vadd.f32 %v3345_v36, %v3344_v63 }
 0x4f1   : > { %v4801_v53 = vpop.eup %4800  ;;  %3369 = vadd.xlane.f32.xlu0 %v6363_v44 }
 0x4f2   : > { %v6367_v33 = vmul.f32 %v4801_v53, %v3221_v38  ;;  %v6404_v38 = vsel %vm3319_vm11, 1.0, %v4870_v43 }
 0x4f3   : > { %v3347_v11 = vsel %vm3339_vm3, %v6404_v38, 0.0 }
 0x4f4   : > { %v4803_v20 = vpop.eup %4802 }
 0x4f5   : > { %3375 = vadd.xlane.f32.xlu0 %v6367_v33  ;;  %v6370_v26 = vmul.f32 %v4803_v20, %v3216_v39  ;;  %v4805_v16 = vpop.eup %4804  ;;  %v3348_v39 = vadd.f32 %v3347_v11, %v3346_v1 }
 0x4f6   : > { %v6373_v0 = vmul.f32 %v4805_v16, %v3224_v49  ;;  %v4807_v31 = vpop.eup %4806  ;;  %v6409_v49 = vsel %vm3320_vm1, 1.0, %v4870_v43 }
 0x4f7   : > { %v3255_v22 = vadd.f32 1.0, %v4807_v31  ;;  %v3349_v9 = vsel %vm3339_vm3, %v6409_v49, 0.0 }
 0x4f8   : > { %v3350_v62 = vadd.f32 %v3349_v9, %v3348_v39 }
 0x4f9   : > { %3373 = vadd.xlane.f32.xlu0 %v6370_v26  ;;  %4808 = vrcp.f32 %v3255_v22 }
 0x4fa   : > { %v3352_v17 = vadd.f32 %v3351_v4, %v3350_v62 }
 0x4fd   : > { %3377 = vadd.xlane.f32.xlu0 %v6373_v0 }
 0x501   : > { %3313 = vperm.xlu1 %4729, %v3290_v30  }
 0x503   : > { %v4809_v34 = vpop.eup %4808 }
 0x504   : > { %v6380_v18 = vmul.f32 %v4809_v34, %v3213_v35 }
 0x525   : > { %3371 = vadd.xlane.f32.xlu1 %v6380_v18 }
 0x579   : > { %v3368_v7 = vpop.xlane.xlu1 %3367 }
 0x57a   : > { %v3364_v37 = vpop.xlane.xlu0 %3363  ;;  %v3381_v41 = vmul.f32 %v6394_v21, %v3368_v7 }
 0x57b   : > { %v3379_v45 = vmul.f32 %v6385_v40, %v3364_v37 }
 0x57c   : > { %v3390_v16 = vsel %vm3339_vm3, %v3381_v41, 0.0 }
 0x57d   : > { %v3366_v10 = vpop.xlane.xlu1 %3365  ;;  %v3387_v29 = vsel %vm3339_vm3, %v3379_v45, 0.0 }
 0x57e   : > { %v3370_v52 = vpop.xlane.xlu0 %3369  ;;  %v3380_v32 = vmul.f32 %v6387_v61, %v3366_v10 }
 0x57f   : > { %v3382_v35 = vmul.f32 %v6399_v54, %v3370_v52 }
 0x580   : > { %v3388_v27 = vsel %vm3339_vm3, %v3380_v32, 0.0 }
 0x581   : > { %v3314_v8 = vpop.permute.xlu1 %3313  ;;  %v3389_v53 = vadd.f32 %v3388_v27, %v3387_v29  ;;  %v3392_v22 = vsel %vm3339_vm3, %v3382_v35, 0.0 }
 0x582   : > { %vm3322_vm6 = vcmp.eq.s32.totalorder %v3314_v8, %v6754_v24  ;;  %v3376_v58 = vpop.xlane.xlu0 %3375 }
 0x583   : > { %v6417_v48 = vsel %vm3322_vm6, 1.0, %v4870_v43  ;;  %v3391_v6 = vadd.f32 %v3390_v16, %v3389_v53  ;;  %v3385_v24 = vmul.f32 %v6415_v50, %v3376_v58 }
 0x584   : > { %v3353_v42 = vsel %vm3339_vm3, %v6417_v48, 0.0 }
 0x585   : > { %v3354_v60 = vadd.f32 %v3353_v42, %v3352_v17  ;;  %v3393_v25 = vadd.f32 %v3392_v22, %v3391_v6  ;;  %v3398_v28 = vsel %vm3339_vm3, %v3385_v24, 0.0 }
 0x586   : > { %v3374_v20 = vpop.xlane.xlu0 %3373 }
 0x587   : > { %v3355_v2 = vrot.slane %v3354_v60, 4  ;;  %v3384_v14 = vmul.f32 %v6409_v49, %v3374_v20 }
 0x589   : > { %v3356_v57 = vadd.f32 %v3355_v2, %v3354_v60  ;;  %v3396_v15 = vsel %vm3339_vm3, %v3384_v14, 0.0 }
 0x58a   : > { %v3378_v5 = vpop.xlane.xlu0 %3377 }
 0x58b   : > { %v3357_v23 = vrot.slane %v3356_v57, 2  ;;  %v3386_v7 = vmul.f32 %v6417_v48, %v3378_v5 }
 0x58d   : > { %v3358_v59 = vadd.f32 %v3357_v23, %v3356_v57  ;;  %v3400_v10 = vsel %vm3339_vm3, %v3386_v7, 0.0 }
 0x58f   : > { %v3359_v30 = vrot.slane %v3358_v59, 1 }
 0x591   : > { %v3360_v34 = vadd.f32 %v3359_v30, %v3358_v59 }
 0x593   : > { %v3361_v46 = vmax.f32 %v3360_v34, 1.0 }
 0x595   : > { %v3362_v63 = vmul.f32 128.0, %v3361_v46 }
 0x597   : > { %4810 = vrcp.f32 %v3362_v63 }
 0x5a1   : > { %v6439_v62 = vpop.eup %4810 }
 0x5b2   : > { %v3372_v31 = vpop.xlane.xlu1 %3371 }
 0x5b3   : > { %v3383_v56 = vmul.f32 %v6404_v38, %v3372_v31 }
 0x5b5   : > { %v3394_v43 = vsel %vm3339_vm3, %v3383_v56, 0.0 }
 0x5b6   : > { %v3395_v19 = vadd.f32 %v3394_v43, %v3393_v25 }
 0x5b8   : > { %v3397_v55 = vadd.f32 %v3396_v15, %v3395_v19 }
 0x5ba   : > { %v3399_v3 = vadd.f32 %v3398_v28, %v3397_v55 }
 0x5bc   : > { %v3401_v36 = vadd.f32 %v3400_v10, %v3399_v3 }
 0x5be   : > { %v3402_v1 = vrot.slane %v3401_v36, 4 }
 0x5c0   : > { %v3403_v47 = vadd.f32 %v3402_v1, %v3401_v36 }
 0x5c2   : > { %v3404_v11 = vrot.slane %v3403_v47, 2 }
 0x5c4   : > { %v3405_v8 = vadd.f32 %v3404_v11, %v3403_v47 }
 0x5c6   : > { %v3406_v39 = vrot.slane %v3405_v8, 1 }
 0x5c8   : > { %v3407_v9 = vadd.f32 %v3406_v39, %v3405_v8 }
 0x5ca   : > { %v3409_v4 = vmul.f32 %v6439_v62, %v3407_v9 }
 0x5cc   : > { %v3411_v42 = vmul.f32 %v6387_v61, %v3409_v4  ;;  %v3410_v17 = vmul.f32 %v6385_v40, %v3409_v4  ;;  %v3413_v2 = vmul.f32 %v6399_v54, %v3409_v4  ;;  %v3412_v52 = vmul.f32 %v6394_v21, %v3409_v4 }
 0x5cd   : > { %v3415_v45 = vmul.f32 %v6409_v49, %v3409_v4  ;;  %v3414_v23 = vmul.f32 %v6404_v38, %v3409_v4  ;;  %v3417_v41 = vmul.f32 %v6417_v48, %v3409_v4  ;;  %v3416_v29 = vmul.f32 %v6415_v50, %v3409_v4 }
 0x5ce   : > { %v3421_v60 = vsel %vm3339_vm3, %v3411_v42, 0.0  ;;  %v3418_v37 = vsel %vm3339_vm3, %v3410_v17, 0.0  ;;  %v3427_v57 = vsel %vm3339_vm3, %v3413_v2, 0.0  ;;  %v3424_v32 = vsel %vm3339_vm3, %v3412_v52, 0.0 }
 0x5cf   : > { %3422 = vadd.xlane.f32.xlu0 %v3421_v60  ;;  %3419 = vadd.xlane.f32.xlu1 %v3418_v37  ;;  %v3433_v58 = vsel %vm3339_vm3, %v3415_v45, 0.0  ;;  %v3430_v27 = vsel %vm3339_vm3, %v3414_v23, 0.0  ;;  %v3439_v59 = vsel %vm3339_vm3, %v3417_v41, 0.0  ;;  %v3436_v53 = vsel %vm3339_vm3, %v3416_v29, 0.0 }
 0x5d3   : > { %3428 = vadd.xlane.f32.xlu0 %v3427_v57  ;;  %3425 = vadd.xlane.f32.xlu1 %v3424_v32 }
 0x5d7   : > { %3434 = vadd.xlane.f32.xlu0 %v3433_v58  ;;  %3431 = vadd.xlane.f32.xlu1 %v3430_v27 }
 0x5db   : > { %3440 = vadd.xlane.f32.xlu0 %v3439_v59  ;;  %3437 = vadd.xlane.f32.xlu1 %v3436_v53 }
 0x65c   : > { %v3423_v20 = vpop.xlane.xlu0 %3422  ;;  %v3420_v16 = vpop.xlane.xlu1 %3419 }
 0x65d   : > { %v6459_v35 = vsub.f32 %v6361_v13, %v3423_v20  ;;  %v6462_v30 = vsub.f32 %v6357_v51, %v3420_v16 }
 0x65f   : > { %v3451_v6 = vmul.f32 %v6459_v35, %v6459_v35  ;;  %v3450_v31 = vmul.f32 %v6462_v30, %v6462_v30 }
 0x660   : > { %v3429_v22 = vpop.xlane.xlu0 %3428  ;;  %v3426_v34 = vpop.xlane.xlu1 %3425 }
 0x661   : > { %v6469_v14 = vsub.f32 %v6363_v44, %v3429_v22  ;;  %v6472_v56 = vsub.f32 %v6355_v12, %v3426_v34  ;;  %3460 = vadd.xlane.f32.xlu0 %v3451_v6  ;;  %3458 = vadd.xlane.f32.xlu1 %v3450_v31 }
 0x663   : > { %v3453_v51 = vmul.f32 %v6469_v14, %v6469_v14  ;;  %v3452_v13 = vmul.f32 %v6472_v56, %v6472_v56 }
 0x664   : > { %v3435_v25 = vpop.xlane.xlu0 %3434  ;;  %v3432_v5 = vpop.xlane.xlu1 %3431 }
 0x665   : > { %v6479_v24 = vsub.f32 %v6370_v26, %v3435_v25  ;;  %v6482_v43 = vsub.f32 %v6380_v18, %v3432_v5  ;;  %3464 = vadd.xlane.f32.xlu0 %v3453_v51  ;;  %3462 = vadd.xlane.f32.xlu1 %v3452_v13 }
 0x667   : > { %v3455_v12 = vmul.f32 %v6479_v24, %v6479_v24  ;;  %v3454_v44 = vmul.f32 %v6482_v43, %v6482_v43 }
 0x668   : > { %v3441_v19 = vpop.xlane.xlu0 %3440  ;;  %v3438_v46 = vpop.xlane.xlu1 %3437 }
 0x669   : > { %v6489_v15 = vsub.f32 %v6373_v0, %v3441_v19  ;;  %v6492_v7 = vsub.f32 %v6367_v33, %v3438_v46  ;;  %3468 = vadd.xlane.f32.xlu0 %v3455_v12  ;;  %3466 = vadd.xlane.f32.xlu1 %v3454_v44 }
 0x66b   : > { %v3457_v26 = vmul.f32 %v6489_v15, %v6489_v15  ;;  %v3456_v18 = vmul.f32 %v6492_v7, %v6492_v7 }
 0x66d   : > { %3472 = vadd.xlane.f32.xlu0 %v3457_v26  ;;  %3470 = vadd.xlane.f32.xlu1 %v3456_v18 }
 0x6ee   : > { %v3461_v55 = vpop.xlane.xlu0 %3460  ;;  %v3459_v28 = vpop.xlane.xlu1 %3458 }
 0x6ef   : > { %v3475_v3 = vmul.f32 %v6387_v61, %v3461_v55  ;;  %v3474_v0 = vmul.f32 %v6385_v40, %v3459_v28 }
 0x6f1   : > { %v3483_v63 = vsel %vm3339_vm3, %v3475_v3, 0.0  ;;  %v3482_v33 = vsel %vm3339_vm3, %v3474_v0, 0.0 }
 0x6f2   : > { %v3465_v10 = vpop.xlane.xlu0 %3464  ;;  %v3463_v36 = vpop.xlane.xlu1 %3462  ;;  %v3484_v11 = vadd.f32 %v3483_v63, %v3482_v33 }
 0x6f3   : > { %v3477_v1 = vmul.f32 %v6399_v54, %v3465_v10  ;;  %v3476_v47 = vmul.f32 %v6394_v21, %v3463_v36 }
 0x6f5   : > { %v3485_v8 = vsel %vm3339_vm3, %v3476_v47, 0.0  ;;  %v3487_v42 = vsel %vm3339_vm3, %v3477_v1, 0.0 }
 0x6f6   : > { %v3486_v39 = vadd.f32 %v3485_v8, %v3484_v11  ;;  %v3469_v9 = vpop.xlane.xlu0 %3468  ;;  %v3467_v4 = vpop.xlane.xlu1 %3466 }
 0x6f7   : > { %v3479_v17 = vmul.f32 %v6409_v49, %v3469_v9  ;;  %v3478_v60 = vmul.f32 %v6404_v38, %v3467_v4  ;;  %v4037_v9 = vld [vmem:[%s6606_s11] ss:$0 sm:$0xff] }
 0x6f8   : > { %v3488_v37 = vadd.f32 %v3487_v42, %v3486_v39 }
 0x6f9   : > { %v3489_v2 = vsel %vm3339_vm3, %v3478_v60, 0.0  ;;  %v3491_v45 = vsel %vm3339_vm3, %v3479_v17, 0.0 }
 0x6fa   : > { %v3490_v52 = vadd.f32 %v3489_v2, %v3488_v37  ;;  %v3473_v57 = vpop.xlane.xlu0 %3472  ;;  %v3471_v32 = vpop.xlane.xlu1 %3470  ;;  %v4038_v37 = vld [vmem:[%s6607_s12] ss:$0 sm:$0xff] }
 0x6fb   : > { %v3481_v23 = vmul.f32 %v6417_v48, %v3473_v57  ;;  %v3480_v58 = vmul.f32 %v6415_v50, %v3471_v32  ;;  %v2876_v32 = vld [vmem:[%s6595_s0 + $0x8] sm:$0xff] }
 0x6fc   : > { %v3492_v27 = vadd.f32 %v3491_v45, %v3490_v52 }
 0x6fd   : > { %v3493_v41 = vsel %vm3339_vm3, %v3480_v58, 0.0  ;;  %v3495_v59 = vsel %vm3339_vm3, %v3481_v23, 0.0 }
 0x6fe   : > { %v3494_v29 = vadd.f32 %v3493_v41, %v3492_v27 }
 0x700   : > { %v3496_v53 = vadd.f32 %v3495_v59, %v3494_v29 }
 0x702   : > { %v3497_v20 = vrot.slane %v3496_v53, 4 }
 0x704   : > { %v3498_v16 = vadd.f32 %v3497_v20, %v3496_v53 }
 0x706   : > { %v3499_v6 = vrot.slane %v3498_v16, 2 }
 0x708   : > { %v3500_v31 = vadd.f32 %v3499_v6, %v3498_v16  ;;  %v2878_v16 = vld [vmem:[%s6595_s0 + $0x18] sm:$0xff] }
 0x70a   : > { %v3501_v22 = vrot.slane %v3500_v31, 1 }
 0x70c   : > { %v3502_v34 = vadd.f32 %v3501_v22, %v3500_v31 }
 0x70e   : > { %v3503_v51 = vmul.f32 %v6439_v62, %v3502_v34 }
 0x710   : > { %v3505_v13 = vmul.f32 %v6387_v61, %v3503_v51  ;;  %v3504_v25 = vmul.f32 %v6385_v40, %v3503_v51  ;;  %v3507_v44 = vmul.f32 %v6399_v54, %v3503_v51  ;;  %v3506_v19 = vmul.f32 %v6394_v21, %v3503_v51 }
 0x711   : > { %v3509_v62 = vmul.f32 %v6409_v49, %v3503_v51  ;;  %v3508_v61 = vmul.f32 %v6404_v38, %v3503_v51  ;;  %v3511_v54 = vmul.f32 %v6417_v48, %v3503_v51  ;;  %v3510_v21 = vmul.f32 %v6415_v50, %v3503_v51  ;;  %v2877_v51 = vld [vmem:[%s6595_s0 + $0x10] sm:$0xff] }
 0x712   : > { %v3515_v5 = vsel %vm3339_vm3, %v3505_v13, 0.0  ;;  %v3512_v12 = vsel %vm3339_vm3, %v3504_v25, 0.0  ;;  %v3521_v46 = vsel %vm3339_vm3, %v3507_v44, 0.0  ;;  %v3518_v26 = vsel %vm3339_vm3, %v3506_v19, 0.0 }
 0x713   : > { %3516 = vadd.xlane.f32.xlu0 %v3515_v5  ;;  %3513 = vadd.xlane.f32.xlu1 %v3512_v12  ;;  %v3527_v40 = vsel %vm3339_vm3, %v3509_v62, 0.0  ;;  %v3524_v18 = vsel %vm3339_vm3, %v3508_v61, 0.0  ;;  %v3533_v55 = vsel %vm3339_vm3, %v3511_v54, 0.0  ;;  %v3530_v28 = vsel %vm3339_vm3, %v3510_v21, 0.0  ;;  %v2880_v62 = vld [vmem:[%s6595_s0 + $0x28] sm:$0xff] }
 0x717   : > { %3522 = vadd.xlane.f32.xlu0 %v3521_v46  ;;  %3519 = vadd.xlane.f32.xlu1 %v3518_v26 }
 0x71b   : > { %3528 = vadd.xlane.f32.xlu0 %v3527_v40  ;;  %3525 = vadd.xlane.f32.xlu1 %v3524_v18 }
 0x71f   : > { %3534 = vadd.xlane.f32.xlu0 %v3533_v55  ;;  %3531 = vadd.xlane.f32.xlu1 %v3530_v28 }
 0x7a0   : > { %v3517_v49 = vpop.xlane.xlu0 %3516  ;;  %v3514_v38 = vpop.xlane.xlu1 %3513 }
 0x7a1   : > { %v3537_v3 = vadd.f32 1e-05, %v3517_v49  ;;  %v3536_v0 = vadd.f32 1e-05, %v3514_v38 }
 0x7a3   : > { %4812 = vrsqrt.f32 %v3537_v3 }
 0x7a4   : > { %4814 = vrsqrt.f32 %v3536_v0  ;;  %v3523_v63 = vpop.xlane.xlu0 %3522  ;;  %v3520_v33 = vpop.xlane.xlu1 %3519 }
 0x7a5   : > { %v3539_v10 = vadd.f32 1e-05, %v3523_v63  ;;  %v3538_v48 = vadd.f32 1e-05, %v3520_v33  ;;  %v2882_v33 = vld [vmem:[%s6595_s0 + $0x38] sm:$0xff] }
 0x7a7   : > { %4816 = vrsqrt.f32 %v3539_v10 }
 0x7a8   : > { %4818 = vrsqrt.f32 %v3538_v48  ;;  %v3529_v50 = vpop.xlane.xlu0 %3528  ;;  %v3526_v36 = vpop.xlane.xlu1 %3525 }
 0x7a9   : > { %v3541_v1 = vadd.f32 1e-05, %v3529_v50  ;;  %v3540_v47 = vadd.f32 1e-05, %v3526_v36 }
 0x7ab   : > { %4820 = vrsqrt.f32 %v3541_v1 }
 0x7ac   : > { %4822 = vrsqrt.f32 %v3540_v47  ;;  %v3535_v11 = vpop.xlane.xlu0 %3534  ;;  %v3532_v8 = vpop.xlane.xlu1 %3531 }
 0x7ad   : > { %v4813_v39 = vpop.eup %4812  ;;  %v3543_v4 = vadd.f32 1e-05, %v3535_v11  ;;  %v3542_v42 = vadd.f32 1e-05, %v3532_v8 }
 0x7ae   : > { %v4815_v17 = vpop.eup %4814  ;;  %v3553_v60 = vmul.f32 %v4813_v39, %v6459_v35  ;;  %v2875_v35 = vld [vmem:[%s6595_s0] sm:$0xff] }
 0x7af   : > { %v3552_v2 = vmul.f32 %v4815_v17, %v6462_v30  ;;  %4824 = vrsqrt.f32 %v3543_v4 }
 0x7b0   : > { %v3568_v52 = vmul.f32 %v4037_v9, %v3553_v60  ;;  %4826 = vrsqrt.f32 %v3542_v42 }
 0x7b1   : > { %v4817_v57 = vpop.eup %4816  ;;  %v3567_v45 = vmul.f32 %v4037_v9, %v3552_v2 }
 0x7b2   : > { %v4819_v23 = vpop.eup %4818  ;;  %v3583_v58 = vadd.f32 %v4038_v37, %v3568_v52  ;;  %v3555_v27 = vmul.f32 %v4817_v57, %v6469_v14 }
 0x7b3   : > { %v3582_v41 = vadd.f32 %v4038_v37, %v3567_v45  ;;  %v3554_v30 = vmul.f32 %v4819_v23, %v6472_v56 }
 0x7b4   : > { %v3591_v29 = vadd.f32 %v3583_v58, %v2876_v32  ;;  %v3570_v59 = vmul.f32 %v4037_v9, %v3555_v27 }
 0x7b5   : > { %v4821_v53 = vpop.eup %4820  ;;  %v3590_v20 = vadd.f32 %v3582_v41, %v2875_v35  ;;  %v3569_v6 = vmul.f32 %v4037_v9, %v3554_v30 }
 0x7b6   : > { %v4823_v31 = vpop.eup %4822  ;;  %v3599_v22 = vmul.f32 0.5, %v3591_v29  ;;  %v3585_v34 = vadd.f32 %v4038_v37, %v3570_v59  ;;  %v3557_v14 = vmul.f32 %v4821_v53, %v6479_v24  ;;  %v2879_v24 = vld [vmem:[%s6595_s0 + $0x20] sm:$0xff] }
 0x7b7   : > { %v3598_v13 = vmul.f32 0.5, %v3590_v20  ;;  %v3584_v56 = vadd.f32 %v4038_v37, %v3569_v6  ;;  %v3556_v25 = vmul.f32 %v4823_v31, %v6482_v43 }
 0x7b8   : > { %v3607_v5 = vmax.f32 %v3599_v22, 0.0  ;;  %v3593_v12 = vadd.f32 %v3585_v34, %v2878_v16  ;;  %v3572_v44 = vmul.f32 %v4037_v9, %v3557_v14 }
 0x7b9   : > { %v4825_v19 = vpop.eup %4824  ;;  %v3606_v46 = vmax.f32 %v3598_v13, 0.0  ;;  %v3592_v26 = vadd.f32 %v3584_v56, %v2877_v51  ;;  %v3571_v61 = vmul.f32 %v4037_v9, %v3556_v25 }
 0x7ba   : > { %v4827_v40 = vpop.eup %4826  ;;  %3615 = vst [vmem:[#allocation4 + $0x8] sm:$0xff] %v3607_v5  ;;  %v3601_v18 = vmul.f32 0.5, %v3593_v12  ;;  %v3587_v54 = vadd.f32 %v4038_v37, %v3572_v44  ;;  %v3559_v43 = vmul.f32 %v4825_v19, %v6489_v15  ;;  %v2881_v15 = vld [vmem:[%s6595_s0 + $0x30] sm:$0xff] }
 0x7bb   : > { %3614 = vst [vmem:[#allocation4] sm:$0xff] %v3606_v46  ;;  %v3600_v21 = vmul.f32 0.5, %v3592_v26  ;;  %v3586_v55 = vadd.f32 %v4038_v37, %v3571_v61  ;;  %v3558_v28 = vmul.f32 %v4827_v40, %v6492_v7 }
 0x7bc   : > { %v3609_v49 = vmax.f32 %v3601_v18, 0.0  ;;  %v3595_v38 = vadd.f32 %v3587_v54, %v2880_v62  ;;  %v3574_v3 = vmul.f32 %v4037_v9, %v3559_v43 }
 0x7bd   : > { %v3608_v0 = vmax.f32 %v3600_v21, 0.0  ;;  %v3594_v63 = vadd.f32 %v3586_v55, %v2879_v24  ;;  %v3573_v10 = vmul.f32 %v4037_v9, %v3558_v28 }
 0x7be   : > { %3617 = vst [vmem:[#allocation4 + $0x18] sm:$0xff] %v3609_v49  ;;  %v3603_v48 = vmul.f32 0.5, %v3595_v38  ;;  %v3589_v50 = vadd.f32 %v4038_v37, %v3574_v3 }
 0x7bf   : > { %3616 = vst [vmem:[#allocation4 + $0x10] sm:$0xff] %v3608_v0  ;;  %v3602_v36 = vmul.f32 0.5, %v3594_v63  ;;  %v3588_v7 = vadd.f32 %v4038_v37, %v3573_v10 }
 0x7c0   : > { %v3611_v1 = vmax.f32 %v3603_v48, 0.0  ;;  %v3597_v47 = vadd.f32 %v3589_v50, %v2882_v33 }
 0x7c1   : > { %v3610_v11 = vmax.f32 %v3602_v36, 0.0  ;;  %v3596_v8 = vadd.f32 %v3588_v7, %v2881_v15 }
 0x7c2   : > { %3619 = vst [vmem:[#allocation4 + $0x28] sm:$0xff] %v3611_v1  ;;  %v3605_v39 = vmul.f32 0.5, %v3597_v47 }
 0x7c3   : > { %3618 = vst [vmem:[#allocation4 + $0x20] sm:$0xff] %v3610_v11  ;;  %v3604_v4 = vmul.f32 0.5, %v3596_v8 }
 0x7c4   : > { %v3613_v42 = vmax.f32 %v3605_v39, 0.0 }
 0x7c5   : > { %v3612_v9 = vmax.f32 %v3604_v4, 0.0 }
 0x7c6   : > { %3621 = vst [vmem:[#allocation4 + $0x38] sm:$0xff] %v3613_v42 }
 0x7c7   : > { %3620 = vst [vmem:[#allocation4 + $0x30] sm:$0xff] %v3612_v9 }
 0x7c8 PF: > { %p4415_p7 = scmp.eq.s32.totalorder %s4950_s26, 1  ;;  %s4871_s14 = smov [#allocation4]  }
 0x7c9   : > { %s3628_s28 = sshll.u32 %s4871_s14, 4  ;;  %s3629_s28 = int_to_ptr.vmem [resolvable:$true] %s3628_s28 }
 0x7ca   : > { %s4828_s22 = scalar_lea.vmem %s3629_s28, 1024  ;;  %p4835_p11 = scmp.lt.s32.totalorder %s3629_s28, %s3629_s28 }
 0x7cb   : > { %p4829_p8 = scmp.ne.s32.totalorder %s3629_s28, %s4828_s22  ;;  %p4836_p12 = scmp.lt.s32.totalorder %s4828_s22, %s4828_s22 }
 0x7cd   : > { %p4830_p9 = pnand %p4829_p8, %p4415_p7  ;;  %p4837_p13 = por %p4836_p12, %p4835_p11 }
 0x7cf   : > { %p4831_p10 = pneg %p4830_p9 }
 0x7d1   : > { %p4838_p0 = pnand %p4837_p13, %p4831_p10 }
 0x7d3   : > { %4841 = shalt.err (!%p4838_p0)
}
 0x7d4   : > { %s4842_s30 = scalar_lea.hbm %s6608_s13, 1024 }
 0x7d5   : > { %p4843_p1 = scmp.ne.s32.totalorder %s6608_s13, %s4842_s30  ;;  %p4848_p4 = scmp.lt.u32.totalorder %s4842_s30, %s6608_s13 }
 0x7d7   : > { %p4844_p2 = pnand %p4843_p1, %p4415_p7 }
 0x7d9   : > { %p4845_p3 = pneg %p4844_p2 }
 0x7db   : > { %p4850_p5 = pnand %p4848_p4, %p4845_p3 }
 0x7dd   : > { %4853 = shalt.err (!%p4850_p5)
}
 0x7de   : > { %s4872_s23 = smov 128   ;;  %s4873_s24 = smov 8  }
 0x7df   : > { %4412 = dma.vmem_to_hbm [thread:$0]  (%p4415_p7), %s3629_s28, 1024, %s6608_s13, [#allocation5], %s4872_s23, %s4872_s23, %s4873_s24  }
 0x7e0   : > { %4859 = dma.done.wait (%p4415_p7), [#allocation5], 1024  }
 0x7e1   : > { %4861 = vsyncadd (%p4415_p7), [#allocation5], 4294966272 }
 0x7e2 PF: > { %s24_s25 = sadd.s32 1, %s4864_s25  }
 0x7e3   : > { %p21_p6 = scmp.ge.s32.totalorder %s24_s25, 4  }
 0x7e5   :  { %23 = sbr.rel (!%p21_p6) target bundleno = 1 (0x1), region = 113 }
 0x7ec   :  { %3644 = vsyncpa [#allocation5], 1 }
 0x7ed   :  { %3646 = vsyncpa [#allocation5 + $0x1], 1 }

</bundles_post_ra>
